<compile_context>
chip_gen: v5e
topology: v5e:2x2
jax: 0.10.0
libtpu: 0.0.40
codegen_flags: <defaults>
</compile_context>

<pallas_src>
import functools

import jax
import jax.numpy as jnp
from jax.experimental import pallas as pl
from jax.experimental.pallas import tpu as pltpu

NUM_ANGLE_BIN = 12
OUT_DIM = 3 + NUM_ANGLE_BIN * 2 + 3   # 30
OUT_PAD = 128                         # lane-dense padded output width
C_IN = 4
H1, H2, H3 = 128, 256, 512
F1, F2 = 512, 256

_MIB = 1 << 20

# Per-generation config:
#   target  - per-step point count N = b_tile*m_tile to aim for
#   n_cap   - hard cap on N
#   vmem_cap- scoped-VMEM budget (<= physical per TC)
#   keep_two- keep >=2 grid points on the parallel (batch) axis (v7x: 2 TCs)
#   mxu_conv1 / bf16_epilogue - generation-gated kernel variants
_GEN_CONFIG = {
    "v5e": dict(target=2048, n_cap=8192,  vmem_cap=96 * _MIB, keep_two=False,
                mxu_conv1=False, bf16_epilogue=False),
    "v6e": dict(target=4096, n_cap=16384, vmem_cap=96 * _MIB, keep_two=False,
                mxu_conv1=True,  bf16_epilogue=True),
    "v7x": dict(target=4096, n_cap=8192,  vmem_cap=56 * _MIB, keep_two=True,
                mxu_conv1=True,  bf16_epilogue=True),
}
_DEFAULT_CONFIG = dict(target=2048, n_cap=4096, vmem_cap=48 * _MIB,
                       keep_two=False, mxu_conv1=False, bf16_epilogue=False)


def _tpu_generation():
    try:
        kind = jax.devices()[0].device_kind.lower().replace(" ", "")
    except Exception:  # pragma: no cover - defensive
        return "unknown"
    if "v5lite" in kind or "v5e" in kind:
        return "v5e"
    if "v6" in kind:
        return "v6e"
    if "v7" in kind or "tpu7" in kind:
        return "v7x"
    return "unknown"


def _vmem_estimate(b_tile, m_tile, ew_bytes):
    """Conservative scoped-VMEM estimate for a (b_tile, m_tile) step."""
    n = b_tile * m_tile
    # x tile: trailing dim 4 lane-pads to 128; bf16; double-buffered.
    x_tile = 2 * b_tile * m_tile * 128 * 2
    # per-point intermediates: f32 MXU result + ew copy + bf16 matmul input.
    inter = n * (H1 + H2 + H3) * (4 + ew_bytes + 2)
    weights = 2 * 2 * (C_IN * H1 + H1 * H2 + H2 * H3
                       + H3 * F1 + F1 * F2 + F2 * OUT_PAD)   # bf16, x2 headroom
    return x_tile + inter + weights + 2 * _MIB


def _choose_tiles(B, M, cfg, ew_bytes):
    # Largest m_tile candidate that divides M (falls back to full M).
    m_tile = M
    for cand in (2048, 1024, 512, 256, 128, 64, 32, 16, 8):
        if M % cand == 0:
            m_tile = cand
            break
    b_cap = max(1, B // 2) if cfg["keep_two"] else B
    b_tile = 1
    for d in range(1, B + 1):
        if B % d:
            continue
        if d > b_cap:
            break
        if d * m_tile > cfg["n_cap"]:
            break
        if _vmem_estimate(d, m_tile, ew_bytes) > cfg["vmem_cap"]:
            break
        b_tile = d
        if d * m_tile >= cfg["target"]:
            break
    return b_tile, m_tile


def box_est_kernel(x_ref,
                   w1_ref, b1_ref, w2_ref, b2_ref, w3_ref, b3_ref,
                   wf1_ref, bf1_ref, wf2_ref, bf2_ref, wf3_ref, bf3_ref,
                   out_ref, gmax_ref, *, mxu_conv1, ew_dtype):
    m_idx = pl.program_id(1)

    @pl.when(m_idx == 0)
    def _():
        gmax_ref[...] = jnp.full(gmax_ref.shape, -jnp.inf, gmax_ref.dtype)

    bt, mt, _ = x_ref.shape
    n = bt * mt

    if mxu_conv1:
        # v6e/v7x: the step is VALU-bound and the MXU has slack, so conv1
        # (K=4) rides on the MXU for ~free and its FMAs come off the VPU.
        x = x_ref[...].reshape(n, C_IN)                               # (N,4) bf16
        h = jnp.dot(x, w1_ref[...], preferred_element_type=jnp.float32)
        h = jnp.maximum(h.astype(ew_dtype) + b1_ref[...], 0.0).astype(jnp.bfloat16)
    else:
        # v5e: the MXU is the binding unit and there is no bf16 VPU, so keep
        # conv1 as f32 VPU broadcast FMAs (free filler under the MXU).
        x = x_ref[...].astype(jnp.float32).reshape(n, C_IN)           # (N,4) f32
        w1 = w1_ref[...]                                              # (4,128) f32
        h = (x[:, 0:1] * w1[0:1, :] + x[:, 1:2] * w1[1:2, :]
             + x[:, 2:3] * w1[2:3, :] + x[:, 3:4] * w1[3:4, :])
        h = jnp.maximum(h + b1_ref[...], 0.0).astype(jnp.bfloat16)    # (N,128)

    # conv2 / conv3: bf16 MXU matmuls, f32 accumulation, ew_dtype epilogues.
    h = jnp.dot(h, w2_ref[...], preferred_element_type=jnp.float32)
    h = jnp.maximum(h.astype(ew_dtype) + b2_ref[...], 0.0).astype(jnp.bfloat16)
    h = jnp.dot(h, w3_ref[...], preferred_element_type=jnp.float32)
    h = jnp.maximum(h.astype(ew_dtype) + b3_ref[...], 0.0)           # (N, 512)

    # MaxPool2d((num_point, 1)) as a running max over the M grid axis.
    # (exact in bf16: max of bf16 values, h >= 0 post-ReLU.)
    tile_max = jnp.max(h.reshape(bt, mt, H3), axis=1)                 # (bt, 512)
    gmax_ref[...] = jnp.maximum(gmax_ref[...], tile_max)

    @pl.when(m_idx == pl.num_programs(1) - 1)
    def _():
        g = gmax_ref[...].astype(jnp.bfloat16)                        # (bt, 512)
        f = jnp.dot(g, wf1_ref[...], preferred_element_type=jnp.float32)
        f = jnp.maximum(f.astype(ew_dtype) + bf1_ref[...], 0.0).astype(jnp.bfloat16)
        f = jnp.dot(f, wf2_ref[...], preferred_element_type=jnp.float32)
        f = jnp.maximum(f.astype(ew_dtype) + bf2_ref[...], 0.0).astype(jnp.bfloat16)
        o = jnp.dot(f, wf3_ref[...], preferred_element_type=jnp.float32) + bf3_ref[...]
        out_ref[:, 0, :] = o                                          # (bt, OUT_PAD) f32


def make_params(key, dtype=jnp.float32):
    dims = [(C_IN, H1), (H1, H2), (H2, H3),       # conv1..conv3 (1x1)
            (H3, F1), (F1, F2), (F2, OUT_DIM)]    # fc1..fc3
    params = []
    keys = jax.random.split(key, len(dims))
    for k, (cin, cout) in zip(keys, dims):
        kw, kb = jax.random.split(k)
        params.append((jax.random.normal(kw, (cin, cout), jnp.float32) * 0.05).astype(dtype))
        params.append((jax.random.normal(kb, (1, cout), jnp.float32) * 0.01).astype(dtype))
    return params


@jax.jit
def box_estimation_net_3d(x, params):
    B, M, C = x.shape
    assert C == C_IN

    gen = _tpu_generation()
    cfg = _GEN_CONFIG.get(gen, _DEFAULT_CONFIG)
    ew_dtype = jnp.bfloat16 if cfg["bf16_epilogue"] else jnp.float32
    ew_bytes = 2 if cfg["bf16_epilogue"] else 4
    b_tile, m_tile = _choose_tiles(B, M, cfg, ew_bytes)

    (w1, b1, w2, b2, w3, b3, wf1, bf1, wf2, bf2, wf3, bf3) = params

    # bf16 weights for the MXU layers (halves resident-weight footprint + DMA).
    # conv1 weight/bias stay f32 on the VPU path (v5e), go bf16 on the MXU path.
    w1_k = w1.astype(jnp.bfloat16) if cfg["mxu_conv1"] else w1.astype(jnp.float32)
    b1_k = b1.astype(ew_dtype) if cfg["mxu_conv1"] else b1.astype(jnp.float32)
    # Pad fc3 to a lane-dense 128-wide output -> unmasked final vst.
    wf3p = jnp.zeros((F2, OUT_PAD), jnp.bfloat16).at[:, :OUT_DIM].set(
        wf3.astype(jnp.bfloat16))
    bf3p = jnp.zeros((1, OUT_PAD), jnp.float32).at[:, :OUT_DIM].set(
        bf3.astype(jnp.float32))

    args = (x.astype(jnp.bfloat16),               # bf16 x halves the lane-padded tile
            w1_k, b1_k,
            w2.astype(jnp.bfloat16), b2.astype(ew_dtype),
            w3.astype(jnp.bfloat16), b3.astype(ew_dtype),
            wf1.astype(jnp.bfloat16), bf1.astype(ew_dtype),
            wf2.astype(jnp.bfloat16), bf2.astype(ew_dtype),
            wf3p, bf3p)

    grid = (B // b_tile, M // m_tile)

    in_specs = [pl.BlockSpec((b_tile, m_tile, C_IN),
                             lambda bi, mi: (bi, mi, 0))]
    # Weights / biases: full-array blocks, VMEM-resident across the grid.
    in_specs += [pl.BlockSpec(a.shape, lambda bi, mi: (0, 0))
                 for a in args[1:]]

    out_spec = pl.BlockSpec((b_tile, 1, OUT_PAD), lambda bi, mi: (bi, 0, 0))

    flops = (2 * B * M * (C_IN * H1 + H1 * H2 + H2 * H3)
             + 2 * B * (H3 * F1 + F1 * F2 + F2 * OUT_PAD))
    bytes_accessed = (B * M * C_IN * 2
                      + sum(int(a.size) * a.dtype.itemsize for a in args[1:])
                      + B * OUT_PAD * 4)

    vmem_limit = int(min(cfg["vmem_cap"],
                         max(32 * _MIB,
                             _vmem_estimate(b_tile, m_tile, ew_bytes))))

    kernel = functools.partial(box_est_kernel,
                               mxu_conv1=cfg["mxu_conv1"], ew_dtype=ew_dtype)

    out = pl.pallas_call(
        kernel,
        out_shape=jax.ShapeDtypeStruct((B, 1, OUT_PAD), jnp.float32),
        grid_spec=pltpu.PrefetchScalarGridSpec(
            num_scalar_prefetch=0,
            grid=grid,
            in_specs=in_specs,
            out_specs=out_spec,
            scratch_shapes=[pltpu.VMEM((b_tile, H3), ew_dtype)]),
        compiler_params=pltpu.CompilerParams(
            dimension_semantics=("parallel", "arbitrary"),
            vmem_limit_bytes=vmem_limit),
        cost_estimate=pl.CostEstimate(
            flops=int(flops), transcendentals=0,
            bytes_accessed=int(bytes_accessed)),
    )(*args)

    return out[:, 0, :OUT_DIM]


def reference_forward(x, params):
    (w1, b1, w2, b2, w3, b3, wf1, bf1, wf2, bf2, wf3, bf3) = params
    h = jnp.maximum(jnp.einsum('bmc,cd->bmd', x, w1) + b1, 0.0)
    h = jnp.maximum(jnp.einsum('bmc,cd->bmd', h, w2) + b2, 0.0)
    h = jnp.maximum(jnp.einsum('bmc,cd->bmd', h, w3) + b3, 0.0)
    g = jnp.max(h, axis=1)
    f = jnp.maximum(g @ wf1 + bf1, 0.0)
    f = jnp.maximum(f @ wf2 + bf2, 0.0)
    return f @ wf3 + bf3


if __name__ == "__main__":
    B, num_point = 2, 128   # small shapes; C_in fixed at 4 by the module
    key = jax.random.PRNGKey(0)
    kx, kp = jax.random.split(key)
    x = jax.random.normal(kx, (B, num_point, C_IN), jnp.float32)
    params = make_params(kp)

    out = jax.block_until_ready(box_estimation_net_3d(x, params))
    ref = reference_forward(x, params)

    assert out.shape == (B, OUT_DIM)
    # bf16 inputs/epilogues on v6e/v7x; tolerance accounts for bf16 rounding.
    err = jnp.max(jnp.abs(out - ref))
    assert jnp.allclose(out, ref, atol=1e-2, rtol=5e-2), f"max abs err {err}"
    print("KERNEL_OK")
</pallas_src>

<mosaic_0001>
module attributes {stable_mosaic.version = 11 : i64} {
  func.func @box_est_kernel(%arg0: i32, %arg1: i32, %arg2: memref<2x128x4xbf16, #tpu.memory_space<vmem>>, %arg3: memref<4x128xf32, #tpu.memory_space<vmem>>, %arg4: memref<1x128xf32, #tpu.memory_space<vmem>>, %arg5: memref<128x256xbf16, #tpu.memory_space<vmem>>, %arg6: memref<1x256xf32, #tpu.memory_space<vmem>>, %arg7: memref<256x512xbf16, #tpu.memory_space<vmem>>, %arg8: memref<1x512xf32, #tpu.memory_space<vmem>>, %arg9: memref<512x512xbf16, #tpu.memory_space<vmem>>, %arg10: memref<1x512xf32, #tpu.memory_space<vmem>>, %arg11: memref<512x256xbf16, #tpu.memory_space<vmem>>, %arg12: memref<1x256xf32, #tpu.memory_space<vmem>>, %arg13: memref<256x128xbf16, #tpu.memory_space<vmem>>, %arg14: memref<1x128xf32, #tpu.memory_space<vmem>>, %arg15: memref<2x1x128xf32, #tpu.memory_space<vmem>>, %arg16: memref<2x512xf32, #tpu.memory_space<vmem>>) attributes {dimension_semantics = [#tpu.dimension_semantics<parallel>, #tpu.dimension_semantics<arbitrary>], iteration_bounds = array<i64: 1, 1>, scalar_prefetch = 0 : i64, scratch_operands = 1 : i64, tpu.core_type = #tpu.core_type<tc>, window_params = [{transform_indices = @transform_0, window_bounds = array<i64: 2, 128, 4>}, {pipeline_mode = #tpu.pipeline_mode<synchronous>, transform_indices = @transform_1, window_bounds = array<i64: 4, 128>}, {pipeline_mode = #tpu.pipeline_mode<synchronous>, transform_indices = @transform_2, window_bounds = array<i64: 1, 128>}, {pipeline_mode = #tpu.pipeline_mode<synchronous>, transform_indices = @transform_3, window_bounds = array<i64: 128, 256>}, {pipeline_mode = #tpu.pipeline_mode<synchronous>, transform_indices = @transform_4, window_bounds = array<i64: 1, 256>}, {pipeline_mode = #tpu.pipeline_mode<synchronous>, transform_indices = @transform_5, window_bounds = array<i64: 256, 512>}, {pipeline_mode = #tpu.pipeline_mode<synchronous>, transform_indices = @transform_6, window_bounds = array<i64: 1, 512>}, {pipeline_mode = #tpu.pipeline_mode<synchronous>, transform_indices = @transform_7, window_bounds = array<i64: 512, 512>}, {pipeline_mode = #tpu.pipeline_mode<synchronous>, transform_indices = @transform_8, window_bounds = array<i64: 1, 512>}, {pipeline_mode = #tpu.pipeline_mode<synchronous>, transform_indices = @transform_9, window_bounds = array<i64: 512, 256>}, {pipeline_mode = #tpu.pipeline_mode<synchronous>, transform_indices = @transform_10, window_bounds = array<i64: 1, 256>}, {pipeline_mode = #tpu.pipeline_mode<synchronous>, transform_indices = @transform_11, window_bounds = array<i64: 256, 128>}, {pipeline_mode = #tpu.pipeline_mode<synchronous>, transform_indices = @transform_12, window_bounds = array<i64: 1, 128>}, {transform_indices = @transform_13, window_bounds = array<i64: 2, 1, 128>}]} {
    %c0_i32 = arith.constant 0 : i32
    %0 = arith.cmpi eq, %arg1, %c0_i32 : i32
    %1 = arith.extui %0 : i1 to i32
    %c0_i32_0 = arith.constant 0 : i32
    %2 = arith.cmpi ne, %1, %c0_i32_0 : i32
    scf.if %2 {
      %cst_26 = arith.constant 0xFF800000 : f32
      %59 = vector.broadcast %cst_26 : f32 to vector<2x512xf32>
      %c0_27 = arith.constant 0 : index
      %c0_28 = arith.constant 0 : index
      %60 = vector.load %arg16[%c0_27, %c0_28] : memref<2x512xf32, #tpu.memory_space<vmem>>, vector<2x512xf32>
      tpu.vector_store %arg16[%c0_27, %c0_28], %59 {strides = array<i32>} : memref<2x512xf32, #tpu.memory_space<vmem>>, vector<2x512xf32>,
    } else {
    }
    %c0 = arith.constant 0 : index
    %c0_1 = arith.constant 0 : index
    %c0_2 = arith.constant 0 : index
    %3 = vector.load %arg2[%c0, %c0_1, %c0_2] : memref<2x128x4xbf16, #tpu.memory_space<vmem>>, vector<2x128x4xbf16>
    %4 = arith.extf %3 : vector<2x128x4xbf16> to vector<2x128x4xf32>
    %5 = vector.shape_cast %4 : vector<2x128x4xf32> to vector<256x4xf32>
    %c0_3 = arith.constant 0 : index
    %c0_4 = arith.constant 0 : index
    %6 = vector.load %arg3[%c0_3, %c0_4] : memref<4x128xf32, #tpu.memory_space<vmem>>, vector<4x128xf32>
    %7 = vector.extract_strided_slice %5 {offsets = [0, 0], sizes = [256, 1], strides = [1, 1]} : vector<256x4xf32> to vector<256x1xf32>
    %8 = vector.extract_strided_slice %6 {offsets = [0, 0], sizes = [1, 128], strides = [1, 1]} : vector<4x128xf32> to vector<1x128xf32>
    %9 = vector.broadcast %7 : vector<256x1xf32> to vector<256x128xf32>
    %10 = vector.broadcast %8 : vector<1x128xf32> to vector<256x128xf32>
    %11 = arith.mulf %9, %10 : vector<256x128xf32>
    %12 = vector.extract_strided_slice %5 {offsets = [0, 1], sizes = [256, 1], strides = [1, 1]} : vector<256x4xf32> to vector<256x1xf32>
    %13 = vector.extract_strided_slice %6 {offsets = [1, 0], sizes = [1, 128], strides = [1, 1]} : vector<4x128xf32> to vector<1x128xf32>
    %14 = vector.broadcast %12 : vector<256x1xf32> to vector<256x128xf32>
    %15 = vector.broadcast %13 : vector<1x128xf32> to vector<256x128xf32>
    %16 = arith.mulf %14, %15 : vector<256x128xf32>
    %17 = arith.addf %11, %16 : vector<256x128xf32>
    %18 = vector.extract_strided_slice %5 {offsets = [0, 2], sizes = [256, 1], strides = [1, 1]} : vector<256x4xf32> to vector<256x1xf32>
    %19 = vector.extract_strided_slice %6 {offsets = [2, 0], sizes = [1, 128], strides = [1, 1]} : vector<4x128xf32> to vector<1x128xf32>
    %20 = vector.broadcast %18 : vector<256x1xf32> to vector<256x128xf32>
    %21 = vector.broadcast %19 : vector<1x128xf32> to vector<256x128xf32>
    %22 = arith.mulf %20, %21 : vector<256x128xf32>
    %23 = arith.addf %17, %22 : vector<256x128xf32>
    %24 = vector.extract_strided_slice %5 {offsets = [0, 3], sizes = [256, 1], strides = [1, 1]} : vector<256x4xf32> to vector<256x1xf32>
    %25 = vector.extract_strided_slice %6 {offsets = [3, 0], sizes = [1, 128], strides = [1, 1]} : vector<4x128xf32> to vector<1x128xf32>
    %26 = vector.broadcast %24 : vector<256x1xf32> to vector<256x128xf32>
    %27 = vector.broadcast %25 : vector<1x128xf32> to vector<256x128xf32>
    %28 = arith.mulf %26, %27 : vector<256x128xf32>
    %29 = arith.addf %23, %28 : vector<256x128xf32>
    %c0_5 = arith.constant 0 : index
    %c0_6 = arith.constant 0 : index
    %30 = vector.load %arg4[%c0_5, %c0_6] : memref<1x128xf32, #tpu.memory_space<vmem>>, vector<1x128xf32>
    %31 = vector.broadcast %30 : vector<1x128xf32> to vector<256x128xf32>
    %32 = arith.addf %29, %31 : vector<256x128xf32>
    %cst = arith.constant 0.000000e+00 : f32
    %33 = vector.broadcast %cst : f32 to vector<256x128xf32>
    %34 = arith.maximumf %32, %33 : vector<256x128xf32>
    %35 = arith.truncf %34 : vector<256x128xf32> to vector<256x128xbf16>
    %c0_7 = arith.constant 0 : index
    %c0_8 = arith.constant 0 : index
    %36 = vector.load %arg5[%c0_7, %c0_8] : memref<128x256xbf16, #tpu.memory_space<vmem>>, vector<128x256xbf16>
    %cst_9 = arith.constant dense<0.000000e+00> : vector<256x256xf32>
    %37 = tpu.matmul %35, %36, %cst_9 {dimension_numbers = #tpu.dot_dimension_numbers<[1], [0], [0], [1], [0, 0, 1, 1], [], []>} : vector<256x128xbf16>, vector<128x256xbf16>, vector<256x256xf32> -> vector<256x256xf32>
    %c0_10 = arith.constant 0 : index
    %c0_11 = arith.constant 0 : index
    %38 = vector.load %arg6[%c0_10, %c0_11] : memref<1x256xf32, #tpu.memory_space<vmem>>, vector<1x256xf32>
    %39 = vector.broadcast %38 : vector<1x256xf32> to vector<256x256xf32>
    %40 = arith.addf %37, %39 : vector<256x256xf32>
    %cst_12 = arith.constant 0.000000e+00 : f32
    %41 = vector.broadcast %cst_12 : f32 to vector<256x256xf32>
    %42 = arith.maximumf %40, %41 : vector<256x256xf32>
    %43 = arith.truncf %42 : vector<256x256xf32> to vector<256x256xbf16>
    %c0_13 = arith.constant 0 : index
    %c0_14 = arith.constant 0 : index
    %44 = vector.load %arg7[%c0_13, %c0_14] : memref<256x512xbf16, #tpu.memory_space<vmem>>, vector<256x512xbf16>
    %cst_15 = arith.constant dense<0.000000e+00> : vector<256x512xf32>
    %45 = tpu.matmul %43, %44, %cst_15 {dimension_numbers = #tpu.dot_dimension_numbers<[1], [0], [0], [1], [0, 0, 1, 1], [], []>} : vector<256x256xbf16>, vector<256x512xbf16>, vector<256x512xf32> -> vector<256x512xf32>
    %c0_16 = arith.constant 0 : index
    %c0_17 = arith.constant 0 : index
    %46 = vector.load %arg8[%c0_16, %c0_17] : memref<1x512xf32, #tpu.memory_space<vmem>>, vector<1x512xf32>
    %47 = vector.broadcast %46 : vector<1x512xf32> to vector<256x512xf32>
    %48 = arith.addf %45, %47 : vector<256x512xf32>
    %cst_18 = arith.constant 0.000000e+00 : f32
    %49 = vector.broadcast %cst_18 : f32 to vector<256x512xf32>
    %50 = arith.maximumf %48, %49 : vector<256x512xf32>
    %51 = vector.shape_cast %50 : vector<256x512xf32> to vector<2x128x512xf32>
    %cst_19 = arith.constant dense<0xFF800000> : vector<2x512xf32>
    %52 = vector.multi_reduction <maximumf>, %51, %cst_19 [1] : vector<2x128x512xf32> to vector<2x512xf32>
    %c0_20 = arith.constant 0 : index
    %c0_21 = arith.constant 0 : index
    %53 = vector.load %arg16[%c0_20, %c0_21] : memref<2x512xf32, #tpu.memory_space<vmem>>, vector<2x512xf32>
    %54 = arith.maximumf %53, %52 : vector<2x512xf32>
    %c0_22 = arith.constant 0 : index
    %c0_23 = arith.constant 0 : index
    %55 = vector.load %arg16[%c0_22, %c0_23] : memref<2x512xf32, #tpu.memory_space<vmem>>, vector<2x512xf32>
    tpu.vector_store %arg16[%c0_22, %c0_23], %54 {strides = array<i32>} : memref<2x512xf32, #tpu.memory_space<vmem>>, vector<2x512xf32>,
    %c0_i32_24 = arith.constant 0 : i32
    %56 = arith.cmpi eq, %arg1, %c0_i32_24 : i32
    %57 = arith.extui %56 : i1 to i32
    %c0_i32_25 = arith.constant 0 : i32
    %58 = arith.cmpi ne, %57, %c0_i32_25 : i32
    scf.if %58 {
      %c0_26 = arith.constant 0 : index
      %c0_27 = arith.constant 0 : index
      %59 = vector.load %arg16[%c0_26, %c0_27] : memref<2x512xf32, #tpu.memory_space<vmem>>, vector<2x512xf32>
      %60 = arith.truncf %59 : vector<2x512xf32> to vector<2x512xbf16>
      %c0_28 = arith.constant 0 : index
      %c0_29 = arith.constant 0 : index
      %61 = vector.load %arg9[%c0_28, %c0_29] : memref<512x512xbf16, #tpu.memory_space<vmem>>, vector<512x512xbf16>
      %cst_30 = arith.constant dense<0.000000e+00> : vector<2x512xf32>
      %62 = tpu.matmul %60, %61, %cst_30 {dimension_numbers = #tpu.dot_dimension_numbers<[1], [0], [0], [1], [0, 0, 1, 1], [], []>} : vector<2x512xbf16>, vector<512x512xbf16>, vector<2x512xf32> -> vector<2x512xf32>
      %c0_31 = arith.constant 0 : index
      %c0_32 = arith.constant 0 : index
      %63 = vector.load %arg10[%c0_31, %c0_32] : memref<1x512xf32, #tpu.memory_space<vmem>>, vector<1x512xf32>
      %64 = vector.broadcast %63 : vector<1x512xf32> to vector<2x512xf32>
      %65 = arith.addf %62, %64 : vector<2x512xf32>
      %cst_33 = arith.constant 0.000000e+00 : f32
      %66 = vector.broadcast %cst_33 : f32 to vector<2x512xf32>
      %67 = arith.maximumf %65, %66 : vector<2x512xf32>
      %68 = arith.truncf %67 : vector<2x512xf32> to vector<2x512xbf16>
      %c0_34 = arith.constant 0 : index
      %c0_35 = arith.constant 0 : index
      %69 = vector.load %arg11[%c0_34, %c0_35] : memref<512x256xbf16, #tpu.memory_space<vmem>>, vector<512x256xbf16>
      %cst_36 = arith.constant dense<0.000000e+00> : vector<2x256xf32>
      %70 = tpu.matmul %68, %69, %cst_36 {dimension_numbers = #tpu.dot_dimension_numbers<[1], [0], [0], [1], [0, 0, 1, 1], [], []>} : vector<2x512xbf16>, vector<512x256xbf16>, vector<2x256xf32> -> vector<2x256xf32>
      %c0_37 = arith.constant 0 : index
      %c0_38 = arith.constant 0 : index
      %71 = vector.load %arg12[%c0_37, %c0_38] : memref<1x256xf32, #tpu.memory_space<vmem>>, vector<1x256xf32>
      %72 = vector.broadcast %71 : vector<1x256xf32> to vector<2x256xf32>
      %73 = arith.addf %70, %72 : vector<2x256xf32>
      %cst_39 = arith.constant 0.000000e+00 : f32
      %74 = vector.broadcast %cst_39 : f32 to vector<2x256xf32>
      %75 = arith.maximumf %73, %74 : vector<2x256xf32>
      %76 = arith.truncf %75 : vector<2x256xf32> to vector<2x256xbf16>
      %c0_40 = arith.constant 0 : index
      %c0_41 = arith.constant 0 : index
      %77 = vector.load %arg13[%c0_40, %c0_41] : memref<256x128xbf16, #tpu.memory_space<vmem>>, vector<256x128xbf16>
      %cst_42 = arith.constant dense<0.000000e+00> : vector<2x128xf32>
      %78 = tpu.matmul %76, %77, %cst_42 {dimension_numbers = #tpu.dot_dimension_numbers<[1], [0], [0], [1], [0, 0, 1, 1], [], []>} : vector<2x256xbf16>, vector<256x128xbf16>, vector<2x128xf32> -> vector<2x128xf32>
      %c0_43 = arith.constant 0 : index
      %c0_44 = arith.constant 0 : index
      %79 = vector.load %arg14[%c0_43, %c0_44] : memref<1x128xf32, #tpu.memory_space<vmem>>, vector<1x128xf32>
      %80 = vector.broadcast %79 : vector<1x128xf32> to vector<2x128xf32>
      %81 = arith.addf %78, %80 : vector<2x128xf32>
      %c0_45 = arith.constant 0 : index
      %c0_46 = arith.constant 0 : index
      %c0_47 = arith.constant 0 : index
      %82 = vector.load %arg15[%c0_45, %c0_46, %c0_47] : memref<2x1x128xf32, #tpu.memory_space<vmem>>, vector<2x1x128xf32>
      %83 = vector.shape_cast %82 : vector<2x1x128xf32> to vector<2x128xf32>
      %84 = vector.shape_cast %81 : vector<2x128xf32> to vector<2x1x128xf32>
      tpu.vector_store %arg15[%c0_45, %c0_46, %c0_47], %84 {strides = array<i32>} : memref<2x1x128xf32, #tpu.memory_space<vmem>>, vector<2x1x128xf32>,
    } else {
    }
    return
  }
  func.func @transform_0(%arg0: i32, %arg1: i32) -> (i32, i32, i32) {
    %c0_i32 = arith.constant 0 : i32
    %c0_i32_0 = arith.constant 0 : i32
    return %arg0, %arg1, %c0_i32 : i32, i32, i32
  }
  func.func @transform_1(%arg0: i32, %arg1: i32) -> (i32, i32) {
    %c0_i32 = arith.constant 0 : i32
    %c0_i32_0 = arith.constant 0 : i32
    %c0_i32_1 = arith.constant 0 : i32
    return %c0_i32, %c0_i32_0 : i32, i32
  }
  func.func @transform_2(%arg0: i32, %arg1: i32) -> (i32, i32) {
    %c0_i32 = arith.constant 0 : i32
    %c0_i32_0 = arith.constant 0 : i32
    %c0_i32_1 = arith.constant 0 : i32
    return %c0_i32, %c0_i32_0 : i32, i32
  }
  func.func @transform_3(%arg0: i32, %arg1: i32) -> (i32, i32) {
    %c0_i32 = arith.constant 0 : i32
    %c0_i32_0 = arith.constant 0 : i32
    %c0_i32_1 = arith.constant 0 : i32
    return %c0_i32, %c0_i32_0 : i32, i32
  }
  func.func @transform_4(%arg0: i32, %arg1: i32) -> (i32, i32) {
    %c0_i32 = arith.constant 0 : i32
    %c0_i32_0 = arith.constant 0 : i32
    %c0_i32_1 = arith.constant 0 : i32
    return %c0_i32, %c0_i32_0 : i32, i32
  }
  func.func @transform_5(%arg0: i32, %arg1: i32) -> (i32, i32) {
    %c0_i32 = arith.constant 0 : i32
    %c0_i32_0 = arith.constant 0 : i32
    %c0_i32_1 = arith.constant 0 : i32
    return %c0_i32, %c0_i32_0 : i32, i32
  }
  func.func @transform_6(%arg0: i32, %arg1: i32) -> (i32, i32) {
    %c0_i32 = arith.constant 0 : i32
    %c0_i32_0 = arith.constant 0 : i32
    %c0_i32_1 = arith.constant 0 : i32
    return %c0_i32, %c0_i32_0 : i32, i32
  }
  func.func @transform_7(%arg0: i32, %arg1: i32) -> (i32, i32) {
    %c0_i32 = arith.constant 0 : i32
    %c0_i32_0 = arith.constant 0 : i32
    %c0_i32_1 = arith.constant 0 : i32
    return %c0_i32, %c0_i32_0 : i32, i32
  }
  func.func @transform_8(%arg0: i32, %arg1: i32) -> (i32, i32) {
    %c0_i32 = arith.constant 0 : i32
    %c0_i32_0 = arith.constant 0 : i32
    %c0_i32_1 = arith.constant 0 : i32
    return %c0_i32, %c0_i32_0 : i32, i32
  }
  func.func @transform_9(%arg0: i32, %arg1: i32) -> (i32, i32) {
    %c0_i32 = arith.constant 0 : i32
    %c0_i32_0 = arith.constant 0 : i32
    %c0_i32_1 = arith.constant 0 : i32
    return %c0_i32, %c0_i32_0 : i32, i32
  }
  func.func @transform_10(%arg0: i32, %arg1: i32) -> (i32, i32) {
    %c0_i32 = arith.constant 0 : i32
    %c0_i32_0 = arith.constant 0 : i32
    %c0_i32_1 = arith.constant 0 : i32
    return %c0_i32, %c0_i32_0 : i32, i32
  }
  func.func @transform_11(%arg0: i32, %arg1: i32) -> (i32, i32) {
    %c0_i32 = arith.constant 0 : i32
    %c0_i32_0 = arith.constant 0 : i32
    %c0_i32_1 = arith.constant 0 : i32
    return %c0_i32, %c0_i32_0 : i32, i32
  }
  func.func @transform_12(%arg0: i32, %arg1: i32) -> (i32, i32) {
    %c0_i32 = arith.constant 0 : i32
    %c0_i32_0 = arith.constant 0 : i32
    %c0_i32_1 = arith.constant 0 : i32
    return %c0_i32, %c0_i32_0 : i32, i32
  }
  func.func @transform_13(%arg0: i32, %arg1: i32) -> (i32, i32, i32) {
    %c0_i32 = arith.constant 0 : i32
    %c0_i32_0 = arith.constant 0 : i32
    %c0_i32_1 = arith.constant 0 : i32
    return %arg0, %c0_i32, %c0_i32_0 : i32, i32, i32
  }
}

</mosaic_0001>

<bundles_post_ra>
// kernel: box_estimation_net_3d.1
= control target key start
LH: loop header
LB: loop body
LE: loop exit
PB: predicated region body
PF: predicated region fallthrough
CT: control target
= control target key end

     0   :  { %v6420_v2 = vmov 2   ;;  %v6421_v3 = vmov 0   ;;  %s9080_s0 = inlined_call_operand.vmem [shape: bf16[2,128,4], index: 0, kind: input, shape index: {}]   ;;  %s9081_s1 = inlined_call_operand.vmem [shape: f32[4,128], index: 1, kind: input, shape index: {}]   ;;  %s9082_s2 = inlined_call_operand.vmem [shape: f32[1,128], index: 2, kind: input, shape index: {}]   ;;  %s9083_s3 = inlined_call_operand.vmem [shape: bf16[128,256], index: 3, kind: input, shape index: {}]   ;;  %s9084_s4 = inlined_call_operand.vmem [shape: f32[1,256], index: 4, kind: input, shape index: {}]   ;;  %s9085_s5 = inlined_call_operand.vmem [shape: bf16[256,512], index: 5, kind: input, shape index: {}]   ;;  %s9086_s6 = inlined_call_operand.vmem [shape: f32[1,512], index: 6, kind: input, shape index: {}]   ;;  %s9087_s7 = inlined_call_operand.vmem [shape: bf16[512,512], index: 7, kind: input, shape index: {}]   ;;  %s9088_s8 = inlined_call_operand.vmem [shape: f32[1,512], index: 8, kind: input, shape index: {}]   ;;  %s9089_s9 = inlined_call_operand.vmem [shape: bf16[512,256], index: 9, kind: input, shape index: {}]   ;;  %s9090_s10 = inlined_call_operand.vmem [shape: f32[1,256], index: 10, kind: input, shape index: {}]   ;;  %s9091_s11 = inlined_call_operand.vmem [shape: bf16[256,128], index: 11, kind: input, shape index: {}]   ;;  %s9092_s12 = inlined_call_operand.vmem [shape: f32[1,128], index: 12, kind: input, shape index: {}]   ;;  %s9093_s13 = inlined_call_operand.hbm [shape: f32[2,1,128], index: 13, kind: output, shape index: {}]  }
   0x1   :  { %v5921_v0 = vld [vmem:[%s9080_s0] sm:$0xff]   ;;  %v5984_v1 = vld [vmem:[%s9080_s0 + $0x8] sm:$0xff]   ;;  %6018 = vset.pattern.permute.xlu1 %v6420_v2  ;;  %6006 = vset.pattern.permute.xlu0 %v6421_v3 }
   0x2   :  { %v5922_v4 = vunpack.c.l.bf16 %v5921_v0  ;;  %v5923_v5 = vunpack.c.h.bf16 %v5921_v0  ;;  %v5926_v6 = vunpack.c.l.bf16 %v5984_v1  ;;  %v5927_v7 = vunpack.c.h.bf16 %v5984_v1  ;;  %6030 = vset.pattern.permute.xlu2 %v6421_v3 }
   0x3   :  { %18 = vsyncpa [#allocation4], 0  ;;  %v6422_v10 = vmov 3   ;;  %v6423_v11 = vmov 1   ;;  %v5985_v12 = vld [vmem:[%s9080_s0 + $0x10] sm:$0xff]   ;;  %v5986_v16 = vld [vmem:[%s9080_s0 + $0x18] sm:$0xff]  }
   0x4   :  { %v6019_v8 = vpack.i.bf16 %v5923_v5, %v5922_v4  ;;  %v6031_v9 = vpack.i.bf16 %v5927_v7, %v5926_v6  ;;  %v5930_v13 = vunpack.c.l.bf16 %v5985_v12  ;;  %v5931_v14 = vunpack.c.h.bf16 %v5985_v12  ;;  %v5987_v20 = vld [vmem:[%s9080_s0 + $0x20] sm:$0xff]   ;;  %v5988_v24 = vld [vmem:[%s9080_s0 + $0x28] sm:$0xff]   ;;  %v4538_v28 = vld [vmem:[%s9083_s3 + $0x70] sm:$0xf]  ;;  %s6425_s24 = smov 16  }
   0x5   :  { %v5934_v17 = vunpack.c.l.bf16 %v5986_v16  ;;  %v5935_v18 = vunpack.c.h.bf16 %v5986_v16  ;;  %v5938_v21 = vunpack.c.l.bf16 %v5987_v20  ;;  %v5939_v22 = vunpack.c.h.bf16 %v5987_v20  ;;  %v5647_v29 = vld [vmem:[%s9083_s3 + $0x74] sm:$0xf0]  ;;  %v5646_v30 = vld [vmem:[%s9083_s3 + $0x74] sm:$0xf]  ;;  %v4540_v32 = vld [vmem:[%s9083_s3 + $0x78] sm:$0xf0] }
   0x6   :  { %6020 = vperm.xlu1 %6018, %v6019_v8   ;;  %6008 = vperm.xlu0 %6006, %v6019_v8   ;;  %v6055_v15 = vpack.i.bf16 %v5931_v14, %v5930_v13  ;;  %v5942_v25 = vunpack.c.l.bf16 %v5988_v24  ;;  %v5943_v26 = vunpack.c.h.bf16 %v5988_v24  ;;  %v4539_v31 = vor.u32 %v5647_v29, %v4538_v28  ;;  %v4530_v34 = vld [vmem:[%s9083_s3 + $0x60] sm:$0xf]  ;;  %v5645_v35 = vld [vmem:[%s9083_s3 + $0x64] sm:$0xf0]  ;;  %v5644_v36 = vld [vmem:[%s9083_s3 + $0x64] sm:$0xf] }
   0x7   :  { %6032 = vperm.xlu2 %6030, %v6031_v9   ;;  %v6085_v19 = vpack.i.bf16 %v5935_v18, %v5934_v17  ;;  %v6115_v23 = vpack.i.bf16 %v5939_v22, %v5938_v21  ;;  %v4543_v33 = vor.u32 %v5646_v30, %v4540_v32  ;;  %v4531_v37 = vor.u32 %v5645_v35, %v4530_v34  ;;  %v4532_v38 = vld [vmem:[%s9083_s3 + $0x68] sm:$0xf0]  ;;  %v5989_v40 = vld [vmem:[%s9080_s0 + $0x30] sm:$0xff]   ;;  %v5990_v44 = vld [vmem:[%s9080_s0 + $0x38] sm:$0xff]  }
   0x8   :  { %v6145_v27 = vpack.i.bf16 %v5943_v26, %v5942_v25  ;;  %1073 = vmatpush.bf16.msra.mxu0 %v4539_v31  ;;  %v4535_v39 = vor.u32 %v5644_v36, %v4532_v38  ;;  %v5946_v41 = vunpack.c.l.bf16 %v5989_v40  ;;  %v5947_v42 = vunpack.c.h.bf16 %v5989_v40  ;;  %v4522_v48 = vld [vmem:[%s9083_s3 + $0x50] sm:$0xf]  ;;  %v5643_v49 = vld [vmem:[%s9083_s3 + $0x54] sm:$0xf0]  ;;  %v5642_v50 = vld [vmem:[%s9083_s3 + $0x54] sm:$0xf] }
   0x9   :  { %1162 = vmatpush.bf16.msra.mxu1 %v4543_v33  ;;  %v5950_v45 = vunpack.c.l.bf16 %v5990_v44  ;;  %v5951_v46 = vunpack.c.h.bf16 %v5990_v44  ;;  %v4523_v51 = vor.u32 %v5643_v49, %v4522_v48  ;;  %v4524_v52 = vld [vmem:[%s9083_s3 + $0x58] sm:$0xf0]  ;;  %v4514_v54 = vld [vmem:[%s9083_s3 + $0x40] sm:$0xf]  ;;  %v5641_v55 = vld [vmem:[%s9083_s3 + $0x44] sm:$0xf0] }
   0xa   :  { %v6151_v43 = vpack.i.bf16 %v5947_v42, %v5946_v41  ;;  %v4527_v53 = vor.u32 %v5642_v50, %v4524_v52  ;;  %v4515_v56 = vor.u32 %v5641_v55, %v4514_v54  ;;  %v5640_v57 = vld [vmem:[%s9083_s3 + $0x44] sm:$0xf]  ;;  %v4516_v58 = vld [vmem:[%s9083_s3 + $0x48] sm:$0xf0]  ;;  %v4506_v60 = vld [vmem:[%s9083_s3 + $0x30] sm:$0xf] }
   0xb   :  { %v6572_v47 = vpack.i.bf16 %v5951_v46, %v5950_v45  ;;  %v4519_v59 = vor.u32 %v5640_v57, %v4516_v58  ;;  %v5639_v61 = vld [vmem:[%s9083_s3 + $0x34] sm:$0xf0]  ;;  %v5638_v62 = vld [vmem:[%s9083_s3 + $0x34] sm:$0xf]  ;;  %v4508_v0 = vld [vmem:[%s9083_s3 + $0x38] sm:$0xf0] }
   0xc   :  { %1074 = vmatpush.bf16.msra.mxu0 %v4531_v37  ;;  %v4507_v63 = vor.u32 %v5639_v61, %v4506_v60  ;;  %v4511_v1 = vor.u32 %v5638_v62, %v4508_v0  ;;  %v4498_v4 = vld [vmem:[%s9083_s3 + $0x20] sm:$0xf]  ;;  %v5637_v5 = vld [vmem:[%s9083_s3 + $0x24] sm:$0xf0]  ;;  %v5636_v6 = vld [vmem:[%s9083_s3 + $0x24] sm:$0xf] }
   0xd   :  { %1163 = vmatpush.bf16.msra.mxu1 %v4535_v39  ;;  %v4499_v7 = vor.u32 %v5637_v5, %v4498_v4  ;;  %v4490_v16 = vld [vmem:[%s9083_s3 + $0x10] sm:$0xf]  ;;  %v5635_v17 = vld [vmem:[%s9083_s3 + $0x14] sm:$0xf0]  ;;  %v5634_v18 = vld [vmem:[%s9083_s3 + $0x14] sm:$0xf] }
   0xe   :  { %6024 = vset.pattern.permute.xlu1 %v6422_v10  ;;  %6012 = vset.pattern.permute.xlu0 %v6423_v11  ;;  %v4492_v20 = vld [vmem:[%s9083_s3 + $0x18] sm:$0xf0]  ;;  %v4482_v22 = vld [vmem:[%s9083_s3] sm:$0xf]  ;;  %v5632_v24 = vld [vmem:[%s9083_s3 + $0x4] sm:$0xf] }
   0xf   :  { %6026 = vperm.xlu1 %6024, %v6019_v8   ;;  %6014 = vperm.xlu0 %6012, %v6019_v8   ;;  %v4500_v8 = vld [vmem:[%s9083_s3 + $0x28] sm:$0xf0]  ;;  %v4495_v21 = vor.u32 %v5634_v18, %v4492_v20  ;;  %v114_v35 = vld [vmem:[%s9081_s1] sm:$0xf]  ;;  %vm2764_vm0 = vcmask 1041408   ;;  %vm2766_vm1 = vcmask 1045508  }
  0x10   :  { %6036 = vset.pattern.permute.xlu2 %v6423_v11  ;;  %1075 = vmatpush.bf16.msra.mxu0 %v4523_v51  ;;  %v4503_v12 = vor.u32 %v5636_v6, %v4500_v8  ;;  %v4484_v26 = vld [vmem:[%s9083_s3 + $0x8] sm:$0xf0]  ;;  %v6676_v37 = vperm.slane %v114_v35, 0  ;;  %v6678_v38 = vperm.slane %v114_v35, 2  ;;  %v6680_v39 = vperm.slane %v114_v35, 1 }
  0x11   :  { %6038 = vperm.xlu2 %6036, %v6031_v9   ;;  %1164 = vmatpush.bf16.msra.mxu1 %v4527_v53  ;;  %v5992_v28 = vld [vmem:[%s9080_s0 + $0x48] sm:$0xff]   ;;  %v5993_v53 = vld [vmem:[%s9080_s0 + $0x50] sm:$0xff]   ;;  %vm2768_vm2 = vcmask 1043456   ;;  %vm2778_vm3 = vcmask 1041409   ;;  %vm2780_vm4 = vcmask 1043459   ;;  %vm2782_vm5 = vcmask 1045509  }
  0x12   :  { %v5958_v30 = vunpack.c.l.bf16 %v5992_v28  ;;  %v5959_v31 = vunpack.c.h.bf16 %v5992_v28  ;;  %v5962_v55 = vunpack.c.l.bf16 %v5993_v53  ;;  %vm2784_vm6 = vcmask 1047559  }
  0x14   :  { %1076 = vmatpush.bf16.msra.mxu0 %v4515_v56  ;;  %v6666_v32 = vpack.i.bf16 %v5959_v31, %v5958_v30  ;;  %v5963_v56 = vunpack.c.h.bf16 %v5993_v53 }
  0x15   :  { %1165 = vmatpush.bf16.msra.mxu1 %v4519_v59 }
  0x16   :  { %v6697_v0 = vpack.i.bf16 %v5963_v56, %v5962_v55 }
  0x17   :  { %6042 = vset.pattern.permute.xlu1 %v6420_v2  ;;  %6054 = vset.pattern.permute.xlu0 %v6421_v3 }
  0x18   :  { %6044 = vperm.xlu1 %6042, %v6031_v9   ;;  %6056 = vperm.xlu0 %6054, %v6055_v15  }
  0x19   :  { %6048 = vset.pattern.permute.xlu2 %v6422_v10  ;;  %1077 = vmatpush.bf16.msra.mxu0 %v4507_v63 }
  0x1a   :  { %6050 = vperm.xlu2 %6048, %v6031_v9   ;;  %1166 = vmatpush.bf16.msra.mxu1 %v4511_v1  ;;  %v5991_v9 = vld [vmem:[%s9080_s0 + $0x40] sm:$0xff]  }
  0x1b   :  { %v5954_v13 = vunpack.c.l.bf16 %v5991_v9  ;;  %v5955_v14 = vunpack.c.h.bf16 %v5991_v9 }
  0x1d   :  { %1078 = vmatpush.bf16.msra.mxu0 %v4499_v7 }
  0x1e   :  { %1167 = vmatpush.bf16.msra.mxu1 %v4503_v12 }
  0x20   :  { %6060 = vset.pattern.permute.xlu1 %v6423_v11  ;;  %6084 = vset.pattern.permute.xlu0 %v6423_v11 }
  0x21   :  { %6062 = vperm.xlu1 %6060, %v6055_v15   ;;  %6086 = vperm.xlu0 %6084, %v6085_v19  }
  0x22   :  { %6066 = vset.pattern.permute.xlu2 %v6420_v2  ;;  %1168 = vmatpush.bf16.msra.mxu1 %v4495_v21 }
  0x23   :  { %6068 = vperm.xlu2 %6066, %v6055_v15  }
  0x29   :  { %6072 = vset.pattern.permute.xlu1 %v6422_v10  ;;  %6114 = vset.pattern.permute.xlu0 %v6420_v2 }
  0x2a   :  { %6074 = vperm.xlu1 %6072, %v6055_v15   ;;  %6116 = vperm.xlu0 %6114, %v6115_v23   ;;  %v6630_v15 = vpack.i.bf16 %v5955_v14, %v5954_v13  ;;  %v6707_v13 = vld [vmem:[%s9082_s2] ss:$0 sm:$0xff] }
  0x2b   :  { %6078 = vset.pattern.permute.xlu2 %v6421_v3 }
  0x2c   :  { %6080 = vperm.xlu2 %6078, %v6085_v19  }
  0x32   :  { %6090 = vset.pattern.permute.xlu1 %v6420_v2  ;;  %6144 = vset.pattern.permute.xlu0 %v6422_v10 }
  0x33   :  { %6092 = vperm.xlu1 %6090, %v6085_v19   ;;  %6146 = vperm.xlu0 %6144, %v6145_v27  }
  0x34   :  { %6096 = vset.pattern.permute.xlu2 %v6422_v10 }
  0x35   :  { %6098 = vperm.xlu2 %6096, %v6085_v19   ;;  %v4491_v19 = vor.u32 %v5635_v17, %v4490_v16 }
  0x37   :  { %1079 = vmatpush.bf16.msra.mxu0 %v4491_v19 }
  0x3b   :  { %6102 = vset.pattern.permute.xlu1 %v6421_v3  ;;  %6174 = vset.pattern.permute.xlu0 %v6421_v3 }
  0x3c   :  { %6104 = vperm.xlu1 %6102, %v6115_v23   ;;  %6176 = vperm.xlu0 %6174, %v6572_v47  }
  0x3d   :  { %6108 = vset.pattern.permute.xlu2 %v6423_v11 }
  0x3e   :  { %6110 = vperm.xlu2 %6108, %v6115_v23  }
  0x44   :  { %6120 = vset.pattern.permute.xlu1 %v6422_v10  ;;  %6204 = vset.pattern.permute.xlu0 %v6423_v11 }
  0x45   :  { %6122 = vperm.xlu1 %6120, %v6115_v23   ;;  %6206 = vperm.xlu0 %6204, %v6630_v15   ;;  %v5633_v23 = vld [vmem:[%s9083_s3 + $0x4] sm:$0xf0]  ;;  %s4468_s3 = sshll.u32 %s9093_s13, 4  ;;  %s4469_s3 = int_to_ptr.hbm [resolvable:$true] %s4468_s3 }
  0x46   :  { %6126 = vset.pattern.permute.xlu2 %v6421_v3  ;;  %v4483_v25 = vor.u32 %v5633_v23, %v4482_v22 }
  0x47   :  { %6128 = vperm.xlu2 %6126, %v6145_v27  }
  0x48   :  { %1080 = vmatpush.bf16.msra.mxu0 %v4483_v25 }
  0x4d   :  { %6132 = vset.pattern.permute.xlu1 %v6423_v11  ;;  %6234 = vset.pattern.permute.xlu0 %v6420_v2 }
  0x4e   :  { %6134 = vperm.xlu1 %6132, %v6145_v27   ;;  %6236 = vperm.xlu0 %6234, %v6666_v32  }
  0x4f   :  { %6138 = vset.pattern.permute.xlu2 %v6420_v2 }
  0x50   :  { %6140 = vperm.xlu2 %6138, %v6145_v27   ;;  %v4487_v27 = vor.u32 %v5632_v24, %v4484_v26 }
  0x52   :  { %1169 = vmatpush.bf16.msra.mxu1 %v4487_v27 }
  0x56   :  { %6150 = vset.pattern.permute.xlu1 %v6421_v3  ;;  %6264 = vset.pattern.permute.xlu0 %v6422_v10 }
  0x57   :  { %6152 = vperm.xlu1 %6150, %v6151_v43   ;;  %6266 = vperm.xlu0 %6264, %v6697_v0  }
  0x58   :  { %6156 = vset.pattern.permute.xlu2 %v6423_v11 }
  0x59   :  { %6158 = vperm.xlu2 %6156, %v6151_v43  }
  0x5f   :  { %6162 = vset.pattern.permute.xlu1 %v6420_v2  ;;  %6294 = vset.pattern.permute.xlu0 %v6421_v3 }
  0x60   :  { %6164 = vperm.xlu1 %6162, %v6151_v43  }
  0x61   :  { %6168 = vset.pattern.permute.xlu2 %v6422_v10  ;;  %v6033_v29 = vpop.permute.xlu2 %6032 }
  0x62   :  { %6170 = vperm.xlu2 %6168, %v6151_v43   ;;  %v6035_v42 = vunpack.i.h.bf16 %v6033_v29  ;;  %v6034_v45 = vunpack.i.l.bf16 %v6033_v29 }
  0x64   :  { %v279_v8 = vmul.f32 %v6035_v42, %v6676_v37  ;;  %v278_v14 = vmul.f32 %v6034_v45, %v6676_v37 }
  0x68   :  { %6180 = vset.pattern.permute.xlu1 %v6423_v11 }
  0x69   :  { %6182 = vperm.xlu1 %6180, %v6572_v47  }
  0x6a   :  { %6186 = vset.pattern.permute.xlu2 %v6420_v2 }
  0x6b   :  { %6188 = vperm.xlu2 %6186, %v6572_v47   ;;  %v6039_v36 = vpop.permute.xlu2 %6038 }
  0x6c   :  { %v6041_v54 = vunpack.i.h.bf16 %v6039_v36  ;;  %v6040_v63 = vunpack.i.l.bf16 %v6039_v36 }
  0x6e   :  { %v440_v16 = vmul.f32 %v6041_v54, %v6680_v39  ;;  %v439_v17 = vmul.f32 %v6040_v63, %v6680_v39 }
  0x70   :  { %v471_v26 = vadd.f32 %v439_v17, %v278_v14  ;;  %v472_v27 = vadd.f32 %v440_v16, %v279_v8 }
  0x71   :  { %6192 = vset.pattern.permute.xlu1 %v6422_v10 }
  0x72   :  { %6194 = vperm.xlu1 %6192, %v6572_v47   ;;  %v6683_v47 = vperm.slane %v114_v35, 3 }
  0x73   :  { %6198 = vset.pattern.permute.xlu2 %v6421_v3 }
  0x74   :  { %6200 = vperm.xlu2 %6198, %v6630_v15   ;;  %v6051_v7 = vpop.permute.xlu2 %6050 }
  0x75   :  { %v6053_v20 = vunpack.i.h.bf16 %v6051_v7  ;;  %v6052_v23 = vunpack.i.l.bf16 %v6051_v7 }
  0x77   :  { %v826_v30 = vmul.f32 %v6053_v20, %v6683_v47  ;;  %v825_v36 = vmul.f32 %v6052_v23, %v6683_v47  ;;  %v5995_v20 = vld [vmem:[%s9080_s0 + $0x60] sm:$0xff]  }
  0x78   :  { %v6009_v33 = vpop.permute.xlu0 %6008  ;;  %v6021_v34 = vpop.permute.xlu1 %6020 }
  0x79   :  { %v6011_v40 = vunpack.i.h.bf16 %v6009_v33  ;;  %v6010_v41 = vunpack.i.l.bf16 %v6009_v33  ;;  %v6023_v43 = vunpack.i.h.bf16 %v6021_v34  ;;  %v6022_v44 = vunpack.i.l.bf16 %v6021_v34 }
  0x7a   :  { %6210 = vset.pattern.permute.xlu1 %v6420_v2 }
  0x7b   :  { %6212 = vperm.xlu1 %6210, %v6630_v15   ;;  %v277_v57 = vmul.f32 %v6011_v40, %v6676_v37  ;;  %v276_v58 = vmul.f32 %v6010_v41, %v6676_v37  ;;  %v631_v61 = vmul.f32 %v6023_v43, %v6678_v38  ;;  %v630_v62 = vmul.f32 %v6022_v44, %v6678_v38 }
  0x7c   :  { %6216 = vset.pattern.permute.xlu2 %v6422_v10 }
  0x7d   :  { %6218 = vperm.xlu2 %6216, %v6630_v15  }
  0x81   :  { %v6015_v46 = vpop.permute.xlu0 %6014  ;;  %v6027_v48 = vpop.permute.xlu1 %6026 }
  0x82   :  { %v6017_v49 = vunpack.i.h.bf16 %v6015_v46  ;;  %v6016_v50 = vunpack.i.l.bf16 %v6015_v46  ;;  %v6029_v51 = vunpack.i.h.bf16 %v6027_v48  ;;  %v6028_v52 = vunpack.i.l.bf16 %v6027_v48  ;;  %v6069_v46 = vpop.permute.xlu2 %6068 }
  0x83   :  { %6222 = vset.pattern.permute.xlu1 %v6421_v3 }
  0x84   :  { %v438_v59 = vmul.f32 %v6017_v49, %v6680_v39  ;;  %v437_v60 = vmul.f32 %v6016_v50, %v6680_v39  ;;  %6224 = vperm.xlu1 %6222, %v6666_v32   ;;  %v824_v5 = vmul.f32 %v6029_v51, %v6683_v47  ;;  %v823_v6 = vmul.f32 %v6028_v52, %v6683_v47  ;;  %v5994_v51 = vld [vmem:[%s9080_s0 + $0x58] sm:$0xff]  }
  0x85   :  { %6228 = vset.pattern.permute.xlu2 %v6423_v11  ;;  %v6070_v52 = vunpack.i.l.bf16 %v6069_v46  ;;  %v5966_v55 = vunpack.c.l.bf16 %v5994_v51  ;;  %v5967_v56 = vunpack.c.h.bf16 %v5994_v51 }
  0x86   :  { %v469_v1 = vadd.f32 %v437_v60, %v276_v58  ;;  %v470_v4 = vadd.f32 %v438_v59, %v277_v57  ;;  %6230 = vperm.xlu2 %6228, %v6666_v32  }
  0x87   :  { %v6736_v63 = vpack.i.bf16 %v5967_v56, %v5966_v55 }
  0x88   :  { %v662_v9 = vadd.f32 %v630_v62, %v469_v1  ;;  %v663_v12 = vadd.f32 %v631_v61, %v470_v4 }
  0x8a   :  { %v855_v18 = vadd.f32 %v823_v6, %v662_v9  ;;  %v856_v15 = vadd.f32 %v824_v5, %v663_v12  ;;  %v6045_v19 = vpop.permute.xlu1 %6044  ;;  %v6057_v41 = vpop.permute.xlu0 %6056  ;;  %v634_v6 = vmul.f32 %v6070_v52, %v6678_v38 }
  0x8b   :  { %v6047_v21 = vunpack.i.h.bf16 %v6045_v19  ;;  %v6046_v22 = vunpack.i.l.bf16 %v6045_v19  ;;  %v6059_v45 = vunpack.i.h.bf16 %v6057_v41  ;;  %v6058_v50 = vunpack.i.l.bf16 %v6057_v41  ;;  %v6081_v12 = vpop.permute.xlu2 %6080 }
  0x8c   :  { %v891_v24 = vadd.f32 %v6707_v13, %v855_v18  ;;  %v892_v25 = vadd.f32 %v6707_v13, %v856_v15  ;;  %6240 = vset.pattern.permute.xlu1 %v6422_v10 }
  0x8d   :  { %v633_v28 = vmul.f32 %v6047_v21, %v6678_v38  ;;  %v632_v29 = vmul.f32 %v6046_v22, %v6678_v38  ;;  %6242 = vperm.xlu1 %6240, %v6666_v32   ;;  %v6071_v32 = vunpack.i.h.bf16 %v6069_v46  ;;  %v281_v59 = vmul.f32 %v6059_v45, %v6676_v37 }
  0x8e   :  { %v923_v31 = vmax.f32 %v891_v24, 0.0  ;;  %v924_v33 = vmax.f32 %v892_v25, 0.0  ;;  %6246 = vset.pattern.permute.xlu2 %v6421_v3  ;;  %v280_v60 = vmul.f32 %v6058_v50, %v6676_v37  ;;  %v6083_v21 = vunpack.i.h.bf16 %v6081_v12 }
  0x8f   :  { %v665_v34 = vadd.f32 %v633_v28, %v472_v27  ;;  %v664_v35 = vadd.f32 %v632_v29, %v471_v26  ;;  %6248 = vperm.xlu2 %6246, %v6697_v0   ;;  %v635_v5 = vmul.f32 %v6071_v32, %v6678_v38  ;;  %v6082_v22 = vunpack.i.l.bf16 %v6081_v12 }
  0x90   :  { %v955_v40 = vpack.c.bf16 %v924_v33, %v923_v31  ;;  %v5970_v27 = vunpack.c.l.bf16 %v5995_v20  ;;  %v5971_v28 = vunpack.c.h.bf16 %v5995_v20 }
  0x91   :  { %v857_v42 = vadd.f32 %v825_v36, %v664_v35  ;;  %v858_v43 = vadd.f32 %v826_v30, %v665_v34  ;;  %v283_v30 = vmul.f32 %v6083_v21, %v6676_v37  ;;  %v282_v31 = vmul.f32 %v6082_v22, %v6676_v37 }
  0x92   :  { %1081 = vmatmul.bf16.vlgmr.msra.gmra.mxu0 %v955_v40  ;;  %1170 = vmatmul.bf16.vlgmr.msra.gmra.mxu1 %v955_v40 }
  0x93   :  { %v6063_v44 = vpop.permute.xlu1 %6062  ;;  %v893_v53 = vadd.f32 %v6707_v13, %v857_v42  ;;  %v894_v54 = vadd.f32 %v6707_v13, %v858_v43  ;;  %v6087_v19 = vpop.permute.xlu0 %6086 }
  0x94   :  { %v6065_v48 = vunpack.i.h.bf16 %v6063_v44  ;;  %v6064_v49 = vunpack.i.l.bf16 %v6063_v44  ;;  %v6089_v23 = vunpack.i.h.bf16 %v6087_v19  ;;  %v6088_v24 = vunpack.i.l.bf16 %v6087_v19  ;;  %v6099_v40 = vpop.permute.xlu2 %6098 }
  0x95   :  { %6252 = vset.pattern.permute.xlu1 %v6423_v11  ;;  %v925_v61 = vmax.f32 %v893_v53, 0.0  ;;  %v926_v62 = vmax.f32 %v894_v54, 0.0  ;;  %v6101_v43 = vunpack.i.h.bf16 %v6099_v40  ;;  %v6100_v44 = vunpack.i.l.bf16 %v6099_v40 }
  0x96   :  { %6254 = vperm.xlu1 %6252, %v6697_v0   ;;  %v442_v57 = vmul.f32 %v6065_v48, %v6680_v39  ;;  %v441_v58 = vmul.f32 %v6064_v49, %v6680_v39  ;;  %v444_v33 = vmul.f32 %v6089_v23, %v6680_v39  ;;  %v443_v34 = vmul.f32 %v6088_v24, %v6680_v39 }
  0x97   :  { %v956_v14 = vpack.c.bf16 %v926_v62, %v925_v61  ;;  %6258 = vset.pattern.permute.xlu2 %v6420_v2  ;;  %v830_v54 = vmul.f32 %v6101_v43, %v6683_v47  ;;  %v829_v55 = vmul.f32 %v6100_v44, %v6683_v47  ;;  %v4660_v61 = vld [vmem:[%s9085_s5 + $0xf0] sm:$0xf0]  ;;  %v5708_v62 = vld [vmem:[%s9085_s5 + $0x1e4] sm:$0xf] }
  0x98   :  { %v474_v1 = vadd.f32 %v442_v57, %v281_v59  ;;  %v473_v4 = vadd.f32 %v441_v58, %v280_v60  ;;  %6260 = vperm.xlu2 %6258, %v6697_v0   ;;  %v6751_v0 = vpack.i.bf16 %v5971_v28, %v5970_v27  ;;  %v476_v45 = vadd.f32 %v444_v33, %v283_v30  ;;  %v5676_v60 = vld [vmem:[%s9085_s5 + $0xe4] sm:$0xf] }
  0x99   :  { %v475_v46 = vadd.f32 %v443_v34, %v282_v31 }
  0x9a   :  { %v666_v16 = vadd.f32 %v634_v6, %v473_v4  ;;  %v667_v17 = vadd.f32 %v635_v5, %v474_v1  ;;  %6296 = vperm.xlu0 %6294, %v6751_v0   ;;  %v4663_v6 = vor.u32 %v5676_v60, %v4660_v61 }
  0x9c   :  { %v6075_v7 = vpop.permute.xlu1 %6074  ;;  %v6111_v56 = vpop.permute.xlu2 %6110  ;;  %1919 = vmatpush.bf16.msrb.mxu0 %v4663_v6 }
  0x9d   :  { %v6077_v8 = vunpack.i.h.bf16 %v6075_v7  ;;  %v6076_v9 = vunpack.i.l.bf16 %v6075_v7  ;;  %v6113_v58 = vunpack.i.h.bf16 %v6111_v56  ;;  %v6112_v59 = vunpack.i.l.bf16 %v6111_v56  ;;  %v4788_v7 = vld [vmem:[%s9085_s5 + $0x1f0] sm:$0xf0]  ;;  %v6117_v12 = vpop.permute.xlu0 %6116 }
  0x9e   :  { %6270 = vset.pattern.permute.xlu1 %v6421_v3  ;;  %v6119_v20 = vunpack.i.h.bf16 %v6117_v12 }
  0x9f   :  { %6272 = vperm.xlu1 %6270, %v6736_v63   ;;  %v828_v18 = vmul.f32 %v6077_v8, %v6683_v47  ;;  %v827_v15 = vmul.f32 %v6076_v9, %v6683_v47  ;;  %v5996_v8 = vld [vmem:[%s9080_s0 + $0x68] sm:$0xff]   ;;  %v445_v24 = vmul.f32 %v6112_v59, %v6680_v39 }
  0xa0   :  { %6276 = vset.pattern.permute.xlu2 %v6423_v11  ;;  %v639_v28 = vmul.f32 %v6119_v20, %v6678_v38 }
  0xa1   :  { %v859_v25 = vadd.f32 %v827_v15, %v666_v16  ;;  %v860_v26 = vadd.f32 %v828_v18, %v667_v17  ;;  %6278 = vperm.xlu2 %6276, %v6736_v63   ;;  %v5974_v16 = vunpack.c.l.bf16 %v5996_v8  ;;  %v5975_v17 = vunpack.c.h.bf16 %v5996_v8 }
  0xa2   :  { %1086 = vmatmul.bf16.gmra.mxu0 %v956_v14  ;;  %1175 = vmatmul.bf16.gmra.mxu1 %v956_v14  ;;  %v4791_v14 = vor.u32 %v5708_v62, %v4788_v7  ;;  %v446_v18 = vmul.f32 %v6113_v58, %v6680_v39 }
  0xa3   :  { %v895_v41 = vadd.f32 %v6707_v13, %v859_v25  ;;  %v896_v42 = vadd.f32 %v6707_v13, %v860_v26  ;;  %6324 = vset.pattern.permute.xlu0 %v6423_v11  ;;  %v6787_v15 = vpack.i.bf16 %v5975_v17, %v5974_v16 }
  0xa4   :  { %2008 = vmatpush.bf16.msrb.mxu1 %v4791_v14  ;;  %v6129_v26 = vpop.permute.xlu2 %6128 }
  0xa5   :  { %v6093_v29 = vpop.permute.xlu1 %6092  ;;  %v927_v50 = vmax.f32 %v895_v41, 0.0  ;;  %v928_v51 = vmax.f32 %v896_v42, 0.0  ;;  %6326 = vperm.xlu0 %6324, %v6787_v15   ;;  %v6147_v62 = vpop.permute.xlu0 %6146 }
  0xa6   :  { %v6095_v35 = vunpack.i.h.bf16 %v6093_v29  ;;  %v6094_v36 = vunpack.i.l.bf16 %v6093_v29 }
  0xa7   :  { %6282 = vset.pattern.permute.xlu1 %v6420_v2  ;;  %v957_v57 = vpack.c.bf16 %v928_v51, %v927_v50 }
  0xa8   :  { %6284 = vperm.xlu1 %6282, %v6736_v63   ;;  %v637_v48 = vmul.f32 %v6095_v35, %v6678_v38  ;;  %v636_v49 = vmul.f32 %v6094_v36, %v6678_v38 }
  0xa9   :  { %6288 = vset.pattern.permute.xlu2 %v6422_v10 }
  0xaa   :  { %v668_v52 = vadd.f32 %v636_v49, %v475_v46  ;;  %v669_v53 = vadd.f32 %v637_v48, %v476_v45  ;;  %6290 = vperm.xlu2 %6288, %v6736_v63   ;;  %v6118_v63 = vunpack.i.l.bf16 %v6117_v12  ;;  %v5997_v45 = vld [vmem:[%s9080_s0 + $0x70] sm:$0xff]   ;;  %v6131_v46 = vunpack.i.h.bf16 %v6129_v26 }
  0xab   :  { %v6130_v48 = vunpack.i.l.bf16 %v6129_v26  ;;  %v5978_v49 = vunpack.c.l.bf16 %v5997_v45  ;;  %v5979_v50 = vunpack.c.h.bf16 %v5997_v45  ;;  %v4644_v26 = vld [vmem:[%s9085_s5 + $0xd0] sm:$0xf0]  ;;  %v5710_v45 = vld [vmem:[%s9085_s5 + $0x1ec] sm:$0xf0] }
  0xac   :  { %v861_v1 = vadd.f32 %v829_v55, %v668_v52  ;;  %v862_v4 = vadd.f32 %v830_v54, %v669_v53  ;;  %v638_v33 = vmul.f32 %v6118_v63, %v6678_v38  ;;  %v6141_v54 = vpop.permute.xlu2 %6140  ;;  %v287_v56 = vmul.f32 %v6131_v46, %v6676_v37 }
  0xad   :  { %6354 = vset.pattern.permute.xlu0 %v6420_v2  ;;  %v6809_v55 = vpack.i.bf16 %v5979_v50, %v5978_v49  ;;  %v6143_v60 = vunpack.i.h.bf16 %v6141_v54  ;;  %v6142_v61 = vunpack.i.l.bf16 %v6141_v54 }
  0xae   :  { %v6105_v32 = vpop.permute.xlu1 %6104  ;;  %v897_v21 = vadd.f32 %v6707_v13, %v861_v1  ;;  %v898_v22 = vadd.f32 %v6707_v13, %v862_v4 }
  0xaf   :  { %v6107_v5 = vunpack.i.h.bf16 %v6105_v32  ;;  %v6106_v9 = vunpack.i.l.bf16 %v6105_v32  ;;  %6356 = vperm.xlu0 %6354, %v6809_v55   ;;  %v640_v12 = vmul.f32 %v6142_v61, %v6678_v38 }
  0xb0   :  { %6300 = vset.pattern.permute.xlu1 %v6423_v11  ;;  %v929_v29 = vmax.f32 %v897_v21, 0.0  ;;  %v930_v30 = vmax.f32 %v898_v22, 0.0 }
  0xb1   :  { %6302 = vperm.xlu1 %6300, %v6751_v0   ;;  %v285_v19 = vmul.f32 %v6107_v5, %v6676_v37  ;;  %v284_v23 = vmul.f32 %v6106_v9, %v6676_v37  ;;  %v6148_v5 = vunpack.i.l.bf16 %v6147_v62  ;;  %v641_v9 = vmul.f32 %v6143_v60, %v6678_v38 }
  0xb2   :  { %1091 = vmatmul.bf16.gmra.mxu0 %v957_v57  ;;  %1180 = vmatmul.bf16.gmra.mxu1 %v957_v57  ;;  %v958_v40 = vpack.c.bf16 %v930_v30, %v929_v29  ;;  %v286_v57 = vmul.f32 %v6130_v48, %v6676_v37 }
  0xb3   :  { %v478_v27 = vadd.f32 %v446_v18, %v285_v19  ;;  %v477_v31 = vadd.f32 %v445_v24, %v284_v23  ;;  %6306 = vset.pattern.permute.xlu2 %v6420_v2  ;;  %v833_v21 = vmul.f32 %v6148_v5, %v6683_v47 }
  0xb4   :  { %6308 = vperm.xlu2 %6306, %v6751_v0   ;;  %v6159_v17 = vpop.permute.xlu2 %6158 }
  0xb5   :  { %v671_v36 = vadd.f32 %v639_v28, %v478_v27  ;;  %v670_v41 = vadd.f32 %v638_v33, %v477_v31  ;;  %v6160_v23 = vunpack.i.l.bf16 %v6159_v17  ;;  %v6161_v63 = vunpack.i.h.bf16 %v6159_v17  ;;  %v5704_v27 = vld [vmem:[%s9085_s5 + $0x1c4] sm:$0xf]  ;;  %v4772_v33 = vld [vmem:[%s9085_s5 + $0x1d0] sm:$0xf0]  ;;  %v4770_v17 = vld [vmem:[%s9085_s5 + $0x1c0] sm:$0xf] }
  0xb7   :  { %v6123_v25 = vpop.permute.xlu1 %6122  ;;  %6384 = vset.pattern.permute.xlu0 %v6422_v10  ;;  %v449_v46 = vmul.f32 %v6160_v23, %v6680_v39 }
  0xb8   :  { %v6125_v34 = vunpack.i.h.bf16 %v6123_v25  ;;  %v6124_v35 = vunpack.i.l.bf16 %v6123_v25  ;;  %v5672_v25 = vld [vmem:[%s9085_s5 + $0xc4] sm:$0xf] }
  0xb9   :  { %6312 = vset.pattern.permute.xlu1 %v6422_v10  ;;  %v4647_v31 = vor.u32 %v5672_v25, %v4644_v26  ;;  %v5702_v25 = vld [vmem:[%s9085_s5 + $0x1ac] sm:$0xf0] }
  0xba   :  { %6314 = vperm.xlu1 %6312, %v6751_v0   ;;  %v832_v42 = vmul.f32 %v6125_v34, %v6683_v47  ;;  %v831_v43 = vmul.f32 %v6124_v35, %v6683_v47  ;;  %v6149_v0 = vunpack.i.h.bf16 %v6147_v62  ;;  %v5998_v34 = vld [vmem:[%s9080_s0 + $0x78] sm:$0xff]   ;;  %v4658_v35 = vld [vmem:[%s9085_s5 + $0xe0] sm:$0xf]  ;;  %s6426_s0 = smov 1  }
  0xbb   :  { %1920 = vmatpush.bf16.msrb.mxu0 %v4647_v31  ;;  %v4610_v31 = vld [vmem:[%s9085_s5 + $0x80] sm:$0xf] }
  0xbc   :  { %v863_v52 = vadd.f32 %v831_v43, %v670_v41  ;;  %v864_v53 = vadd.f32 %v832_v42, %v671_v36  ;;  %6318 = vset.pattern.permute.xlu2 %v6421_v3  ;;  %v834_v20 = vmul.f32 %v6149_v0, %v6683_v47  ;;  %v5982_v41 = vunpack.c.l.bf16 %v5998_v34  ;;  %v5678_v43 = vld [vmem:[%s9085_s5 + $0xec] sm:$0xf0] }
  0xbd   :  { %6320 = vperm.xlu2 %6318, %v6787_v15   ;;  %v5983_v42 = vunpack.c.h.bf16 %v5998_v34  ;;  %v4659_v48 = vor.u32 %v5678_v43, %v4658_v35  ;;  %v4738_v35 = vld [vmem:[%s9085_s5 + $0x180] sm:$0xf] }
  0xbe   :  { %v899_v1 = vadd.f32 %v6707_v13, %v863_v52  ;;  %v900_v4 = vadd.f32 %v6707_v13, %v864_v53  ;;  %v450_v52 = vmul.f32 %v6161_v63, %v6680_v39 }
  0xbf   :  { %v6858_v50 = vpack.i.bf16 %v5983_v42, %v5982_v41  ;;  %1741 = vmatpush.bf16.msra.mxu2 %v4659_v48 }
  0xc0   :  { %v6135_v44 = vpop.permute.xlu1 %6134  ;;  %v931_v14 = vmax.f32 %v899_v1, 0.0  ;;  %v932_v16 = vmax.f32 %v900_v4, 0.0 }
  0xc1   :  { %v6137_v51 = vunpack.i.h.bf16 %v6135_v44  ;;  %v6136_v32 = vunpack.i.l.bf16 %v6135_v44  ;;  %v4786_v44 = vld [vmem:[%s9085_s5 + $0x1e0] sm:$0xf]  ;;  %6386 = vperm.xlu0 %6384, %v6858_v50  }
  0xc2   :  { %1096 = vmatmul.bf16.gmra.mxu0 %v958_v40  ;;  %1185 = vmatmul.bf16.gmra.mxu1 %v958_v40  ;;  %v959_v22 = vpack.c.bf16 %v932_v16, %v931_v14  ;;  %v4775_v40 = vor.u32 %v5704_v27, %v4772_v33  ;;  %v4642_v14 = vld [vmem:[%s9085_s5 + $0xc0] sm:$0xf]  ;;  %v5674_v16 = vld [vmem:[%s9085_s5 + $0xcc] sm:$0xf0] }
  0xc3   :  { %6330 = vset.pattern.permute.xlu1 %v6420_v2  ;;  %v448_v58 = vmul.f32 %v6137_v51, %v6680_v39  ;;  %v447_v59 = vmul.f32 %v6136_v32, %v6680_v39  ;;  %v4787_v51 = vor.u32 %v5710_v45, %v4786_v44  ;;  %v5666_v33 = vld [vmem:[%s9085_s5 + $0x8c] sm:$0xf0] }
  0xc4   :  { %6332 = vperm.xlu1 %6330, %v6787_v15   ;;  %2009 = vmatpush.bf16.msrb.mxu1 %v4775_v40  ;;  %v4611_v48 = vor.u32 %v5666_v33, %v4610_v31 }
  0xc5   :  { %v480_v7 = vadd.f32 %v448_v58, %v287_v56  ;;  %v479_v8 = vadd.f32 %v447_v59, %v286_v57  ;;  %v6171_v56 = vpop.permute.xlu2 %6170  ;;  %6336 = vset.pattern.permute.xlu2 %v6422_v10  ;;  %1830 = vmatpush.bf16.msra.mxu3 %v4787_v51 }
  0xc6   :  { %6338 = vperm.xlu2 %6336, %v6787_v15   ;;  %v6173_v60 = vunpack.i.h.bf16 %v6171_v56  ;;  %v6172_v61 = vunpack.i.l.bf16 %v6171_v56 }
  0xc7   :  { %v672_v18 = vadd.f32 %v640_v12, %v479_v8  ;;  %v673_v19 = vadd.f32 %v641_v9, %v480_v7  ;;  %v6177_v9 = vpop.permute.xlu0 %6176 }
  0xc8   :  { %v836_v7 = vmul.f32 %v6173_v60, %v6683_v47  ;;  %v835_v15 = vmul.f32 %v6172_v61, %v6683_v47  ;;  %v6179_v27 = vunpack.i.h.bf16 %v6177_v9  ;;  %v4594_v60 = vld [vmem:[%s9085_s5 + $0x60] sm:$0xf] }
  0xc9   :  { %v6153_v6 = vpop.permute.xlu1 %6152  ;;  %v866_v28 = vadd.f32 %v834_v20, %v673_v19  ;;  %v865_v29 = vadd.f32 %v833_v21, %v672_v18  ;;  %v5706_v18 = vld [vmem:[%s9085_s5 + $0x1cc] sm:$0xf0]  ;;  %v4643_v19 = vor.u32 %v5674_v16, %v4642_v14  ;;  %v4626_v20 = vld [vmem:[%s9085_s5 + $0xa0] sm:$0xf] }
  0xca   :  { %v6154_v24 = vunpack.i.l.bf16 %v6153_v6  ;;  %v6155_v30 = vunpack.i.h.bf16 %v6153_v6  ;;  %v5670_v21 = vld [vmem:[%s9085_s5 + $0xac] sm:$0xf0]  ;;  %v4771_v63 = vor.u32 %v5706_v18, %v4770_v17  ;;  %v291_v45 = vmul.f32 %v6179_v27, %v6676_v37  ;;  %v4722_v61 = vld [vmem:[%s9085_s5 + $0x160] sm:$0xf] }
  0xcb   :  { %v901_v57 = vadd.f32 %v6707_v13, %v865_v29  ;;  %v902_v58 = vadd.f32 %v6707_v13, %v866_v28  ;;  %1742 = vmatpush.bf16.msra.mxu2 %v4643_v19  ;;  %v4627_v29 = vor.u32 %v5670_v21, %v4626_v20  ;;  %v4706_v14 = vld [vmem:[%s9085_s5 + $0x140] sm:$0xf]  ;;  %v5690_v18 = vld [vmem:[%s9085_s5 + $0x14c] sm:$0xf0]  ;;  %v5668_v21 = vld [vmem:[%s9085_s5 + $0xa4] sm:$0xf] }
  0xcc   :  { %6342 = vset.pattern.permute.xlu1 %v6421_v3  ;;  %v288_v49 = vmul.f32 %v6154_v24, %v6676_v37  ;;  %v289_v32 = vmul.f32 %v6155_v30, %v6676_v37  ;;  %1831 = vmatpush.bf16.msra.mxu3 %v4771_v63  ;;  %v4756_v63 = vld [vmem:[%s9085_s5 + $0x1b0] sm:$0xf0] }
  0xcd   :  { %6344 = vperm.xlu1 %6342, %v6809_v55   ;;  %v933_v0 = vmax.f32 %v901_v57, 0.0  ;;  %v6189_v28 = vpop.permute.xlu2 %6188 }
  0xce   :  { %v481_v59 = vadd.f32 %v449_v46, %v288_v49  ;;  %v482_v62 = vadd.f32 %v450_v52, %v289_v32  ;;  %6348 = vset.pattern.permute.xlu2 %v6423_v11  ;;  %v6190_v41 = vunpack.i.l.bf16 %v6189_v28  ;;  %v6191_v46 = vunpack.i.h.bf16 %v6189_v28 }
  0xcf   :  { %6350 = vperm.xlu2 %6348, %v6809_v55   ;;  %1743 = vmatpush.bf16.msra.mxu2 %v4627_v29  ;;  %v4562_v29 = vld [vmem:[%s9085_s5 + $0x20] sm:$0xf] }
  0xd0   :  { %v644_v52 = vmul.f32 %v6190_v41, %v6678_v38  ;;  %v645_v57 = vmul.f32 %v6191_v46, %v6678_v38  ;;  %v4546_v46 = vld [vmem:[%s9085_s5] sm:$0xf] }
  0xd2   :  { %1101 = vmatmul.bf16.gmra.mxu0 %v959_v22  ;;  %1190 = vmatmul.bf16.gmra.mxu1 %v959_v22  ;;  %v6165_v36 = vpop.permute.xlu1 %6164 }
  0xd3   :  { %v6167_v53 = vunpack.i.h.bf16 %v6165_v36  ;;  %v6166_v54 = vunpack.i.l.bf16 %v6165_v36  ;;  %v5698_v36 = vld [vmem:[%s9085_s5 + $0x18c] sm:$0xf0]  ;;  %1744 = vmatpush.bf16.msra.mxu2 %v4611_v48 }
  0xd4   :  { %v4739_v51 = vor.u32 %v5698_v36, %v4738_v35  ;;  %v5650_v48 = vld [vmem:[%s9085_s5 + $0xc] sm:$0xf0] }
  0xd5   :  { %6360 = vset.pattern.permute.xlu1 %v6422_v10  ;;  %v643_v1 = vmul.f32 %v6167_v53, %v6678_v38  ;;  %v642_v4 = vmul.f32 %v6166_v54, %v6678_v38  ;;  %v934_v10 = vmax.f32 %v902_v58, 0.0 }
  0xd6   :  { %6362 = vperm.xlu1 %6360, %v6809_v55   ;;  %v4754_v55 = vld [vmem:[%s9085_s5 + $0x1a0] sm:$0xf] }
  0xd7   :  { %v674_v5 = vadd.f32 %v642_v4, %v481_v59  ;;  %v675_v6 = vadd.f32 %v643_v1, %v482_v62  ;;  %v960_v12 = vpack.c.bf16 %v934_v10, %v933_v0  ;;  %v4755_v30 = vor.u32 %v5702_v25, %v4754_v55  ;;  %6366 = vset.pattern.permute.xlu2 %v6421_v3  ;;  %v5662_v3 = vld [vmem:[%s9085_s5 + $0x6c] sm:$0xf0]  ;;  %v6201_v1 = vpop.permute.xlu2 %6200  ;;  %v4628_v55 = vld [vmem:[%s9085_s5 + $0xb0] sm:$0xf0] }
  0xd8   :  { %6368 = vperm.xlu2 %6366, %v6858_v50   ;;  %v5694_v62 = vld [vmem:[%s9085_s5 + $0x16c] sm:$0xf0]  ;;  %v4595_v4 = vor.u32 %v5662_v3, %v4594_v60  ;;  %v6203_v16 = vunpack.i.h.bf16 %v6201_v1 }
  0xd9   :  { %v867_v22 = vadd.f32 %v835_v15, %v674_v5  ;;  %v868_v23 = vadd.f32 %v836_v7, %v675_v6  ;;  %1832 = vmatpush.bf16.msra.mxu3 %v4755_v30  ;;  %v6207_v5 = vpop.permute.xlu0 %6206  ;;  %v4723_v6 = vor.u32 %v5694_v62, %v4722_v61  ;;  %v4690_v30 = vld [vmem:[%s9085_s5 + $0x120] sm:$0xf] }
  0xda   :  { %1745 = vmatpush.bf16.msra.mxu2 %v4595_v4  ;;  %v6209_v19 = vunpack.i.h.bf16 %v6207_v5  ;;  %v6208_v20 = vunpack.i.l.bf16 %v6207_v5  ;;  %v293_v31 = vmul.f32 %v6203_v16, %v6676_v37 }
  0xdb   :  { %v6183_v8 = vpop.permute.xlu1 %6182  ;;  %v903_v42 = vadd.f32 %v6707_v13, %v867_v22  ;;  %v904_v43 = vadd.f32 %v6707_v13, %v868_v23  ;;  %v4707_v22 = vor.u32 %v5690_v18, %v4706_v14  ;;  %v5700_v23 = vld [vmem:[%s9085_s5 + $0x1a4] sm:$0xf] }
  0xdc   :  { %v6184_v24 = vunpack.i.l.bf16 %v6183_v8  ;;  %v6185_v26 = vunpack.i.h.bf16 %v6183_v8  ;;  %v4759_v28 = vor.u32 %v5700_v23, %v4756_v63  ;;  %v454_v35 = vmul.f32 %v6209_v19, %v6680_v39 }
  0xdd   :  { %v935_v53 = vmax.f32 %v903_v42, 0.0  ;;  %v936_v54 = vmax.f32 %v904_v43, 0.0  ;;  %1833 = vmatpush.bf16.msra.mxu3 %v4739_v51  ;;  %v453_v36 = vmul.f32 %v6208_v20, %v6680_v39  ;;  %v4674_v51 = vld [vmem:[%s9085_s5 + $0x100] sm:$0xf] }
  0xde   :  { %6372 = vset.pattern.permute.xlu1 %v6423_v11  ;;  %v6178_v11 = vunpack.i.l.bf16 %v6177_v9  ;;  %v451_v40 = vmul.f32 %v6184_v24, %v6680_v39  ;;  %v452_v44 = vmul.f32 %v6185_v26, %v6680_v39  ;;  %v4578_v9 = vld [vmem:[%s9085_s5 + $0x40] sm:$0xf]  ;;  %v4631_v24 = vor.u32 %v5668_v21, %v4628_v55  ;;  %2010 = vmatpush.bf16.msrb.mxu1 %v4759_v28 }
  0xdf   :  { %6374 = vperm.xlu1 %6372, %v6858_v50   ;;  %v961_v10 = vpack.c.bf16 %v936_v54, %v935_v53  ;;  %v6219_v43 = vpop.permute.xlu2 %6218 }
  0xe0   :  { %v290_v34 = vmul.f32 %v6178_v11, %v6676_v37  ;;  %v484_v56 = vadd.f32 %v452_v44, %v291_v45  ;;  %v6202_v11 = vunpack.i.l.bf16 %v6201_v1  ;;  %6378 = vset.pattern.permute.xlu2 %v6420_v2  ;;  %v5654_v2 = vld [vmem:[%s9085_s5 + $0x2c] sm:$0xf0]  ;;  %1921 = vmatpush.bf16.msrb.mxu0 %v4631_v24 }
  0xe1   :  { %1834 = vmatpush.bf16.msra.mxu3 %v4723_v6  ;;  %6380 = vperm.xlu2 %6378, %v6858_v50   ;;  %v4563_v33 = vor.u32 %v5654_v2, %v4562_v29  ;;  %v5686_v50 = vld [vmem:[%s9085_s5 + $0x12c] sm:$0xf0]  ;;  %v6237_v14 = vpop.permute.xlu0 %6236 }
  0xe2   :  { %1106 = vmatmul.bf16.gmra.mxu0 %v960_v12  ;;  %1195 = vmatmul.bf16.gmra.mxu1 %v960_v12  ;;  %v483_v32 = vadd.f32 %v451_v40, %v290_v34  ;;  %v677_v7 = vadd.f32 %v645_v57, %v484_v56  ;;  %v5658_v12 = vld [vmem:[%s9085_s5 + $0x4c] sm:$0xf0]  ;;  %v292_v34 = vmul.f32 %v6202_v11, %v6676_v37  ;;  %v6239_v16 = vunpack.i.h.bf16 %v6237_v14 }
  0xe3   :  { %v4579_v17 = vor.u32 %v5658_v12, %v4578_v9  ;;  %v4691_v40 = vor.u32 %v5686_v50, %v4690_v30  ;;  %v987_v30 = vld [vmem:[%s9084_s4] sm:$0x3] }
  0xe4   :  { %v6195_v49 = vpop.permute.xlu1 %6194  ;;  %v676_v0 = vadd.f32 %v644_v52, %v483_v32  ;;  %v5682_v32 = vld [vmem:[%s9085_s5 + $0x10c] sm:$0xf0]  ;;  %v486_v52 = vadd.f32 %v454_v35, %v293_v31  ;;  %v485_v53 = vadd.f32 %v453_v36, %v292_v34  ;;  %v649_v24 = vmul.f32 %v6239_v16, %v6678_v38 }
  0xe5   :  { %v6197_v58 = vunpack.i.h.bf16 %v6195_v49  ;;  %v6196_v59 = vunpack.i.l.bf16 %v6195_v49  ;;  %1746 = vmatpush.bf16.msra.mxu2 %v4579_v17  ;;  %1835 = vmatpush.bf16.msra.mxu3 %v4707_v22  ;;  %v4547_v49 = vor.u32 %v5650_v48, %v4546_v46  ;;  %v4675_v54 = vor.u32 %v5682_v32, %v4674_v51  ;;  %v5664_v46 = vld [vmem:[%s9085_s5 + $0x84] sm:$0xf]  ;;  %v4612_v48 = vld [vmem:[%s9085_s5 + $0x90] sm:$0xf0] }
  0xe6   :  { %v6238_v17 = vunpack.i.l.bf16 %v6237_v14  ;;  %v4615_v32 = vor.u32 %v5664_v46, %v4612_v48 }
  0xe7   :  { %v838_v15 = vmul.f32 %v6197_v58, %v6683_v47  ;;  %v837_v8 = vmul.f32 %v6196_v59, %v6683_v47  ;;  %v6221_v58 = vunpack.i.h.bf16 %v6219_v43  ;;  %v6220_v59 = vunpack.i.l.bf16 %v6219_v43  ;;  %v6231_v5 = vpop.permute.xlu2 %6230 }
  0xe8   :  { %v6233_v9 = vunpack.i.h.bf16 %v6231_v5  ;;  %v6232_v12 = vunpack.i.l.bf16 %v6231_v5  ;;  %v648_v63 = vmul.f32 %v6238_v17, %v6678_v38  ;;  %v7010_v43 = vperm.slane %v987_v30, 1  ;;  %1922 = vmatpush.bf16.msrb.mxu0 %v4615_v32 }
  0xe9   :  { %v869_v25 = vadd.f32 %v837_v8, %v676_v0  ;;  %v870_v26 = vadd.f32 %v838_v15, %v677_v7  ;;  %1747 = vmatpush.bf16.msra.mxu2 %v4563_v33  ;;  %1836 = vmatpush.bf16.msra.mxu3 %v4691_v40  ;;  %v840_v4 = vmul.f32 %v6221_v58, %v6683_v47 }
  0xea   :  { %v839_v0 = vmul.f32 %v6220_v59, %v6683_v47  ;;  %v456_v21 = vmul.f32 %v6233_v9, %v6680_v39  ;;  %v455_v55 = vmul.f32 %v6232_v12, %v6680_v39 }
  0xeb   :  { %v905_v44 = vadd.f32 %v6707_v13, %v869_v25  ;;  %v906_v45 = vadd.f32 %v6707_v13, %v870_v26 }
  0xed   :  { %v6213_v27 = vpop.permute.xlu1 %6212  ;;  %v937_v60 = vmax.f32 %v905_v44, 0.0  ;;  %v938_v3 = vmax.f32 %v906_v45, 0.0  ;;  %1748 = vmatpush.bf16.msra.mxu2 %v4547_v49  ;;  %1837 = vmatpush.bf16.msra.mxu3 %v4675_v54 }
  0xee   :  { %v6215_v41 = vunpack.i.h.bf16 %v6213_v27  ;;  %v6214_v42 = vunpack.i.l.bf16 %v6213_v27 }
  0xef   :  { %v6249_v23 = vpop.permute.xlu2 %6248 }
  0xf0   :  { %v647_v56 = vmul.f32 %v6215_v41, %v6678_v38  ;;  %v646_v57 = vmul.f32 %v6214_v42, %v6678_v38  ;;  %v7008_v42 = vperm.slane %v987_v30, 0  ;;  %v6251_v44 = vunpack.i.h.bf16 %v6249_v23 }
  0xf1   :  { %v6250_v45 = vunpack.i.l.bf16 %v6249_v23 }
  0xf2   :  { %1111 = vmatmul.bf16.gmra.mxu0 %v961_v10  ;;  %1200 = vmatmul.bf16.gmra.mxu1 %v961_v10  ;;  %v678_v62 = vadd.f32 %v646_v57, %v485_v53  ;;  %v679_v1 = vadd.f32 %v647_v56, %v486_v52  ;;  %v962_v10 = vpack.c.bf16 %v938_v3, %v937_v60  ;;  %v5696_v52 = vld [vmem:[%s9085_s5 + $0x184] sm:$0xf]  ;;  %v4740_v53 = vld [vmem:[%s9085_s5 + $0x190] sm:$0xf0] }
  0xf3   :  { %v4743_v58 = vor.u32 %v5696_v52, %v4740_v53  ;;  %v297_v3 = vmul.f32 %v6251_v44, %v6676_v37 }
  0xf4   :  { %v871_v6 = vadd.f32 %v839_v0, %v678_v62  ;;  %v872_v7 = vadd.f32 %v840_v4, %v679_v1  ;;  %v6267_v62 = vpop.permute.xlu0 %6266 }
  0xf5   :  { %2011 = vmatpush.bf16.msrb.mxu1 %v4743_v58  ;;  %v6269_v12 = vunpack.i.h.bf16 %v6267_v62  ;;  %v6268_v14 = vunpack.i.l.bf16 %v6267_v62 }
  0xf6   :  { %v6225_v61 = vpop.permute.xlu1 %6224  ;;  %v907_v18 = vadd.f32 %v6707_v13, %v871_v6  ;;  %v908_v11 = vadd.f32 %v6707_v13, %v872_v7 }
  0xf7   :  { %v6227_v15 = vunpack.i.h.bf16 %v6225_v61  ;;  %v6226_v8 = vunpack.i.l.bf16 %v6225_v61  ;;  %v6261_v57 = vpop.permute.xlu2 %6260  ;;  %v296_v61 = vmul.f32 %v6250_v45, %v6676_v37 }
  0xf8   :  { %v939_v25 = vmax.f32 %v907_v18, 0.0  ;;  %v940_v26 = vmax.f32 %v908_v11, 0.0  ;;  %v6263_v5 = vunpack.i.h.bf16 %v6261_v57  ;;  %v6262_v6 = vunpack.i.l.bf16 %v6261_v57 }
  0xf9   :  { %v295_v19 = vmul.f32 %v6227_v15, %v6676_v37  ;;  %v294_v20 = vmul.f32 %v6226_v8, %v6676_v37 }
  0xfa   :  { %v963_v50 = vpack.c.bf16 %v940_v26, %v939_v25 }
  0xfb   :  { %v487_v27 = vadd.f32 %v455_v55, %v294_v20  ;;  %v488_v28 = vadd.f32 %v456_v21, %v295_v19  ;;  %v651_v21 = vmul.f32 %v6263_v5, %v6678_v38  ;;  %v650_v55 = vmul.f32 %v6262_v6, %v6678_v38 }
  0xfd   :  { %v681_v34 = vadd.f32 %v649_v24, %v488_v28  ;;  %v680_v35 = vadd.f32 %v648_v63, %v487_v27  ;;  %v844_v28 = vmul.f32 %v6269_v12, %v6683_v47 }
  0xff   :  { %v6243_v22 = vpop.permute.xlu1 %6242 }
 0x100   :  { %v6245_v29 = vunpack.i.h.bf16 %v6243_v22  ;;  %v6244_v2 = vunpack.i.l.bf16 %v6243_v22 }
 0x102   :  { %1116 = vmatmul.bf16.gmra.mxu0 %v962_v10  ;;  %1205 = vmatmul.bf16.gmra.mxu1 %v962_v10  ;;  %v842_v36 = vmul.f32 %v6245_v29, %v6683_v47  ;;  %v841_v40 = vmul.f32 %v6244_v2, %v6683_v47  ;;  %v843_v29 = vmul.f32 %v6268_v14, %v6683_v47 }
 0x104   :  { %v873_v54 = vadd.f32 %v841_v40, %v680_v35  ;;  %v874_v56 = vadd.f32 %v842_v36, %v681_v34 }
 0x106   :  { %v909_v8 = vadd.f32 %v6707_v13, %v873_v54  ;;  %v910_v9 = vadd.f32 %v6707_v13, %v874_v56  ;;  %v6279_v13 = vpop.permute.xlu2 %6278  ;;  %v7053_v54 = vld [vmem:[%s9082_s2] ss:$0 sm:$0xff] }
 0x108   :  { %v6255_v41 = vpop.permute.xlu1 %6254  ;;  %v941_v63 = vmax.f32 %v909_v8, 0.0  ;;  %v942_v25 = vmax.f32 %v910_v9, 0.0 }
 0x109   :  { %v6257_v49 = vunpack.i.h.bf16 %v6255_v41  ;;  %v6256_v51 = vunpack.i.l.bf16 %v6255_v41 }
 0x10b   :  { %v458_v0 = vmul.f32 %v6257_v49, %v6680_v39  ;;  %v457_v10 = vmul.f32 %v6256_v51, %v6680_v39 }
 0x10d   :  { %v490_v19 = vadd.f32 %v458_v0, %v297_v3  ;;  %v489_v20 = vadd.f32 %v457_v10, %v296_v61 }
 0x10e   :  { %v6291_v49 = vpop.permute.xlu2 %6290 }
 0x10f   :  { %v1082_v31 = vpop.f32.mrf.mxu0  ;;  %v1171_v33 = vpop.f32.mrf.mxu1  ;;  %v682_v26 = vadd.f32 %v650_v55, %v489_v20  ;;  %v683_v27 = vadd.f32 %v651_v21, %v490_v19  ;;  %v6293_v61 = vunpack.i.h.bf16 %v6291_v49  ;;  %v6292_v62 = vunpack.i.l.bf16 %v6291_v49 }
 0x110   :  { %v1083_v59 = vadd.f32 %v1082_v31, %v7008_v42  ;;  %v1172_v60 = vadd.f32 %v1171_v33, %v7010_v43  ;;  %v964_v31 = vpack.c.bf16 %v942_v25, %v941_v63  ;;  %v6281_v33 = vunpack.i.h.bf16 %v6279_v13  ;;  %v5660_v25 = vld [vmem:[%s9085_s5 + $0x64] sm:$0xf] }
 0x111   :  { %v6273_v22 = vpop.permute.xlu1 %6272  ;;  %v876_v34 = vadd.f32 %v844_v28, %v683_v27  ;;  %v875_v35 = vadd.f32 %v843_v29, %v682_v26  ;;  %v845_v21 = vmul.f32 %v6292_v62, %v6683_v47 }
 0x112   :  { %1121 = vmatmul.bf16.gmra.mxu0 %v963_v50  ;;  %1210 = vmatmul.bf16.gmra.mxu1 %v963_v50  ;;  %v1251_v16 = vmax.f32 %v1083_v59, 0.0  ;;  %v1252_v17 = vmax.f32 %v1172_v60, 0.0  ;;  %v6280_v50 = vunpack.i.l.bf16 %v6279_v13  ;;  %v6275_v36 = vunpack.i.h.bf16 %v6273_v22  ;;  %v4596_v13 = vld [vmem:[%s9085_s5 + $0x70] sm:$0xf0] }
 0x113   :  { %v6274_v40 = vunpack.i.l.bf16 %v6273_v22  ;;  %v460_v46 = vmul.f32 %v6281_v33, %v6680_v39  ;;  %v911_v56 = vadd.f32 %v7053_v54, %v875_v35  ;;  %v912_v57 = vadd.f32 %v7053_v54, %v876_v34  ;;  %v6297_v22 = vpop.permute.xlu0 %6296 }
 0x114   :  { %v459_v48 = vmul.f32 %v6280_v50, %v6680_v39  ;;  %v299_v51 = vmul.f32 %v6275_v36, %v6676_v37  ;;  %v6299_v28 = vunpack.i.h.bf16 %v6297_v22  ;;  %v6298_v29 = vunpack.i.l.bf16 %v6297_v22 }
 0x115   :  { %v298_v32 = vmul.f32 %v6274_v40, %v6676_v37  ;;  %v4599_v50 = vor.u32 %v5660_v25, %v4596_v13 }
 0x116   :  { %v492_v6 = vadd.f32 %v460_v46, %v299_v51  ;;  %v6309_v63 = vpop.permute.xlu2 %6308  ;;  %v301_v49 = vmul.f32 %v6299_v28, %v6676_v37  ;;  %v300_v51 = vmul.f32 %v6298_v29, %v6676_v37 }
 0x117   :  { %v1084_v1 = vpop.f32.mrf.mxu0  ;;  %v1173_v4 = vpop.f32.mrf.mxu1  ;;  %v491_v5 = vadd.f32 %v459_v48, %v298_v32  ;;  %v6311_v35 = vunpack.i.h.bf16 %v6309_v63  ;;  %v6310_v36 = vunpack.i.l.bf16 %v6309_v63  ;;  %1923 = vmatpush.bf16.msrb.mxu0 %v4599_v50 }
 0x118   :  { %v1085_v7 = vadd.f32 %v1084_v1, %v7008_v42  ;;  %v1174_v15 = vadd.f32 %v1173_v4, %v7010_v43 }
 0x11a   :  { %v1253_v18 = vmax.f32 %v1085_v7, 0.0  ;;  %v1254_v11 = vmax.f32 %v1174_v15, 0.0  ;;  %v6285_v41 = vpop.permute.xlu1 %6284  ;;  %v943_v7 = vmax.f32 %v911_v56, 0.0  ;;  %v944_v15 = vmax.f32 %v912_v57, 0.0 }
 0x11b   :  { %v6287_v60 = vunpack.i.h.bf16 %v6285_v41  ;;  %v6286_v3 = vunpack.i.l.bf16 %v6285_v41 }
 0x11c   :  { %v7036_v23 = vpack.c.bf16 %v1253_v18, %v1251_v16  ;;  %v7038_v24 = vpack.c.bf16 %v1254_v11, %v1252_v17  ;;  %v846_v17 = vmul.f32 %v6293_v61, %v6683_v47  ;;  %v965_v55 = vpack.c.bf16 %v944_v15, %v943_v7 }
 0x11d   :  { %v653_v12 = vmul.f32 %v6287_v60, %v6678_v38  ;;  %v652_v14 = vmul.f32 %v6286_v3, %v6678_v38 }
 0x11e   :  { %1749 = vmatmul.bf16.vlgmr.msra.gmra.mxu2 %v7036_v23  ;;  %1838 = vmatmul.bf16.vlgmr.msra.gmra.mxu3 %v7038_v24 }
 0x11f   :  { %v1087_v2 = vpop.f32.mrf.mxu0  ;;  %v1176_v30 = vpop.f32.mrf.mxu1  ;;  %v684_v19 = vadd.f32 %v652_v14, %v491_v5  ;;  %v685_v20 = vadd.f32 %v653_v12, %v492_v6 }
 0x120   :  { %v1088_v44 = vadd.f32 %v1087_v2, %v7008_v42  ;;  %v1177_v45 = vadd.f32 %v1176_v30, %v7010_v43  ;;  %v5692_v2 = vld [vmem:[%s9085_s5 + $0x164] sm:$0xf]  ;;  %v4724_v30 = vld [vmem:[%s9085_s5 + $0x170] sm:$0xf0]  ;;  %v6321_v12 = vpop.permute.xlu2 %6320  ;;  %v6327_v14 = vpop.permute.xlu0 %6326 }
 0x121   :  { %v878_v33 = vadd.f32 %v846_v17, %v685_v20  ;;  %v4727_v34 = vor.u32 %v5692_v2, %v4724_v30  ;;  %v6322_v22 = vunpack.i.l.bf16 %v6321_v12  ;;  %v6329_v63 = vunpack.i.h.bf16 %v6327_v14 }
 0x122   :  { %1126 = vmatmul.bf16.gmra.mxu0 %v964_v31  ;;  %1215 = vmatmul.bf16.gmra.mxu1 %v964_v31  ;;  %v1255_v1 = vmax.f32 %v1088_v44, 0.0  ;;  %v1256_v4 = vmax.f32 %v1177_v45, 0.0  ;;  %v877_v31 = vadd.f32 %v845_v21, %v684_v19  ;;  %v6328_v25 = vunpack.i.l.bf16 %v6327_v14 }
 0x123   :  { %v6303_v16 = vpop.permute.xlu1 %6302  ;;  %2012 = vmatpush.bf16.msrb.mxu1 %v4727_v34  ;;  %v914_v57 = vadd.f32 %v7053_v54, %v878_v33  ;;  %v302_v28 = vmul.f32 %v6322_v22, %v6676_v37  ;;  %v464_v29 = vmul.f32 %v6329_v63, %v6680_v39  ;;  %v5688_v63 = vld [vmem:[%s9085_s5 + $0x144] sm:$0xf] }
 0x124   :  { %v6305_v26 = vunpack.i.h.bf16 %v6303_v16  ;;  %v6304_v27 = vunpack.i.l.bf16 %v6303_v16  ;;  %v913_v56 = vadd.f32 %v7053_v54, %v877_v31  ;;  %v463_v2 = vmul.f32 %v6328_v25, %v6680_v39  ;;  %v4708_v25 = vld [vmem:[%s9085_s5 + $0x150] sm:$0xf0] }
 0x125   :  { %v946_v15 = vmax.f32 %v914_v57, 0.0 }
 0x126   :  { %v462_v46 = vmul.f32 %v6305_v26, %v6680_v39  ;;  %v461_v48 = vmul.f32 %v6304_v27, %v6680_v39  ;;  %v945_v7 = vmax.f32 %v913_v56, 0.0 }
 0x127   :  { %v1089_v52 = vpop.f32.mrf.mxu0  ;;  %v1178_v53 = vpop.f32.mrf.mxu1 }
 0x128   :  { %v1090_v58 = vadd.f32 %v1089_v52, %v7008_v42  ;;  %v1179_v59 = vadd.f32 %v1178_v53, %v7010_v43  ;;  %v966_v21 = vpack.c.bf16 %v946_v15, %v945_v7  ;;  %v6339_v50 = vpop.permute.xlu2 %6338 }
 0x129   :  { %v6341_v56 = vunpack.i.h.bf16 %v6339_v50  ;;  %v6340_v57 = vunpack.i.l.bf16 %v6339_v50 }
 0x12a   :  { %v1257_v0 = vmax.f32 %v1090_v58, 0.0  ;;  %v1258_v10 = vmax.f32 %v1179_v59, 0.0  ;;  %v655_v58 = vmul.f32 %v6311_v35, %v6678_v38  ;;  %v654_v59 = vmul.f32 %v6310_v36, %v6678_v38 }
 0x12b   :  { %v850_v7 = vmul.f32 %v6341_v56, %v6683_v47  ;;  %v849_v14 = vmul.f32 %v6340_v57, %v6683_v47 }
 0x12c   :  { %v7059_v8 = vpack.c.bf16 %v1257_v0, %v1255_v1  ;;  %v7061_v9 = vpack.c.bf16 %v1258_v10, %v1256_v4  ;;  %v6315_v53 = vpop.permute.xlu1 %6314  ;;  %v494_v1 = vadd.f32 %v462_v46, %v301_v49  ;;  %v493_v4 = vadd.f32 %v461_v48, %v300_v51 }
 0x12d   :  { %v6317_v0 = vunpack.i.h.bf16 %v6315_v53  ;;  %v6316_v10 = vunpack.i.l.bf16 %v6315_v53  ;;  %v495_v49 = vadd.f32 %v463_v2, %v302_v28 }
 0x12e   :  { %1754 = vmatmul.bf16.gmra.mxu2 %v7059_v8  ;;  %1843 = vmatmul.bf16.gmra.mxu3 %v7061_v9  ;;  %v686_v16 = vadd.f32 %v654_v59, %v493_v4  ;;  %v687_v17 = vadd.f32 %v655_v58, %v494_v1 }
 0x12f   :  { %v1092_v18 = vpop.f32.mrf.mxu0  ;;  %v1181_v11 = vpop.f32.mrf.mxu1  ;;  %v848_v19 = vmul.f32 %v6317_v0, %v6683_v47  ;;  %v847_v20 = vmul.f32 %v6316_v10, %v6683_v47 }
 0x130   :  { %v1093_v40 = vadd.f32 %v1092_v18, %v7008_v42  ;;  %v1182_v41 = vadd.f32 %v1181_v11, %v7010_v43  ;;  %v6351_v4 = vpop.permute.xlu2 %6350 }
 0x131   :  { %v879_v13 = vadd.f32 %v847_v20, %v686_v16  ;;  %v880_v26 = vadd.f32 %v848_v19, %v687_v17  ;;  %v6353_v17 = vunpack.i.h.bf16 %v6351_v4  ;;  %v4580_v19 = vld [vmem:[%s9085_s5 + $0x50] sm:$0xf0] }
 0x132   :  { %1131 = vmatmul.bf16.gmra.mxu0 %v965_v55  ;;  %1220 = vmatmul.bf16.gmra.mxu1 %v965_v55  ;;  %v1259_v60 = vmax.f32 %v1093_v40, 0.0  ;;  %v1260_v3 = vmax.f32 %v1182_v41, 0.0  ;;  %v6323_v55 = vunpack.i.h.bf16 %v6321_v12 }
 0x133   :  { %v915_v36 = vadd.f32 %v7053_v54, %v879_v13  ;;  %v916_v40 = vadd.f32 %v7053_v54, %v880_v26 }
 0x134   :  { %v303_v27 = vmul.f32 %v6323_v55, %v6676_v37  ;;  %v6352_v55 = vunpack.i.l.bf16 %v6351_v4 }
 0x135   :  { %v947_v58 = vmax.f32 %v915_v36, 0.0  ;;  %v948_v59 = vmax.f32 %v916_v40, 0.0 }
 0x136   :  { %v6333_v30 = vpop.permute.xlu1 %6332  ;;  %v496_v48 = vadd.f32 %v464_v29, %v303_v27  ;;  %v4711_v27 = vor.u32 %v5688_v63, %v4708_v25  ;;  %v465_v36 = vmul.f32 %v6352_v55, %v6680_v39 }
 0x137   :  { %v1094_v44 = vpop.f32.mrf.mxu0  ;;  %v1183_v45 = vpop.f32.mrf.mxu1  ;;  %v6334_v46 = vunpack.i.l.bf16 %v6333_v30  ;;  %v967_v16 = vpack.c.bf16 %v948_v59, %v947_v58 }
 0x138   :  { %v1095_v32 = vadd.f32 %v1094_v44, %v7008_v42  ;;  %v1184_v52 = vadd.f32 %v1183_v45, %v7010_v43  ;;  %v6335_v45 = vunpack.i.h.bf16 %v6333_v30  ;;  %2013 = vmatpush.bf16.msrb.mxu1 %v4711_v27  ;;  %v6369_v56 = vpop.permute.xlu2 %6368 }
 0x13a   :  { %v1261_v61 = vmax.f32 %v1095_v32, 0.0  ;;  %v1262_v62 = vmax.f32 %v1184_v52, 0.0 }
 0x13c   :  { %v7093_v5 = vpack.c.bf16 %v1261_v61, %v1259_v60  ;;  %v7095_v6 = vpack.c.bf16 %v1262_v62, %v1260_v3  ;;  %v657_v61 = vmul.f32 %v6335_v45, %v6678_v38  ;;  %v656_v62 = vmul.f32 %v6334_v46, %v6678_v38 }
 0x13e   :  { %1759 = vmatmul.bf16.gmra.mxu2 %v7093_v5  ;;  %1848 = vmatmul.bf16.gmra.mxu3 %v7095_v6  ;;  %v688_v15 = vadd.f32 %v656_v62, %v495_v49  ;;  %v689_v12 = vadd.f32 %v657_v61, %v496_v48 }
 0x13f   :  { %v1097_v18 = vpop.f32.mrf.mxu0  ;;  %v1186_v11 = vpop.f32.mrf.mxu1 }
 0x140   :  { %v1098_v31 = vadd.f32 %v1097_v18, %v7008_v42  ;;  %v1187_v33 = vadd.f32 %v1186_v11, %v7010_v43  ;;  %v6345_v1 = vpop.permute.xlu1 %6344  ;;  %v6357_v18 = vpop.permute.xlu0 %6356  ;;  %v5656_v11 = vld [vmem:[%s9085_s5 + $0x44] sm:$0xf]  ;;  %v881_v13 = vadd.f32 %v849_v14, %v688_v15  ;;  %v882_v26 = vadd.f32 %v850_v7, %v689_v12 }
 0x141   :  { %v6347_v20 = vunpack.i.h.bf16 %v6345_v1  ;;  %v4583_v22 = vor.u32 %v5656_v11, %v4580_v19  ;;  %v6359_v28 = vunpack.i.h.bf16 %v6357_v18  ;;  %v6358_v29 = vunpack.i.l.bf16 %v6357_v18  ;;  %v6381_v63 = vpop.permute.xlu2 %6380 }
 0x142   :  { %1136 = vmatmul.bf16.gmra.mxu0 %v966_v21  ;;  %1225 = vmatmul.bf16.gmra.mxu1 %v966_v21  ;;  %v1263_v51 = vmax.f32 %v1098_v31, 0.0  ;;  %v1264_v32 = vmax.f32 %v1187_v33, 0.0  ;;  %v6346_v21 = vunpack.i.l.bf16 %v6345_v1  ;;  %v917_v45 = vadd.f32 %v7053_v54, %v881_v13 }
 0x143   :  { %1924 = vmatpush.bf16.msrb.mxu0 %v4583_v22  ;;  %v305_v50 = vmul.f32 %v6347_v20, %v6676_v37  ;;  %v918_v46 = vadd.f32 %v7053_v54, %v882_v26  ;;  %v659_v48 = vmul.f32 %v6359_v28, %v6678_v38  ;;  %v658_v49 = vmul.f32 %v6358_v29, %v6678_v38 }
 0x144   :  { %v949_v4 = vmax.f32 %v917_v45, 0.0  ;;  %v6371_v11 = vunpack.i.h.bf16 %v6369_v56  ;;  %v6370_v19 = vunpack.i.l.bf16 %v6369_v56 }
 0x146   :  { %v307_v26 = vmul.f32 %v6371_v11, %v6676_v37  ;;  %v306_v27 = vmul.f32 %v6370_v19, %v6676_v37 }
 0x147   :  { %v1099_v34 = vpop.f32.mrf.mxu0  ;;  %v1188_v35 = vpop.f32.mrf.mxu1 }
 0x148   :  { %v1100_v41 = vadd.f32 %v1099_v34, %v7008_v42  ;;  %v1189_v44 = vadd.f32 %v1188_v35, %v7010_v43  ;;  %v304_v34 = vmul.f32 %v6346_v21, %v6676_v37  ;;  %v466_v35 = vmul.f32 %v6353_v17, %v6680_v39  ;;  %v6387_v28 = vpop.permute.xlu0 %6386  ;;  %v5652_v37 = vld [vmem:[%s9085_s5 + $0x24] sm:$0xf] }
 0x14a   :  { %v1265_v52 = vmax.f32 %v1100_v41, 0.0  ;;  %v1266_v53 = vmax.f32 %v1189_v44, 0.0  ;;  %v6363_v44 = vpop.permute.xlu1 %6362  ;;  %v497_v57 = vadd.f32 %v465_v36, %v304_v34  ;;  %v498_v58 = vadd.f32 %v466_v35, %v305_v50 }
 0x14b   :  { %v6365_v59 = vunpack.i.h.bf16 %v6363_v44  ;;  %v6364_v61 = vunpack.i.l.bf16 %v6363_v44  ;;  %v5684_v44 = vld [vmem:[%s9085_s5 + $0x124] sm:$0xf] }
 0x14c   :  { %v7111_v60 = vpack.c.bf16 %v1265_v52, %v1263_v51  ;;  %v7113_v3 = vpack.c.bf16 %v1266_v53, %v1264_v32  ;;  %v690_v7 = vadd.f32 %v658_v49, %v497_v57 }
 0x14d   :  { %v852_v14 = vmul.f32 %v6365_v59, %v6683_v47 }
 0x14e   :  { %1764 = vmatmul.bf16.gmra.mxu2 %v7111_v60  ;;  %1853 = vmatmul.bf16.gmra.mxu3 %v7113_v3 }
 0x14f   :  { %v1102_v0 = vpop.f32.mrf.mxu0  ;;  %v1191_v10 = vpop.f32.mrf.mxu1 }
 0x150   :  { %v1103_v2 = vadd.f32 %v1102_v0, %v7008_v42  ;;  %v1192_v30 = vadd.f32 %v1191_v10, %v7010_v43  ;;  %v950_v0 = vmax.f32 %v918_v46, 0.0  ;;  %v691_v10 = vadd.f32 %v659_v48, %v498_v58 }
 0x151   :  { %v6389_v46 = vunpack.i.h.bf16 %v6387_v28  ;;  %v6388_v48 = vunpack.i.l.bf16 %v6387_v28 }
 0x152   :  { %1141 = vmatmul.bf16.gmra.mxu0 %v967_v16  ;;  %1230 = vmatmul.bf16.gmra.mxu1 %v967_v16  ;;  %v1267_v51 = vmax.f32 %v1103_v2, 0.0  ;;  %v1268_v32 = vmax.f32 %v1192_v30, 0.0  ;;  %v851_v16 = vmul.f32 %v6364_v61, %v6683_v47  ;;  %v968_v17 = vpack.c.bf16 %v950_v0, %v949_v4  ;;  %v6375_v18 = vpop.permute.xlu1 %6374 }
 0x153   :  { %v884_v21 = vadd.f32 %v852_v14, %v691_v10  ;;  %v6377_v55 = vunpack.i.h.bf16 %v6375_v18  ;;  %v6376_v22 = vunpack.i.l.bf16 %v6375_v18  ;;  %v6383_v30 = vunpack.i.h.bf16 %v6381_v63  ;;  %v4676_v14 = vld [vmem:[%s9085_s5 + $0x110] sm:$0xf0] }
 0x154   :  { %v883_v20 = vadd.f32 %v851_v16, %v690_v7  ;;  %v5648_v7 = vld [vmem:[%s9085_s5 + $0x4] sm:$0xf] }
 0x155   :  { %v920_v50 = vadd.f32 %v7053_v54, %v884_v21  ;;  %v468_v36 = vmul.f32 %v6377_v55, %v6680_v39  ;;  %v661_v56 = vmul.f32 %v6383_v30, %v6678_v38  ;;  %v853_v21 = vmul.f32 %v6388_v48, %v6683_v47 }
 0x157   :  { %v1104_v31 = vpop.f32.mrf.mxu0  ;;  %v1193_v33 = vpop.f32.mrf.mxu1  ;;  %v952_v59 = vmax.f32 %v920_v50, 0.0  ;;  %v500_v0 = vadd.f32 %v468_v36, %v307_v26 }
 0x158   :  { %v1105_v40 = vadd.f32 %v1104_v31, %v7008_v42  ;;  %v1194_v41 = vadd.f32 %v1193_v33, %v7010_v43  ;;  %v6382_v31 = vunpack.i.l.bf16 %v6381_v63  ;;  %v919_v33 = vadd.f32 %v7053_v54, %v883_v20 }
 0x159   :  { %v693_v20 = vadd.f32 %v661_v56, %v500_v0 }
 0x15a   :  { %v1269_v52 = vmax.f32 %v1105_v40, 0.0  ;;  %v1270_v53 = vmax.f32 %v1194_v41, 0.0  ;;  %v467_v40 = vmul.f32 %v6376_v22, %v6680_v39  ;;  %v4564_v41 = vld [vmem:[%s9085_s5 + $0x30] sm:$0xf0]  ;;  %v660_v57 = vmul.f32 %v6382_v31, %v6678_v38  ;;  %v5680_v38 = vld [vmem:[%s9085_s5 + $0x104] sm:$0xf] }
 0x15b   :  { %v4567_v49 = vor.u32 %v5652_v37, %v4564_v41  ;;  %v4692_v39 = vld [vmem:[%s9085_s5 + $0x130] sm:$0xf0]  ;;  %v951_v58 = vmax.f32 %v919_v33, 0.0  ;;  %v4679_v16 = vor.u32 %v5680_v38, %v4676_v14 }
 0x15c   :  { %v7145_v62 = vpack.c.bf16 %v1269_v52, %v1267_v51  ;;  %v7147_v1 = vpack.c.bf16 %v1270_v53, %v1268_v32  ;;  %v4695_v53 = vor.u32 %v5684_v44, %v4692_v39  ;;  %v499_v10 = vadd.f32 %v467_v40, %v306_v27 }
 0x15d   :  { %1925 = vmatpush.bf16.msrb.mxu0 %v4567_v49  ;;  %v969_v55 = vpack.c.bf16 %v952_v59, %v951_v58 }
 0x15e   :  { %1769 = vmatmul.bf16.gmra.mxu2 %v7145_v62  ;;  %1858 = vmatmul.bf16.gmra.mxu3 %v7147_v1  ;;  %v692_v19 = vadd.f32 %v660_v57, %v499_v10 }
 0x15f   :  { %v1107_v15 = vpop.f32.mrf.mxu0  ;;  %v1196_v12 = vpop.f32.mrf.mxu1  ;;  %2014 = vmatpush.bf16.msrb.mxu1 %v4695_v53 }
 0x160   :  { %v1108_v25 = vadd.f32 %v1107_v15, %v7008_v42  ;;  %v1197_v13 = vadd.f32 %v1196_v12, %v7010_v43  ;;  %v4548_v15 = vld [vmem:[%s9085_s5 + $0x10] sm:$0xf0]  ;;  %v885_v63 = vadd.f32 %v853_v21, %v692_v19 }
 0x161   :  { %v4551_v12 = vor.u32 %v5648_v7, %v4548_v15 }
 0x162   :  { %1146 = vmatmul.bf16.gmra.mxu0 %v968_v17  ;;  %1235 = vmatmul.bf16.gmra.mxu1 %v968_v17  ;;  %v1271_v45 = vmax.f32 %v1108_v25, 0.0  ;;  %v1272_v51 = vmax.f32 %v1197_v13, 0.0  ;;  %v854_v17 = vmul.f32 %v6389_v46, %v6683_v47 }
 0x163   :  { %1926 = vmatpush.bf16.msrb.mxu0 %v4551_v12  ;;  %2015 = vmatpush.bf16.msrb.mxu1 %v4679_v16 }
 0x164   :  { %v886_v22 = vadd.f32 %v854_v17, %v693_v20 }
 0x166   :  { %v922_v47 = vadd.f32 %v7053_v54, %v886_v22 }
 0x167   :  { %v1109_v29 = vpop.f32.mrf.mxu0  ;;  %v1198_v2 = vpop.f32.mrf.mxu1 }
 0x168   :  { %v1110_v34 = vadd.f32 %v1109_v29, %v7008_v42  ;;  %v1199_v35 = vadd.f32 %v1198_v2, %v7010_v43  ;;  %v921_v2 = vadd.f32 %v7053_v54, %v885_v63  ;;  %v954_v40 = vmax.f32 %v922_v47, 0.0 }
 0x16a   :  { %v1273_v32 = vmax.f32 %v1110_v34, 0.0  ;;  %v1274_v52 = vmax.f32 %v1199_v35, 0.0  ;;  %v953_v36 = vmax.f32 %v921_v2, 0.0 }
 0x16c   :  { %v7177_v61 = vpack.c.bf16 %v1273_v32, %v1271_v45  ;;  %v7179_v4 = vpack.c.bf16 %v1274_v52, %v1272_v51  ;;  %v970_v44 = vpack.c.bf16 %v954_v40, %v953_v36 }
 0x16e   :  { %1774 = vmatmul.bf16.gmra.mxu2 %v7177_v61  ;;  %1863 = vmatmul.bf16.gmra.mxu3 %v7179_v4 }
 0x16f   :  { %v1112_v18 = vpop.f32.mrf.mxu0  ;;  %v1201_v11 = vpop.f32.mrf.mxu1 }
 0x170   :  { %v1113_v25 = vadd.f32 %v1112_v18, %v7008_v42  ;;  %v1202_v13 = vadd.f32 %v1201_v11, %v7010_v43  ;;  %v7228_v11 = vld [vmem:[%s9086_s6] sm:$0xf] }
 0x171   :  { %v7237_v21 = vperm.slane %v7228_v11, 0 }
 0x172   :  { %1151 = vmatmul.bf16.gmra.mxu0 %v969_v55  ;;  %1240 = vmatmul.bf16.gmra.mxu1 %v969_v55  ;;  %v1275_v30 = vmax.f32 %v1113_v25, 0.0  ;;  %v1276_v31 = vmax.f32 %v1202_v13, 0.0 }
 0x177   :  { %v1114_v26 = vpop.f32.mrf.mxu0  ;;  %v1203_v27 = vpop.f32.mrf.mxu1 }
 0x178   :  { %v1115_v28 = vadd.f32 %v1114_v26, %v7008_v42  ;;  %v1204_v29 = vadd.f32 %v1203_v27, %v7010_v43 }
 0x17a   :  { %v1277_v33 = vmax.f32 %v1115_v28, 0.0  ;;  %v1278_v50 = vmax.f32 %v1204_v29, 0.0 }
 0x17c   :  { %v7203_v34 = vpack.c.bf16 %v1277_v33, %v1275_v30  ;;  %v7205_v35 = vpack.c.bf16 %v1278_v50, %v1276_v31 }
 0x17e   :  { %1779 = vmatmul.bf16.gmra.mxu2 %v7203_v34  ;;  %1868 = vmatmul.bf16.gmra.mxu3 %v7205_v35 }
 0x17f   :  { %v1117_v37 = vpop.f32.mrf.mxu0  ;;  %v1206_v41 = vpop.f32.mrf.mxu1 }
 0x180   :  { %v1118_v54 = vadd.f32 %v1117_v37, %v7008_v42  ;;  %v1207_v45 = vadd.f32 %v1206_v41, %v7010_v43 }
 0x182   :  { %1156 = vmatmul.bf16.gmra.mxu0 %v970_v44  ;;  %1245 = vmatmul.bf16.gmra.mxu1 %v970_v44  ;;  %v1279_v51 = vmax.f32 %v1118_v54, 0.0  ;;  %v1280_v32 = vmax.f32 %v1207_v45, 0.0 }
 0x187   :  { %v1119_v46 = vpop.f32.mrf.mxu0  ;;  %v1208_v48 = vpop.f32.mrf.mxu1 }
 0x188   :  { %v1120_v49 = vadd.f32 %v1119_v46, %v7008_v42  ;;  %v1209_v39 = vadd.f32 %v1208_v48, %v7010_v43 }
 0x18a   :  { %v1281_v52 = vmax.f32 %v1120_v49, 0.0  ;;  %v1282_v53 = vmax.f32 %v1209_v39, 0.0 }
 0x18c   :  { %v7213_v56 = vpack.c.bf16 %v1281_v52, %v1279_v51  ;;  %v7215_v57 = vpack.c.bf16 %v1282_v53, %v1280_v32  ;;  %v4666_v32 = vld [vmem:[%s9085_s5 + $0xe8] sm:$0xf]  ;;  %v5679_v52 = vld [vmem:[%s9085_s5 + $0xf4] sm:$0xf0] }
 0x18d   :  { %v4794_v53 = vld [vmem:[%s9085_s5 + $0x1e8] sm:$0xf] }
 0x18e   :  { %1784 = vmatmul.bf16.gmra.mxu2 %v7213_v56  ;;  %1873 = vmatmul.bf16.gmra.mxu3 %v7215_v57 }
 0x18f   :  { %v1122_v58 = vpop.f32.mrf.mxu0  ;;  %v1211_v59 = vpop.f32.mrf.mxu1 }
 0x190   :  { %v1123_v0 = vadd.f32 %v1122_v58, %v7008_v42  ;;  %v1212_v10 = vadd.f32 %v1211_v59, %v7010_v43 }
 0x192   :  { %1927 = vmatmul.bf16.vlgmr.msrb.gmra.mxu0 %v7036_v23  ;;  %2016 = vmatmul.bf16.vlgmr.msrb.gmra.mxu1 %v7038_v24  ;;  %v1283_v14 = vmax.f32 %v1123_v0, 0.0  ;;  %v1284_v16 = vmax.f32 %v1212_v10, 0.0  ;;  %v4667_v0 = vor.u32 %v5679_v52, %v4666_v32  ;;  %v5711_v10 = vld [vmem:[%s9085_s5 + $0x1f4] sm:$0xf0] }
 0x194   :  { %2097 = vmatpush.bf16.msrb.mxu2 %v4667_v0 }
 0x197   :  { %v1124_v7 = vpop.f32.mrf.mxu0  ;;  %v1213_v15 = vpop.f32.mrf.mxu1 }
 0x198   :  { %v1125_v38 = vadd.f32 %v1124_v7, %v7008_v42  ;;  %v1214_v12 = vadd.f32 %v1213_v15, %v7010_v43  ;;  %v4795_v15 = vor.u32 %v5711_v10, %v4794_v53 }
 0x19a   :  { %v1285_v17 = vmax.f32 %v1125_v38, 0.0  ;;  %v1286_v18 = vmax.f32 %v1214_v12, 0.0  ;;  %2186 = vmatpush.bf16.msrb.mxu3 %v4795_v15 }
 0x19c   :  { %v7230_v19 = vpack.c.bf16 %v1285_v17, %v1283_v14  ;;  %v7232_v20 = vpack.c.bf16 %v1286_v18, %v1284_v16 }
 0x19e   :  { %1789 = vmatmul.bf16.gmra.mxu2 %v7230_v19  ;;  %1878 = vmatmul.bf16.gmra.mxu3 %v7232_v20 }
 0x19f   :  { %v1127_v55 = vpop.f32.mrf.mxu0  ;;  %v1216_v22 = vpop.f32.mrf.mxu1 }
 0x1a0   :  { %v1128_v27 = vadd.f32 %v1127_v55, %v7008_v42  ;;  %v1217_v28 = vadd.f32 %v1216_v22, %v7010_v43 }
 0x1a1   :  { %v1750_v63 = vpop.f32.mrf.mxu2  ;;  %v1839_v25 = vpop.f32.mrf.mxu3 }
 0x1a2   :  { %v1751_v13 = vadd.f32 %v1750_v63, %v7237_v21  ;;  %1932 = vmatmul.bf16.gmra.mxu0 %v7059_v8  ;;  %2021 = vmatmul.bf16.gmra.mxu1 %v7061_v9  ;;  %v1287_v31 = vmax.f32 %v1128_v27, 0.0  ;;  %v1288_v36 = vmax.f32 %v1217_v28, 0.0 }
 0x1a4   :  { %v1840_v26 = vadd.f32 %v1839_v25, %v1751_v13  ;;  %v5677_v25 = vld [vmem:[%s9085_s5 + $0xec] sm:$0xf]  ;;  %v4668_v13 = vld [vmem:[%s9085_s5 + $0xf8] sm:$0xf0] }
 0x1a6   :  { %v2453_v46 = vmax.f32 %v1840_v26, 0.0  ;;  %v5709_v26 = vld [vmem:[%s9085_s5 + $0x1ec] sm:$0xf] }
 0x1a7   :  { %v1129_v29 = vpop.f32.mrf.mxu0  ;;  %v1218_v2 = vpop.f32.mrf.mxu1 }
 0x1a8   :  { %v1130_v47 = vadd.f32 %v1129_v29, %v7008_v42  ;;  %v1219_v30 = vadd.f32 %v1218_v2, %v7010_v43 }
 0x1a9   :  { %v1752_v33 = vpop.f32.mrf.mxu2  ;;  %v1841_v50 = vpop.f32.mrf.mxu3 }
 0x1aa   :  { %v1289_v40 = vmax.f32 %v1130_v47, 0.0  ;;  %v1290_v37 = vmax.f32 %v1219_v30, 0.0  ;;  %v1753_v41 = vadd.f32 %v1752_v33, %v7237_v21  ;;  %v4671_v47 = vor.u32 %v5677_v25, %v4668_v13  ;;  %v4796_v30 = vld [vmem:[%s9085_s5 + $0x1f8] sm:$0xf0] }
 0x1ac   :  { %v7247_v44 = vpack.c.bf16 %v1289_v40, %v1287_v31  ;;  %v7249_v54 = vpack.c.bf16 %v1290_v37, %v1288_v36  ;;  %v1842_v45 = vadd.f32 %v1841_v50, %v1753_v41  ;;  %v4799_v36 = vor.u32 %v5709_v26, %v4796_v30  ;;  %2275 = vmatpush.bf16.msra.mxu0 %v4671_v47  ;;  %v5675_v47 = vld [vmem:[%s9085_s5 + $0xd4] sm:$0xf0]  ;;  %v4778_v30 = vld [vmem:[%s9085_s5 + $0x1c8] sm:$0xf] }
 0x1ae   :  { %v2457_v48 = vmax.f32 %v1842_v45, 0.0  ;;  %1794 = vmatmul.bf16.gmra.mxu2 %v7247_v44  ;;  %1883 = vmatmul.bf16.gmra.mxu3 %v7249_v54 }
 0x1af   :  { %v1132_v49 = vpop.f32.mrf.mxu0  ;;  %v1221_v39 = vpop.f32.mrf.mxu1  ;;  %2364 = vmatpush.bf16.msra.mxu1 %v4799_v36  ;;  %v5707_v36 = vld [vmem:[%s9085_s5 + $0x1d4] sm:$0xf0] }
 0x1b0   :  { %v2581_v51 = vmax.f32 %v2453_v46, %v2457_v48  ;;  %v1133_v12 = vadd.f32 %v1132_v49, %v7008_v42  ;;  %v1222_v14 = vadd.f32 %v1221_v39, %v7010_v43 }
 0x1b1   :  { %v1755_v58 = vpop.f32.mrf.mxu2  ;;  %v1844_v59 = vpop.f32.mrf.mxu3 }
 0x1b2   :  { %v1756_v7 = vadd.f32 %v1755_v58, %v7237_v21  ;;  %1937 = vmatmul.bf16.gmra.mxu0 %v7093_v5  ;;  %2026 = vmatmul.bf16.gmra.mxu1 %v7095_v6  ;;  %v1291_v27 = vmax.f32 %v1133_v12, 0.0  ;;  %v1292_v28 = vmax.f32 %v1222_v14, 0.0 }
 0x1b4   :  { %v1845_v38 = vadd.f32 %v1844_v59, %v1756_v7 }
 0x1b6   :  { %v2461_v16 = vmax.f32 %v1845_v38, 0.0 }
 0x1b7   :  { %v1134_v17 = vpop.f32.mrf.mxu0  ;;  %v1223_v18 = vpop.f32.mrf.mxu1 }
 0x1b8   :  { %v2582_v55 = vmax.f32 %v2581_v51, %v2461_v16  ;;  %v1135_v22 = vadd.f32 %v1134_v17, %v7008_v42  ;;  %v1224_v63 = vadd.f32 %v1223_v18, %v7010_v43 }
 0x1b9   :  { %v1757_v29 = vpop.f32.mrf.mxu2  ;;  %v1846_v2 = vpop.f32.mrf.mxu3 }
 0x1ba   :  { %v1293_v31 = vmax.f32 %v1135_v22, 0.0  ;;  %v1294_v33 = vmax.f32 %v1224_v63, 0.0  ;;  %v1758_v50 = vadd.f32 %v1757_v29, %v7237_v21 }
 0x1bc   :  { %v7285_v40 = vpack.c.bf16 %v1293_v31, %v1291_v27  ;;  %v7287_v37 = vpack.c.bf16 %v1294_v33, %v1292_v28  ;;  %v1847_v41 = vadd.f32 %v1846_v2, %v1758_v50  ;;  %v4650_v2 = vld [vmem:[%s9085_s5 + $0xc8] sm:$0xf] }
 0x1bd   :  { %v4651_v50 = vor.u32 %v5675_v47, %v4650_v2 }
 0x1be   :  { %v2465_v45 = vmax.f32 %v1847_v41, 0.0  ;;  %1799 = vmatmul.bf16.gmra.mxu2 %v7285_v40  ;;  %1888 = vmatmul.bf16.gmra.mxu3 %v7287_v37 }
 0x1bf   :  { %v1137_v46 = vpop.f32.mrf.mxu0  ;;  %v1226_v48 = vpop.f32.mrf.mxu1  ;;  %2098 = vmatpush.bf16.msrb.mxu2 %v4651_v50 }
 0x1c0   :  { %v2583_v49 = vmax.f32 %v2582_v55, %v2465_v45  ;;  %v1138_v53 = vadd.f32 %v1137_v46, %v7008_v42  ;;  %v1227_v58 = vadd.f32 %v1226_v48, %v7010_v43  ;;  %v4779_v45 = vor.u32 %v5707_v36, %v4778_v30  ;;  %v4634_v36 = vld [vmem:[%s9085_s5 + $0xa8] sm:$0xf] }
 0x1c1   :  { %v1760_v39 = vpop.f32.mrf.mxu2  ;;  %v1849_v51 = vpop.f32.mrf.mxu3 }
 0x1c2   :  { %v1761_v32 = vadd.f32 %v1760_v39, %v7237_v21  ;;  %1942 = vmatmul.bf16.gmra.mxu0 %v7111_v60  ;;  %2031 = vmatmul.bf16.gmra.mxu1 %v7113_v3  ;;  %v1295_v12 = vmax.f32 %v1138_v53, 0.0  ;;  %v1296_v17 = vmax.f32 %v1227_v58, 0.0 }
 0x1c3   :  { %2187 = vmatpush.bf16.msrb.mxu3 %v4779_v45  ;;  %v4762_v45 = vld [vmem:[%s9085_s5 + $0x1a8] sm:$0xf] }
 0x1c4   :  { %v1850_v52 = vadd.f32 %v1849_v51, %v1761_v32 }
 0x1c6   :  { %v2469_v59 = vmax.f32 %v1850_v52, 0.0 }
 0x1c7   :  { %v1139_v0 = vpop.f32.mrf.mxu0  ;;  %v1228_v10 = vpop.f32.mrf.mxu1 }
 0x1c8   :  { %v2584_v7 = vmax.f32 %v2583_v49, %v2469_v59  ;;  %v1140_v15 = vadd.f32 %v1139_v0, %v7008_v42  ;;  %v1229_v38 = vadd.f32 %v1228_v10, %v7010_v43  ;;  %v5673_v59 = vld [vmem:[%s9085_s5 + $0xcc] sm:$0xf]  ;;  %v4652_v0 = vld [vmem:[%s9085_s5 + $0xd8] sm:$0xf0] }
 0x1c9   :  { %v1762_v14 = vpop.f32.mrf.mxu2  ;;  %v1851_v16 = vpop.f32.mrf.mxu3  ;;  %v5705_v10 = vld [vmem:[%s9085_s5 + $0x1cc] sm:$0xf] }
 0x1ca   :  { %v1297_v18 = vmax.f32 %v1140_v15, 0.0  ;;  %v1298_v55 = vmax.f32 %v1229_v38, 0.0  ;;  %v1763_v22 = vadd.f32 %v1762_v14, %v7237_v21  ;;  %v4655_v14 = vor.u32 %v5673_v59, %v4652_v0 }
 0x1cc   :  { %v7299_v63 = vpack.c.bf16 %v1297_v18, %v1295_v12  ;;  %v7301_v25 = vpack.c.bf16 %v1298_v55, %v1296_v17  ;;  %v1852_v13 = vadd.f32 %v1851_v16, %v1763_v22  ;;  %v4780_v16 = vld [vmem:[%s9085_s5 + $0x1d8] sm:$0xf0]  ;;  %2276 = vmatpush.bf16.msra.mxu0 %v4655_v14 }
 0x1cd   :  { %v4783_v22 = vor.u32 %v5705_v10, %v4780_v16  ;;  %v4618_v10 = vld [vmem:[%s9085_s5 + $0x88] sm:$0xf] }
 0x1ce   :  { %v2473_v26 = vmax.f32 %v1852_v13, 0.0  ;;  %1804 = vmatmul.bf16.gmra.mxu2 %v7299_v63  ;;  %1893 = vmatmul.bf16.gmra.mxu3 %v7301_v25 }
 0x1cf   :  { %v1142_v27 = vpop.f32.mrf.mxu0  ;;  %v1231_v28 = vpop.f32.mrf.mxu1  ;;  %2365 = vmatpush.bf16.msra.mxu1 %v4783_v22 }
 0x1d0   :  { %v2585_v29 = vmax.f32 %v2584_v7, %v2473_v26  ;;  %v1143_v48 = vadd.f32 %v1142_v27, %v7008_v42  ;;  %v1232_v49 = vadd.f32 %v1231_v28, %v7010_v43 }
 0x1d1   :  { %v1765_v31 = vpop.f32.mrf.mxu2  ;;  %v1854_v33 = vpop.f32.mrf.mxu3 }
 0x1d2   :  { %v1766_v41 = vadd.f32 %v1765_v31, %v7237_v21  ;;  %1947 = vmatmul.bf16.gmra.mxu0 %v7145_v62  ;;  %2036 = vmatmul.bf16.gmra.mxu1 %v7147_v1  ;;  %v1299_v7 = vmax.f32 %v1143_v48, 0.0  ;;  %v1300_v15 = vmax.f32 %v1232_v49, 0.0 }
 0x1d4   :  { %v1855_v46 = vadd.f32 %v1854_v33, %v1766_v41  ;;  %v5671_v41 = vld [vmem:[%s9085_s5 + $0xb4] sm:$0xf0] }
 0x1d5   :  { %v4635_v49 = vor.u32 %v5671_v41, %v4634_v36  ;;  %v5695_v36 = vld [vmem:[%s9085_s5 + $0x174] sm:$0xf0] }
 0x1d6   :  { %v2477_v39 = vmax.f32 %v1855_v46, 0.0 }
 0x1d7   :  { %v1144_v51 = vpop.f32.mrf.mxu0  ;;  %v1233_v32 = vpop.f32.mrf.mxu1  ;;  %2099 = vmatpush.bf16.msrb.mxu2 %v4635_v49 }
 0x1d8   :  { %v2586_v52 = vmax.f32 %v2585_v29, %v2477_v39  ;;  %v1145_v53 = vadd.f32 %v1144_v51, %v7008_v42  ;;  %v1234_v58 = vadd.f32 %v1233_v32, %v7010_v43  ;;  %v5703_v39 = vld [vmem:[%s9085_s5 + $0x1b4] sm:$0xf0] }
 0x1d9   :  { %v1767_v38 = vpop.f32.mrf.mxu2  ;;  %v1856_v12 = vpop.f32.mrf.mxu3  ;;  %v4763_v32 = vor.u32 %v5703_v39, %v4762_v45  ;;  %v4586_v39 = vld [vmem:[%s9085_s5 + $0x48] sm:$0xf] }
 0x1da   :  { %v1301_v17 = vmax.f32 %v1145_v53, 0.0  ;;  %v1302_v18 = vmax.f32 %v1234_v58, 0.0  ;;  %v1768_v55 = vadd.f32 %v1767_v38, %v7237_v21 }
 0x1db   :  { %2188 = vmatpush.bf16.msrb.mxu3 %v4763_v32  ;;  %v4714_v32 = vld [vmem:[%s9085_s5 + $0x148] sm:$0xf] }
 0x1dc   :  { %v7337_v13 = vpack.c.bf16 %v1301_v17, %v1299_v7  ;;  %v7339_v26 = vpack.c.bf16 %v1302_v18, %v1300_v15  ;;  %v1857_v27 = vadd.f32 %v1856_v12, %v1768_v55  ;;  %v5667_v7 = vld [vmem:[%s9085_s5 + $0x94] sm:$0xf0]  ;;  %v4746_v15 = vld [vmem:[%s9085_s5 + $0x188] sm:$0xf] }
 0x1dd   :  { %v4619_v17 = vor.u32 %v5667_v7, %v4618_v10  ;;  %v5699_v18 = vld [vmem:[%s9085_s5 + $0x194] sm:$0xf0] }
 0x1de   :  { %v2481_v28 = vmax.f32 %v1857_v27, 0.0  ;;  %1809 = vmatmul.bf16.gmra.mxu2 %v7337_v13  ;;  %1898 = vmatmul.bf16.gmra.mxu3 %v7339_v26 }
 0x1df   :  { %v1147_v29 = vpop.f32.mrf.mxu0  ;;  %v1236_v2 = vpop.f32.mrf.mxu1  ;;  %2100 = vmatpush.bf16.msrb.mxu2 %v4619_v17 }
 0x1e0   :  { %v2587_v47 = vmax.f32 %v2586_v52, %v2481_v28  ;;  %v1148_v46 = vadd.f32 %v1147_v29, %v7008_v42  ;;  %v1237_v48 = vadd.f32 %v1236_v2, %v7010_v43  ;;  %v4747_v28 = vor.u32 %v5699_v18, %v4746_v15  ;;  %v5687_v18 = vld [vmem:[%s9085_s5 + $0x134] sm:$0xf0] }
 0x1e1   :  { %v1770_v30 = vpop.f32.mrf.mxu2  ;;  %v1859_v31 = vpop.f32.mrf.mxu3 }
 0x1e2   :  { %v1771_v33 = vadd.f32 %v1770_v30, %v7237_v21  ;;  %1952 = vmatmul.bf16.gmra.mxu0 %v7177_v61  ;;  %2041 = vmatmul.bf16.gmra.mxu1 %v7179_v4  ;;  %v1303_v38 = vmax.f32 %v1148_v46, 0.0  ;;  %v1304_v12 = vmax.f32 %v1237_v48, 0.0  ;;  %v4602_v30 = vld [vmem:[%s9085_s5 + $0x68] sm:$0xf] }
 0x1e3   :  { %2189 = vmatpush.bf16.msrb.mxu3 %v4747_v28 }
 0x1e4   :  { %v1860_v50 = vadd.f32 %v1859_v31, %v1771_v33  ;;  %v5663_v31 = vld [vmem:[%s9085_s5 + $0x74] sm:$0xf0]  ;;  %v4730_v33 = vld [vmem:[%s9085_s5 + $0x168] sm:$0xf] }
 0x1e5   :  { %v4731_v45 = vor.u32 %v5695_v36, %v4730_v33  ;;  %v5669_v36 = vld [vmem:[%s9085_s5 + $0xac] sm:$0xf] }
 0x1e6   :  { %v2485_v51 = vmax.f32 %v1860_v50, 0.0  ;;  %v4603_v50 = vor.u32 %v5663_v31, %v4602_v30 }
 0x1e7   :  { %v1149_v52 = vpop.f32.mrf.mxu0  ;;  %v1238_v53 = vpop.f32.mrf.mxu1  ;;  %2190 = vmatpush.bf16.msrb.mxu3 %v4731_v45  ;;  %v5701_v45 = vld [vmem:[%s9085_s5 + $0x1ac] sm:$0xf] }
 0x1e8   :  { %v2588_v58 = vmax.f32 %v2587_v47, %v2485_v51  ;;  %v1150_v59 = vadd.f32 %v1149_v52, %v7008_v42  ;;  %v1239_v0 = vadd.f32 %v1238_v53, %v7010_v43  ;;  %2101 = vmatpush.bf16.msrb.mxu2 %v4603_v50  ;;  %v5659_v51 = vld [vmem:[%s9085_s5 + $0x54] sm:$0xf0] }
 0x1e9   :  { %v1772_v14 = vpop.f32.mrf.mxu2  ;;  %v1861_v16 = vpop.f32.mrf.mxu3 }
 0x1ea   :  { %v1305_v55 = vmax.f32 %v1150_v59, 0.0  ;;  %v1306_v22 = vmax.f32 %v1239_v0, 0.0  ;;  %v1773_v27 = vadd.f32 %v1772_v14, %v7237_v21  ;;  %v4587_v59 = vor.u32 %v5659_v51, %v4586_v39  ;;  %v5655_v14 = vld [vmem:[%s9085_s5 + $0x34] sm:$0xf0]  ;;  %v4764_v39 = vld [vmem:[%s9085_s5 + $0x1b8] sm:$0xf0] }
 0x1eb   :  { %v4554_v51 = vld [vmem:[%s9085_s5 + $0x8] sm:$0xf] }
 0x1ec   :  { %v7375_v29 = vpack.c.bf16 %v1305_v55, %v1303_v38  ;;  %v7377_v2 = vpack.c.bf16 %v1306_v22, %v1304_v12  ;;  %v1862_v47 = vadd.f32 %v1861_v16, %v1773_v27  ;;  %2102 = vmatpush.bf16.msrb.mxu2 %v4587_v59  ;;  %v4570_v12 = vld [vmem:[%s9085_s5 + $0x28] sm:$0xf] }
 0x1ed   :  { %v4698_v16 = vld [vmem:[%s9085_s5 + $0x128] sm:$0xf]  ;;  %v4571_v17 = vor.u32 %v5655_v14, %v4570_v12 }
 0x1ee   :  { %v2489_v41 = vmax.f32 %v1862_v47, 0.0  ;;  %1814 = vmatmul.bf16.gmra.mxu2 %v7375_v29  ;;  %1903 = vmatmul.bf16.gmra.mxu3 %v7377_v2  ;;  %v4699_v22 = vor.u32 %v5687_v18, %v4698_v16 }
 0x1ef   :  { %v1152_v46 = vpop.f32.mrf.mxu0  ;;  %v1241_v48 = vpop.f32.mrf.mxu1 }
 0x1f0   :  { %v2589_v49 = vmax.f32 %v2588_v58, %v2489_v41  ;;  %v5691_v58 = vld [vmem:[%s9085_s5 + $0x154] sm:$0xf0]  ;;  %v1153_v7 = vadd.f32 %v1152_v46, %v7008_v42  ;;  %v1242_v15 = vadd.f32 %v1241_v48, %v7010_v43  ;;  %2103 = vmatpush.bf16.msrb.mxu2 %v4571_v17  ;;  %v4636_v41 = vld [vmem:[%s9085_s5 + $0xb8] sm:$0xf0] }
 0x1f1   :  { %v1775_v52 = vpop.f32.mrf.mxu2  ;;  %v1864_v53 = vpop.f32.mrf.mxu3  ;;  %v4715_v10 = vor.u32 %v5691_v58, %v4714_v32  ;;  %v5651_v32 = vld [vmem:[%s9085_s5 + $0x14] sm:$0xf0]  ;;  %v4767_v58 = vor.u32 %v5701_v45, %v4764_v39 }
 0x1f2   :  { %v1776_v0 = vadd.f32 %v1775_v52, %v7237_v21  ;;  %1957 = vmatmul.bf16.gmra.mxu0 %v7203_v34  ;;  %2046 = vmatmul.bf16.gmra.mxu1 %v7205_v35  ;;  %v1307_v27 = vmax.f32 %v1153_v7, 0.0  ;;  %v1308_v28 = vmax.f32 %v1242_v15, 0.0  ;;  %v4555_v7 = vor.u32 %v5651_v32, %v4554_v51 }
 0x1f3   :  { %2191 = vmatpush.bf16.msrb.mxu3 %v4715_v10  ;;  %v5683_v10 = vld [vmem:[%s9085_s5 + $0x114] sm:$0xf0]  ;;  %2366 = vmatpush.bf16.msra.mxu1 %v4767_v58 }
 0x1f4   :  { %v1865_v38 = vadd.f32 %v1864_v53, %v1776_v0  ;;  %v4682_v0 = vld [vmem:[%s9085_s5 + $0x108] sm:$0xf]  ;;  %2104 = vmatpush.bf16.msrb.mxu2 %v4555_v7 }
 0x1f5   :  { %v4683_v15 = vor.u32 %v5683_v10, %v4682_v0  ;;  %v7468_v10 = vperm.slane %v7228_v11, 1 }
 0x1f6   :  { %v2493_v55 = vmax.f32 %v1865_v38, 0.0 }
 0x1f7   :  { %v1154_v47 = vpop.f32.mrf.mxu0  ;;  %v1243_v30 = vpop.f32.mrf.mxu1  ;;  %2192 = vmatpush.bf16.msrb.mxu3 %v4699_v22 }
 0x1f8   :  { %v2590_v31 = vmax.f32 %v2589_v49, %v2493_v55  ;;  %v1155_v33 = vadd.f32 %v1154_v47, %v7008_v42  ;;  %v1244_v50 = vadd.f32 %v1243_v30, %v7010_v43  ;;  %v4639_v49 = vor.u32 %v5669_v36, %v4636_v41 }
 0x1f9   :  { %v1777_v46 = vpop.f32.mrf.mxu2  ;;  %v1866_v48 = vpop.f32.mrf.mxu3 }
 0x1fa   :  { %v1309_v52 = vmax.f32 %v1155_v33, 0.0  ;;  %v1310_v53 = vmax.f32 %v1244_v50, 0.0  ;;  %v1778_v59 = vadd.f32 %v1777_v46, %v7237_v21  ;;  %2277 = vmatpush.bf16.msra.mxu0 %v4639_v49 }
 0x1fb   :  { %2193 = vmatpush.bf16.msrb.mxu3 %v4683_v15 }
 0x1fc   :  { %v7449_v38 = vpack.c.bf16 %v1309_v52, %v1307_v27  ;;  %v7451_v12 = vpack.c.bf16 %v1310_v53, %v1308_v28  ;;  %v1867_v14 = vadd.f32 %v1866_v48, %v1778_v59 }
 0x1fe   :  { %v2497_v16 = vmax.f32 %v1867_v14, 0.0  ;;  %1819 = vmatmul.bf16.gmra.mxu2 %v7449_v38  ;;  %1908 = vmatmul.bf16.gmra.mxu3 %v7451_v12 }
 0x1ff   :  { %v1157_v17 = vpop.f32.mrf.mxu0  ;;  %v1246_v18 = vpop.f32.mrf.mxu1 }
 0x200   :  { %v2591_v55 = vmax.f32 %v2590_v31, %v2497_v16  ;;  %v1158_v28 = vadd.f32 %v1157_v17, %v7008_v42  ;;  %v1247_v33 = vadd.f32 %v1246_v18, %v7010_v43 }
 0x201   :  { %v1780_v22 = vpop.f32.mrf.mxu2  ;;  %v1869_v47 = vpop.f32.mrf.mxu3 }
 0x202   :  { %v1781_v30 = vadd.f32 %v1780_v22, %v7237_v21  ;;  %1962 = vmatmul.bf16.gmra.mxu0 %v7213_v56  ;;  %2051 = vmatmul.bf16.gmra.mxu1 %v7215_v57  ;;  %v1311_v48 = vmax.f32 %v1158_v28, 0.0  ;;  %v1312_v51 = vmax.f32 %v1247_v33, 0.0  ;;  %v5665_v33 = vld [vmem:[%s9085_s5 + $0x8c] sm:$0xf] }
 0x204   :  { %v1870_v27 = vadd.f32 %v1869_v47, %v1781_v30 }
 0x206   :  { %v2501_v50 = vmax.f32 %v1870_v27, 0.0 }
 0x207   :  { %v1159_v36 = vpop.f32.mrf.mxu0  ;;  %v1248_v41 = vpop.f32.mrf.mxu1 }
 0x208   :  { %v2592_v45 = vmax.f32 %v2591_v55, %v2501_v50  ;;  %v1160_v46 = vadd.f32 %v1159_v36, %v7008_v42  ;;  %v1249_v31 = vadd.f32 %v1248_v41, %v7010_v43  ;;  %v4620_v50 = vld [vmem:[%s9085_s5 + $0x98] sm:$0xf0]  ;;  %v5697_v36 = vld [vmem:[%s9085_s5 + $0x18c] sm:$0xf] }
 0x209   :  { %v1782_v49 = vpop.f32.mrf.mxu2  ;;  %v1871_v39 = vpop.f32.mrf.mxu3 }
 0x20a   :  { %v1313_v32 = vmax.f32 %v1160_v46, 0.0  ;;  %v1314_v52 = vmax.f32 %v1249_v31, 0.0  ;;  %v1783_v53 = vadd.f32 %v1782_v49, %v7237_v21  ;;  %v4623_v46 = vor.u32 %v5665_v33, %v4620_v50  ;;  %v4748_v31 = vld [vmem:[%s9085_s5 + $0x198] sm:$0xf0] }
 0x20c   :  { %v7463_v59 = vpack.c.bf16 %v1313_v32, %v1311_v48  ;;  %v7465_v58 = vpack.c.bf16 %v1314_v52, %v1312_v51  ;;  %v1872_v0 = vadd.f32 %v1871_v39, %v1783_v53  ;;  %v4751_v39 = vor.u32 %v5697_v36, %v4748_v31  ;;  %2278 = vmatpush.bf16.msra.mxu0 %v4623_v46 }
 0x20e   :  { %v2505_v7 = vmax.f32 %v1872_v0, 0.0  ;;  %1824 = vmatmul.bf16.gmra.mxu2 %v7463_v59  ;;  %1913 = vmatmul.bf16.gmra.mxu3 %v7465_v58 }
 0x20f   :  { %v1928_v42 = vpop.f32.mrf.mxu0  ;;  %v2017_v43 = vpop.f32.mrf.mxu1  ;;  %2367 = vmatpush.bf16.msra.mxu1 %v4751_v39 }
 0x210   :  { %v2593_v15 = vmax.f32 %v2592_v45, %v2505_v7  ;;  %v1929_v14 = vadd.f32 %v1928_v42, %v7468_v10 }
 0x211   :  { %v1785_v16 = vpop.f32.mrf.mxu2  ;;  %v1874_v17 = vpop.f32.mrf.mxu3 }
 0x212   :  { %v2018_v18 = vadd.f32 %v2017_v43, %v1929_v14  ;;  %v1786_v55 = vadd.f32 %v1785_v16, %v7237_v21  ;;  %1967 = vmatmul.bf16.gmra.mxu0 %v7230_v19  ;;  %2056 = vmatmul.bf16.gmra.mxu1 %v7232_v20 }
 0x214   :  { %v1875_v11 = vadd.f32 %v1874_v17, %v1786_v55  ;;  %v2454_v51 = vmax.f32 %v2018_v18, 0.0 }
 0x216   :  { %v2509_v22 = vmax.f32 %v1875_v11, 0.0 }
 0x217   :  { %v1930_v47 = vpop.f32.mrf.mxu0  ;;  %v2019_v30 = vpop.f32.mrf.mxu1 }
 0x218   :  { %v2594_v27 = vmax.f32 %v2593_v15, %v2509_v22  ;;  %v1931_v28 = vadd.f32 %v1930_v47, %v7468_v10 }
 0x219   :  { %v1787_v41 = vpop.f32.mrf.mxu2  ;;  %v1876_v45 = vpop.f32.mrf.mxu3 }
 0x21a   :  { %v2020_v48 = vadd.f32 %v2019_v30, %v1931_v28  ;;  %v1788_v49 = vadd.f32 %v1787_v41, %v7237_v21 }
 0x21c   :  { %v2458_v32 = vmax.f32 %v2020_v48, 0.0  ;;  %v1877_v52 = vadd.f32 %v1876_v45, %v1788_v49 }
 0x21e   :  { %v2602_v53 = vmax.f32 %v2454_v51, %v2458_v32  ;;  %v2513_v0 = vmax.f32 %v1877_v52, 0.0  ;;  %2105 = vmatmul.bf16.vlgmr.msrb.gmra.mxu2 %v7036_v23  ;;  %2194 = vmatmul.bf16.vlgmr.msrb.gmra.mxu3 %v7038_v24 }
 0x21f   :  { %v1933_v7 = vpop.f32.mrf.mxu0  ;;  %v2022_v42 = vpop.f32.mrf.mxu1 }
 0x220   :  { %v7492_v43 = vmax.f32 %v2594_v27, %v2513_v0  ;;  %v1934_v15 = vadd.f32 %v1933_v7, %v7468_v10 }
 0x221   :  { %v1790_v14 = vpop.f32.mrf.mxu2  ;;  %v1879_v16 = vpop.f32.mrf.mxu3 }
 0x222   :  { %v2023_v17 = vadd.f32 %v2022_v42, %v1934_v15  ;;  %v1791_v18 = vadd.f32 %v1790_v14, %v7237_v21  ;;  %1972 = vmatmul.bf16.gmra.mxu0 %v7247_v44  ;;  %2061 = vmatmul.bf16.gmra.mxu1 %v7249_v54 }
 0x224   :  { %v2462_v55 = vmax.f32 %v2023_v17, 0.0  ;;  %v1880_v11 = vadd.f32 %v1879_v16, %v1791_v18 }
 0x226   :  { %v2603_v22 = vmax.f32 %v2602_v53, %v2462_v55  ;;  %v2517_v46 = vmax.f32 %v1880_v11, 0.0 }
 0x227   :  { %v1935_v47 = vpop.f32.mrf.mxu0  ;;  %v2024_v30 = vpop.f32.mrf.mxu1 }
 0x228   :  { %v1936_v28 = vadd.f32 %v1935_v47, %v7468_v10  ;;  %v4604_v47 = vld [vmem:[%s9085_s5 + $0x78] sm:$0xf0] }
 0x229   :  { %v1792_v27 = vpop.f32.mrf.mxu2  ;;  %v1881_v33 = vpop.f32.mrf.mxu3 }
 0x22a   :  { %v2025_v50 = vadd.f32 %v2024_v30, %v1936_v28  ;;  %v1793_v36 = vadd.f32 %v1792_v27, %v7237_v21  ;;  %v5693_v30 = vld [vmem:[%s9085_s5 + $0x16c] sm:$0xf] }
 0x22c   :  { %v2466_v41 = vmax.f32 %v2025_v50, 0.0  ;;  %v1882_v45 = vadd.f32 %v1881_v33, %v1793_v36  ;;  %v4732_v50 = vld [vmem:[%s9085_s5 + $0x178] sm:$0xf0] }
 0x22e   :  { %v2604_v31 = vmax.f32 %v2603_v22, %v2466_v41  ;;  %v2521_v48 = vmax.f32 %v1882_v45, 0.0  ;;  %2110 = vmatmul.bf16.gmra.mxu2 %v7059_v8  ;;  %2199 = vmatmul.bf16.gmra.mxu3 %v7061_v9  ;;  %v5661_v22 = vld [vmem:[%s9085_s5 + $0x6c] sm:$0xf]  ;;  %v4735_v45 = vor.u32 %v5693_v30, %v4732_v50 }
 0x22f   :  { %v1938_v49 = vpop.f32.mrf.mxu0  ;;  %v2027_v39 = vpop.f32.mrf.mxu1  ;;  %v4607_v33 = vor.u32 %v5661_v22, %v4604_v47 }
 0x230   :  { %v2665_v51 = vmax.f32 %v2517_v46, %v2521_v48  ;;  %v1939_v32 = vadd.f32 %v1938_v49, %v7468_v10  ;;  %2368 = vmatpush.bf16.msra.mxu1 %v4735_v45 }
 0x231   :  { %v1795_v52 = vpop.f32.mrf.mxu2  ;;  %v1884_v53 = vpop.f32.mrf.mxu3  ;;  %2279 = vmatpush.bf16.msra.mxu0 %v4607_v33 }
 0x232   :  { %v2028_v0 = vadd.f32 %v2027_v39, %v1939_v32  ;;  %v1796_v7 = vadd.f32 %v1795_v52, %v7237_v21  ;;  %1977 = vmatmul.bf16.gmra.mxu0 %v7285_v40  ;;  %2066 = vmatmul.bf16.gmra.mxu1 %v7287_v37 }
 0x234   :  { %v2470_v42 = vmax.f32 %v2028_v0, 0.0  ;;  %v1885_v15 = vadd.f32 %v1884_v53, %v1796_v7 }
 0x236   :  { %v2605_v14 = vmax.f32 %v2604_v31, %v2470_v42  ;;  %v2525_v16 = vmax.f32 %v1885_v15, 0.0 }
 0x237   :  { %v1940_v17 = vpop.f32.mrf.mxu0  ;;  %v2029_v18 = vpop.f32.mrf.mxu1 }
 0x238   :  { %v2666_v55 = vmax.f32 %v2665_v51, %v2525_v16  ;;  %v1941_v11 = vadd.f32 %v1940_v17, %v7468_v10 }
 0x239   :  { %v1797_v28 = vpop.f32.mrf.mxu2  ;;  %v1886_v27 = vpop.f32.mrf.mxu3 }
 0x23a   :  { %v2030_v36 = vadd.f32 %v2029_v18, %v1941_v11  ;;  %v1798_v41 = vadd.f32 %v1797_v28, %v7237_v21 }
 0x23c   :  { %v2474_v46 = vmax.f32 %v2030_v36, 0.0  ;;  %v1887_v31 = vadd.f32 %v1886_v27, %v1798_v41 }
 0x23e   :  { %v2606_v48 = vmax.f32 %v2605_v14, %v2474_v46  ;;  %v2529_v49 = vmax.f32 %v1887_v31, 0.0  ;;  %2115 = vmatmul.bf16.gmra.mxu2 %v7093_v5  ;;  %2204 = vmatmul.bf16.gmra.mxu3 %v7095_v6 }
 0x23f   :  { %v1943_v39 = vpop.f32.mrf.mxu0  ;;  %v2032_v51 = vpop.f32.mrf.mxu1 }
 0x240   :  { %v2667_v32 = vmax.f32 %v2666_v55, %v2529_v49  ;;  %v1944_v52 = vadd.f32 %v1943_v39, %v7468_v10 }
 0x241   :  { %v1800_v53 = vpop.f32.mrf.mxu2  ;;  %v1889_v0 = vpop.f32.mrf.mxu3 }
 0x242   :  { %v2033_v7 = vadd.f32 %v2032_v51, %v1944_v52  ;;  %v1801_v42 = vadd.f32 %v1800_v53, %v7237_v21  ;;  %1982 = vmatmul.bf16.gmra.mxu0 %v7299_v63  ;;  %2071 = vmatmul.bf16.gmra.mxu1 %v7301_v25 }
 0x244   :  { %v2478_v15 = vmax.f32 %v2033_v7, 0.0  ;;  %v1890_v14 = vadd.f32 %v1889_v0, %v1801_v42 }
 0x246   :  { %v2607_v16 = vmax.f32 %v2606_v48, %v2478_v15  ;;  %v2533_v17 = vmax.f32 %v1890_v14, 0.0 }
 0x247   :  { %v1945_v18 = vpop.f32.mrf.mxu0  ;;  %v2034_v11 = vpop.f32.mrf.mxu1 }
 0x248   :  { %v2668_v22 = vmax.f32 %v2667_v32, %v2533_v17  ;;  %v1946_v55 = vadd.f32 %v1945_v18, %v7468_v10  ;;  %v5657_v17 = vld [vmem:[%s9085_s5 + $0x4c] sm:$0xf]  ;;  %v4588_v18 = vld [vmem:[%s9085_s5 + $0x58] sm:$0xf0] }
 0x249   :  { %v1802_v47 = vpop.f32.mrf.mxu2  ;;  %v1891_v30 = vpop.f32.mrf.mxu3 }
 0x24a   :  { %v2035_v28 = vadd.f32 %v2034_v11, %v1946_v55  ;;  %v1803_v27 = vadd.f32 %v1802_v47, %v7237_v21  ;;  %v5689_v11 = vld [vmem:[%s9085_s5 + $0x14c] sm:$0xf]  ;;  %v4591_v47 = vor.u32 %v5657_v17, %v4588_v18 }
 0x24b   :  { %v5653_v18 = vld [vmem:[%s9085_s5 + $0x2c] sm:$0xf] }
 0x24c   :  { %v2482_v33 = vmax.f32 %v2035_v28, 0.0  ;;  %v1892_v50 = vadd.f32 %v1891_v30, %v1803_v27  ;;  %v4716_v30 = vld [vmem:[%s9085_s5 + $0x158] sm:$0xf0]  ;;  %2280 = vmatpush.bf16.msra.mxu0 %v4591_v47 }
 0x24e   :  { %v2608_v36 = vmax.f32 %v2607_v16, %v2482_v33  ;;  %v2537_v41 = vmax.f32 %v1892_v50, 0.0  ;;  %2120 = vmatmul.bf16.gmra.mxu2 %v7111_v60  ;;  %2209 = vmatmul.bf16.gmra.mxu3 %v7113_v3  ;;  %v4719_v33 = vor.u32 %v5689_v11, %v4716_v30  ;;  %v4572_v11 = vld [vmem:[%s9085_s5 + $0x38] sm:$0xf0] }
 0x24f   :  { %v1948_v45 = vpop.f32.mrf.mxu0  ;;  %v2037_v46 = vpop.f32.mrf.mxu1  ;;  %v4575_v30 = vor.u32 %v5653_v18, %v4572_v11 }
 0x250   :  { %v2669_v31 = vmax.f32 %v2668_v22, %v2537_v41  ;;  %v1949_v48 = vadd.f32 %v1948_v45, %v7468_v10  ;;  %2369 = vmatpush.bf16.msra.mxu1 %v4719_v33 }
 0x251   :  { %v1805_v49 = vpop.f32.mrf.mxu2  ;;  %v1894_v39 = vpop.f32.mrf.mxu3  ;;  %2281 = vmatpush.bf16.msra.mxu0 %v4575_v30 }
 0x252   :  { %v2038_v51 = vadd.f32 %v2037_v46, %v1949_v48  ;;  %v1806_v32 = vadd.f32 %v1805_v49, %v7237_v21  ;;  %1987 = vmatmul.bf16.gmra.mxu0 %v7337_v13  ;;  %2076 = vmatmul.bf16.gmra.mxu1 %v7339_v26 }
 0x254   :  { %v2486_v52 = vmax.f32 %v2038_v51, 0.0  ;;  %v1895_v53 = vadd.f32 %v1894_v39, %v1806_v32 }
 0x256   :  { %v2609_v0 = vmax.f32 %v2608_v36, %v2486_v52  ;;  %v2541_v7 = vmax.f32 %v1895_v53, 0.0 }
 0x257   :  { %v1950_v42 = vpop.f32.mrf.mxu0  ;;  %v2039_v15 = vpop.f32.mrf.mxu1 }
 0x258   :  { %v2670_v14 = vmax.f32 %v2669_v31, %v2541_v7  ;;  %v1951_v16 = vadd.f32 %v1950_v42, %v7468_v10 }
 0x259   :  { %v1807_v22 = vpop.f32.mrf.mxu2  ;;  %v1896_v55 = vpop.f32.mrf.mxu3 }
 0x25a   :  { %v2040_v28 = vadd.f32 %v2039_v15, %v1951_v16  ;;  %v1808_v27 = vadd.f32 %v1807_v22, %v7237_v21  ;;  %v5685_v22 = vld [vmem:[%s9085_s5 + $0x12c] sm:$0xf] }
 0x25c   :  { %v2490_v50 = vmax.f32 %v2040_v28, 0.0  ;;  %v1897_v36 = vadd.f32 %v1896_v55, %v1808_v27  ;;  %v4700_v28 = vld [vmem:[%s9085_s5 + $0x138] sm:$0xf0] }
 0x25e   :  { %v2610_v41 = vmax.f32 %v2609_v0, %v2490_v50  ;;  %v2545_v45 = vmax.f32 %v1897_v36, 0.0  ;;  %2125 = vmatmul.bf16.gmra.mxu2 %v7145_v62  ;;  %2214 = vmatmul.bf16.gmra.mxu3 %v7147_v1  ;;  %v4703_v50 = vor.u32 %v5685_v22, %v4700_v28 }
 0x25f   :  { %v1953_v46 = vpop.f32.mrf.mxu0  ;;  %v2042_v31 = vpop.f32.mrf.mxu1 }
 0x260   :  { %v2671_v48 = vmax.f32 %v2670_v14, %v2545_v45  ;;  %v1954_v49 = vadd.f32 %v1953_v46, %v7468_v10  ;;  %2370 = vmatpush.bf16.msra.mxu1 %v4703_v50  ;;  %v5649_v45 = vld [vmem:[%s9085_s5 + $0xc] sm:$0xf]  ;;  %v4556_v46 = vld [vmem:[%s9085_s5 + $0x18] sm:$0xf0] }
 0x261   :  { %v1810_v39 = vpop.f32.mrf.mxu2  ;;  %v1899_v51 = vpop.f32.mrf.mxu3 }
 0x262   :  { %v2043_v32 = vadd.f32 %v2042_v31, %v1954_v49  ;;  %v1811_v52 = vadd.f32 %v1810_v39, %v7237_v21  ;;  %1992 = vmatmul.bf16.gmra.mxu0 %v7375_v29  ;;  %2081 = vmatmul.bf16.gmra.mxu1 %v7377_v2  ;;  %v4559_v31 = vor.u32 %v5649_v45, %v4556_v46  ;;  %v4684_v49 = vld [vmem:[%s9085_s5 + $0x118] sm:$0xf0] }
 0x264   :  { %v2494_v53 = vmax.f32 %v2043_v32, 0.0  ;;  %v1900_v0 = vadd.f32 %v1899_v51, %v1811_v52  ;;  %2282 = vmatpush.bf16.msra.mxu0 %v4559_v31 }
 0x266   :  { %v2611_v7 = vmax.f32 %v2610_v41, %v2494_v53  ;;  %v2549_v42 = vmax.f32 %v1900_v0, 0.0 }
 0x267   :  { %v1955_v15 = vpop.f32.mrf.mxu0  ;;  %v2044_v16 = vpop.f32.mrf.mxu1 }
 0x268   :  { %v2672_v17 = vmax.f32 %v2671_v48, %v2549_v42  ;;  %v1956_v14 = vadd.f32 %v1955_v15, %v7468_v10  ;;  %v5681_v48 = vld [vmem:[%s9085_s5 + $0x10c] sm:$0xf] }
 0x269   :  { %v1812_v55 = vpop.f32.mrf.mxu2  ;;  %v1901_v47 = vpop.f32.mrf.mxu3  ;;  %v4687_v32 = vor.u32 %v5681_v48, %v4684_v49 }
 0x26a   :  { %v2045_v27 = vadd.f32 %v2044_v16, %v1956_v14  ;;  %v1813_v33 = vadd.f32 %v1812_v55, %v7237_v21 }
 0x26b   :  { %2371 = vmatpush.bf16.msra.mxu1 %v4687_v32 }
 0x26c   :  { %v2498_v36 = vmax.f32 %v2045_v27, 0.0  ;;  %v1902_v41 = vadd.f32 %v1901_v47, %v1813_v33 }
 0x26e   :  { %v2612_v39 = vmax.f32 %v2611_v7, %v2498_v36  ;;  %v2553_v51 = vmax.f32 %v1902_v41, 0.0  ;;  %2130 = vmatmul.bf16.gmra.mxu2 %v7177_v61  ;;  %2219 = vmatmul.bf16.gmra.mxu3 %v7179_v4 }
 0x26f   :  { %v1958_v52 = vpop.f32.mrf.mxu0  ;;  %v2047_v53 = vpop.f32.mrf.mxu1 }
 0x270   :  { %v2673_v0 = vmax.f32 %v2672_v17, %v2553_v51  ;;  %v1959_v42 = vadd.f32 %v1958_v52, %v7468_v10 }
 0x271   :  { %v1815_v15 = vpop.f32.mrf.mxu2  ;;  %v1904_v16 = vpop.f32.mrf.mxu3 }
 0x272   :  { %v2048_v14 = vadd.f32 %v2047_v53, %v1959_v42  ;;  %v1816_v18 = vadd.f32 %v1815_v15, %v7237_v21  ;;  %1997 = vmatmul.bf16.gmra.mxu0 %v7449_v38  ;;  %2086 = vmatmul.bf16.gmra.mxu1 %v7451_v12 }
 0x274   :  { %v2502_v7 = vmax.f32 %v2048_v14, 0.0  ;;  %v1905_v11 = vadd.f32 %v1904_v16, %v1816_v18  ;;  %v2596_v18 = vrot.slane %v7492_v43, 4 }
 0x276   :  { %v2613_v22 = vmax.f32 %v2612_v39, %v2502_v7  ;;  %v2557_v55 = vmax.f32 %v1905_v11, 0.0 }
 0x277   :  { %v1960_v47 = vpop.f32.mrf.mxu0  ;;  %v2049_v30 = vpop.f32.mrf.mxu1 }
 0x278   :  { %v2674_v28 = vmax.f32 %v2673_v0, %v2557_v55  ;;  %v1961_v17 = vadd.f32 %v1960_v47, %v7468_v10 }
 0x279   :  { %v1817_v27 = vpop.f32.mrf.mxu2  ;;  %v1906_v33 = vpop.f32.mrf.mxu3 }
 0x27a   :  { %v2050_v50 = vadd.f32 %v2049_v30, %v1961_v17  ;;  %v1818_v36 = vadd.f32 %v1817_v27, %v7237_v21  ;;  %v2597_v27 = vmax.f32 %v7492_v43, %v2596_v18 }
 0x27c   :  { %v2506_v41 = vmax.f32 %v2050_v50, 0.0  ;;  %v1907_v45 = vadd.f32 %v1906_v33, %v1818_v36 }
 0x27e   :  { %v2614_v46 = vmax.f32 %v2613_v22, %v2506_v41  ;;  %v2561_v31 = vmax.f32 %v1907_v45, 0.0  ;;  %2135 = vmatmul.bf16.gmra.mxu2 %v7203_v34  ;;  %2224 = vmatmul.bf16.gmra.mxu3 %v7205_v35  ;;  %v2598_v45 = vrot.slane %v2597_v27, 2 }
 0x27f   :  { %v1963_v48 = vpop.f32.mrf.mxu0  ;;  %v2052_v49 = vpop.f32.mrf.mxu1 }
 0x280   :  { %v2675_v39 = vmax.f32 %v2674_v28, %v2561_v31  ;;  %v1964_v51 = vadd.f32 %v1963_v48, %v7468_v10 }
 0x281   :  { %v1820_v32 = vpop.f32.mrf.mxu2  ;;  %v1909_v52 = vpop.f32.mrf.mxu3 }
 0x282   :  { %v2053_v53 = vadd.f32 %v2052_v49, %v1964_v51  ;;  %v1821_v0 = vadd.f32 %v1820_v32, %v7237_v21  ;;  %2002 = vmatmul.bf16.gmra.mxu0 %v7463_v59  ;;  %2091 = vmatmul.bf16.gmra.mxu1 %v7465_v58 }
 0x284   :  { %v2510_v42 = vmax.f32 %v2053_v53, 0.0  ;;  %v1910_v15 = vadd.f32 %v1909_v52, %v1821_v0  ;;  %v2599_v0 = vmax.f32 %v2597_v27, %v2598_v45 }
 0x286   :  { %v2615_v16 = vmax.f32 %v2614_v46, %v2510_v42  ;;  %v2565_v14 = vmax.f32 %v1910_v15, 0.0  ;;  %v2600_v18 = vrot.slane %v2599_v0, 1 }
 0x287   :  { %v1965_v7 = vpop.f32.mrf.mxu0  ;;  %v2054_v11 = vpop.f32.mrf.mxu1 }
 0x288   :  { %v2676_v22 = vmax.f32 %v2675_v39, %v2565_v14  ;;  %v1966_v55 = vadd.f32 %v1965_v7, %v7468_v10 }
 0x289   :  { %v1822_v47 = vpop.f32.mrf.mxu2  ;;  %v1911_v30 = vpop.f32.mrf.mxu3 }
 0x28a   :  { %v2055_v28 = vadd.f32 %v2054_v11, %v1966_v55  ;;  %v1823_v17 = vadd.f32 %v1822_v47, %v7237_v21 }
 0x28c   :  { %v2514_v33 = vmax.f32 %v2055_v28, 0.0  ;;  %v1912_v50 = vadd.f32 %v1911_v30, %v1823_v17 }
 0x28e   :  { %v2616_v36 = vmax.f32 %v2615_v16, %v2514_v33  ;;  %v2569_v41 = vmax.f32 %v1912_v50, 0.0  ;;  %2140 = vmatmul.bf16.gmra.mxu2 %v7213_v56  ;;  %2229 = vmatmul.bf16.gmra.mxu3 %v7215_v57  ;;  %v2601_v50 = vmax.f32 %v2599_v0, %v2600_v18 }
 0x28f   :  { %v1968_v46 = vpop.f32.mrf.mxu0  ;;  %v2057_v31 = vpop.f32.mrf.mxu1 }
 0x290   :  { %v2617_v48 = vrot.slane %v2616_v36, 4  ;;  %v2677_v49 = vmax.f32 %v2676_v22, %v2569_v41  ;;  %v1969_v39 = vadd.f32 %v1968_v46, %v7468_v10 }
 0x291   :  { %v1825_v51 = vpop.f32.mrf.mxu2  ;;  %v1914_v32 = vpop.f32.mrf.mxu3 }
 0x292   :  { %v2618_v52 = vmax.f32 %v2616_v36, %v2617_v48  ;;  %v2058_v53 = vadd.f32 %v2057_v31, %v1969_v39  ;;  %v1826_v43 = vadd.f32 %v1825_v51, %v7237_v21  ;;  %2283 = vmatmul.bf16.vlgmr.msra.gmra.mxu0 %v7036_v23  ;;  %2372 = vmatmul.bf16.vlgmr.msra.gmra.mxu1 %v7038_v24  ;;  %v7614_v48 = vld [vmem:[%s9086_s6] sm:$0xf] }
 0x294   :  { %v2619_v42 = vrot.slane %v2618_v52, 2  ;;  %v1915_v15 = vadd.f32 %v1914_v32, %v1826_v43  ;;  %v2518_v27 = vmax.f32 %v2058_v53, 0.0 }
 0x296   :  { %v2620_v16 = vmax.f32 %v2618_v52, %v2619_v42  ;;  %v2573_v14 = vmax.f32 %v1915_v15, 0.0 }
 0x297   :  { %v1970_v7 = vpop.f32.mrf.mxu0  ;;  %v2059_v11 = vpop.f32.mrf.mxu1 }
 0x298   :  { %v2621_v22 = vrot.slane %v2620_v16, 1  ;;  %v2678_v55 = vmax.f32 %v2677_v49, %v2573_v14  ;;  %v1971_v47 = vadd.f32 %v1970_v7, %v7468_v10 }
 0x299   :  { %v1827_v30 = vpop.f32.mrf.mxu2  ;;  %v1916_v28 = vpop.f32.mrf.mxu3 }
 0x29a   :  { %v2622_v17 = vmax.f32 %v2620_v16, %v2621_v22  ;;  %v2060_v33 = vadd.f32 %v2059_v11, %v1971_v47  ;;  %v1828_v23 = vadd.f32 %v1827_v30, %v7237_v21  ;;  %v7617_v21 = vperm.slane %v7614_v48, 2 }
 0x29c   :  { %v2758_v24 = vrot.slane %v2622_v17, 6  ;;  %v2522_v36 = vmax.f32 %v2060_v33, 0.0  ;;  %v1917_v41 = vadd.f32 %v1916_v28, %v1828_v23 }
 0x29e   :  { %v7607_v45 = vsel %vm2764_vm0, %v2601_v50, %v2758_v24  ;;  %v2686_v46 = vmax.f32 %v2518_v27, %v2522_v36  ;;  %v2577_v31 = vmax.f32 %v1917_v41, 0.0  ;;  %2145 = vmatmul.bf16.gmra.mxu2 %v7230_v19  ;;  %2234 = vmatmul.bf16.gmra.mxu3 %v7232_v20 }
 0x29f   :  { %v1973_v49 = vpop.f32.mrf.mxu0  ;;  %v2062_v39 = vpop.f32.mrf.mxu1 }
 0x2a0   :  { %v7619_v51 = vmax.f32 %v2678_v55, %v2577_v31  ;;  %v1974_v32 = vadd.f32 %v1973_v49, %v7468_v10 }
 0x2a1   :  { %v2106_v52 = vpop.f32.mrf.mxu2  ;;  %v2195_v53 = vpop.f32.mrf.mxu3 }
 0x2a2   :  { %v2063_v43 = vadd.f32 %v2062_v39, %v1974_v32  ;;  %v2107_v0 = vadd.f32 %v2106_v52, %v7617_v21  ;;  %2288 = vmatmul.bf16.gmra.mxu0 %v7059_v8  ;;  %2377 = vmatmul.bf16.gmra.mxu1 %v7061_v9 }
 0x2a4   :  { %v2526_v42 = vmax.f32 %v2063_v43, 0.0  ;;  %v2196_v15 = vadd.f32 %v2195_v53, %v2107_v0 }
 0x2a6   :  { %v2687_v16 = vmax.f32 %v2686_v46, %v2526_v42  ;;  %v2455_v17 = vmax.f32 %v2196_v15, 0.0 }
 0x2a7   :  { %v1975_v14 = vpop.f32.mrf.mxu0  ;;  %v2064_v18 = vpop.f32.mrf.mxu1 }
 0x2a8   :  { %v1976_v7 = vadd.f32 %v1975_v14, %v7468_v10 }
 0x2a9   :  { %v2108_v11 = vpop.f32.mrf.mxu2  ;;  %v2197_v22 = vpop.f32.mrf.mxu3 }
 0x2aa   :  { %v2065_v55 = vadd.f32 %v2064_v18, %v1976_v7  ;;  %v2109_v47 = vadd.f32 %v2108_v11, %v7617_v21 }
 0x2ac   :  { %v2530_v30 = vmax.f32 %v2065_v55, 0.0  ;;  %v2198_v28 = vadd.f32 %v2197_v22, %v2109_v47 }
 0x2ae   :  { %v2688_v33 = vmax.f32 %v2687_v16, %v2530_v30  ;;  %v2459_v23 = vmax.f32 %v2198_v28, 0.0  ;;  %2150 = vmatmul.bf16.gmra.mxu2 %v7247_v44  ;;  %2239 = vmatmul.bf16.gmra.mxu3 %v7249_v54 }
 0x2af   :  { %v1978_v8 = vpop.f32.mrf.mxu0  ;;  %v2067_v9 = vpop.f32.mrf.mxu1 }
 0x2b0   :  { %v2623_v50 = vmax.f32 %v2455_v17, %v2459_v23  ;;  %v1979_v24 = vadd.f32 %v1978_v8, %v7468_v10 }
 0x2b1   :  { %v2111_v27 = vpop.f32.mrf.mxu2  ;;  %v2200_v36 = vpop.f32.mrf.mxu3 }
 0x2b2   :  { %v2068_v41 = vadd.f32 %v2067_v9, %v1979_v24  ;;  %v2112_v46 = vadd.f32 %v2111_v27, %v7617_v21  ;;  %2293 = vmatmul.bf16.gmra.mxu0 %v7093_v5  ;;  %2382 = vmatmul.bf16.gmra.mxu1 %v7095_v6 }
 0x2b4   :  { %v2534_v31 = vmax.f32 %v2068_v41, 0.0  ;;  %v2201_v49 = vadd.f32 %v2200_v36, %v2112_v46 }
 0x2b6   :  { %v2689_v39 = vmax.f32 %v2688_v33, %v2534_v31  ;;  %v2463_v32 = vmax.f32 %v2201_v49, 0.0 }
 0x2b7   :  { %v1980_v52 = vpop.f32.mrf.mxu0  ;;  %v2069_v53 = vpop.f32.mrf.mxu1 }
 0x2b8   :  { %v2624_v43 = vmax.f32 %v2623_v50, %v2463_v32  ;;  %v1981_v0 = vadd.f32 %v1980_v52, %v7468_v10 }
 0x2b9   :  { %v2113_v42 = vpop.f32.mrf.mxu2  ;;  %v2202_v15 = vpop.f32.mrf.mxu3 }
 0x2ba   :  { %v2070_v16 = vadd.f32 %v2069_v53, %v1981_v0  ;;  %v2114_v14 = vadd.f32 %v2113_v42, %v7617_v21 }
 0x2bc   :  { %v2538_v18 = vmax.f32 %v2070_v16, 0.0  ;;  %v2203_v7 = vadd.f32 %v2202_v15, %v2114_v14 }
 0x2be   :  { %v2690_v11 = vmax.f32 %v2689_v39, %v2538_v18  ;;  %v2467_v5 = vmax.f32 %v2203_v7, 0.0  ;;  %2155 = vmatmul.bf16.gmra.mxu2 %v7285_v40  ;;  %2244 = vmatmul.bf16.gmra.mxu3 %v7287_v37 }
 0x2bf   :  { %v1983_v6 = vpop.f32.mrf.mxu0  ;;  %v2072_v22 = vpop.f32.mrf.mxu1 }
 0x2c0   :  { %v2625_v55 = vmax.f32 %v2624_v43, %v2467_v5  ;;  %v1984_v47 = vadd.f32 %v1983_v6, %v7468_v10 }
 0x2c1   :  { %v2116_v30 = vpop.f32.mrf.mxu2  ;;  %v2205_v28 = vpop.f32.mrf.mxu3 }
 0x2c2   :  { %v2073_v17 = vadd.f32 %v2072_v22, %v1984_v47  ;;  %v2117_v33 = vadd.f32 %v2116_v30, %v7617_v21  ;;  %2298 = vmatmul.bf16.gmra.mxu0 %v7111_v60  ;;  %2387 = vmatmul.bf16.gmra.mxu1 %v7113_v3 }
 0x2c4   :  { %v2542_v23 = vmax.f32 %v2073_v17, 0.0  ;;  %v2206_v8 = vadd.f32 %v2205_v28, %v2117_v33 }
 0x2c6   :  { %v2691_v9 = vmax.f32 %v2690_v11, %v2542_v23  ;;  %v2471_v50 = vmax.f32 %v2206_v8, 0.0 }
 0x2c7   :  { %v1985_v24 = vpop.f32.mrf.mxu0  ;;  %v2074_v27 = vpop.f32.mrf.mxu1 }
 0x2c8   :  { %v2626_v36 = vmax.f32 %v2625_v55, %v2471_v50  ;;  %v1986_v41 = vadd.f32 %v1985_v24, %v7468_v10 }
 0x2c9   :  { %v2118_v46 = vpop.f32.mrf.mxu2  ;;  %v2207_v31 = vpop.f32.mrf.mxu3 }
 0x2ca   :  { %v2075_v49 = vadd.f32 %v2074_v27, %v1986_v41  ;;  %v2119_v39 = vadd.f32 %v2118_v46, %v7617_v21 }
 0x2cc   :  { %v2546_v32 = vmax.f32 %v2075_v49, 0.0  ;;  %v2208_v52 = vadd.f32 %v2207_v31, %v2119_v39 }
 0x2ce   :  { %v2692_v53 = vmax.f32 %v2691_v9, %v2546_v32  ;;  %v2475_v60 = vmax.f32 %v2208_v52, 0.0  ;;  %2160 = vmatmul.bf16.gmra.mxu2 %v7299_v63  ;;  %2249 = vmatmul.bf16.gmra.mxu3 %v7301_v25 }
 0x2cf   :  { %v1988_v3 = vpop.f32.mrf.mxu0  ;;  %v2077_v43 = vpop.f32.mrf.mxu1 }
 0x2d0   :  { %v2627_v0 = vmax.f32 %v2626_v36, %v2475_v60  ;;  %v1989_v42 = vadd.f32 %v1988_v3, %v7468_v10 }
 0x2d1   :  { %v2121_v15 = vpop.f32.mrf.mxu2  ;;  %v2210_v16 = vpop.f32.mrf.mxu3 }
 0x2d2   :  { %v2078_v14 = vadd.f32 %v2077_v43, %v1989_v42  ;;  %v2122_v18 = vadd.f32 %v2121_v15, %v7617_v21  ;;  %2303 = vmatmul.bf16.gmra.mxu0 %v7145_v62  ;;  %2392 = vmatmul.bf16.gmra.mxu1 %v7147_v1 }
 0x2d4   :  { %v2550_v7 = vmax.f32 %v2078_v14, 0.0  ;;  %v2211_v11 = vadd.f32 %v2210_v16, %v2122_v18 }
 0x2d6   :  { %v2693_v5 = vmax.f32 %v2692_v53, %v2550_v7  ;;  %v2479_v6 = vmax.f32 %v2211_v11, 0.0 }
 0x2d7   :  { %v1990_v22 = vpop.f32.mrf.mxu0  ;;  %v2079_v55 = vpop.f32.mrf.mxu1 }
 0x2d8   :  { %v2628_v47 = vmax.f32 %v2627_v0, %v2479_v6  ;;  %v1991_v30 = vadd.f32 %v1990_v22, %v7468_v10 }
 0x2d9   :  { %v2123_v28 = vpop.f32.mrf.mxu2  ;;  %v2212_v17 = vpop.f32.mrf.mxu3 }
 0x2da   :  { %v2080_v33 = vadd.f32 %v2079_v55, %v1991_v30  ;;  %v2124_v23 = vadd.f32 %v2123_v28, %v7617_v21 }
 0x2dc   :  { %v2554_v8 = vmax.f32 %v2080_v33, 0.0  ;;  %v2213_v9 = vadd.f32 %v2212_v17, %v2124_v23 }
 0x2de   :  { %v2694_v50 = vmax.f32 %v2693_v5, %v2554_v8  ;;  %v2483_v62 = vmax.f32 %v2213_v9, 0.0  ;;  %2165 = vmatmul.bf16.gmra.mxu2 %v7337_v13  ;;  %2254 = vmatmul.bf16.gmra.mxu3 %v7339_v26 }
 0x2df   :  { %v1993_v1 = vpop.f32.mrf.mxu0  ;;  %v2082_v24 = vpop.f32.mrf.mxu1 }
 0x2e0   :  { %v2629_v27 = vmax.f32 %v2628_v47, %v2483_v62  ;;  %v1994_v36 = vadd.f32 %v1993_v1, %v7468_v10 }
 0x2e1   :  { %v2126_v41 = vpop.f32.mrf.mxu2  ;;  %v2215_v46 = vpop.f32.mrf.mxu3 }
 0x2e2   :  { %v2083_v31 = vadd.f32 %v2082_v24, %v1994_v36  ;;  %v2127_v49 = vadd.f32 %v2126_v41, %v7617_v21  ;;  %2308 = vmatmul.bf16.gmra.mxu0 %v7177_v61  ;;  %2397 = vmatmul.bf16.gmra.mxu1 %v7179_v4 }
 0x2e4   :  { %v2558_v39 = vmax.f32 %v2083_v31, 0.0  ;;  %v2216_v32 = vadd.f32 %v2215_v46, %v2127_v49 }
 0x2e6   :  { %v2695_v52 = vmax.f32 %v2694_v50, %v2558_v39  ;;  %v2487_v53 = vmax.f32 %v2216_v32, 0.0 }
 0x2e7   :  { %v1995_v60 = vpop.f32.mrf.mxu0  ;;  %v2084_v3 = vpop.f32.mrf.mxu1 }
 0x2e8   :  { %v2630_v43 = vmax.f32 %v2629_v27, %v2487_v53  ;;  %v1996_v0 = vadd.f32 %v1995_v60, %v7468_v10 }
 0x2e9   :  { %v2128_v42 = vpop.f32.mrf.mxu2  ;;  %v2217_v15 = vpop.f32.mrf.mxu3 }
 0x2ea   :  { %v2085_v16 = vadd.f32 %v2084_v3, %v1996_v0  ;;  %v2129_v14 = vadd.f32 %v2128_v42, %v7617_v21 }
 0x2ec   :  { %v2562_v18 = vmax.f32 %v2085_v16, 0.0  ;;  %v2218_v11 = vadd.f32 %v2217_v15, %v2129_v14 }
 0x2ee   :  { %v2696_v7 = vmax.f32 %v2695_v52, %v2562_v18  ;;  %2170 = vmatmul.bf16.gmra.mxu2 %v7375_v29  ;;  %2259 = vmatmul.bf16.gmra.mxu3 %v7377_v2  ;;  %v2491_v55 = vmax.f32 %v2218_v11, 0.0 }
 0x2ef   :  { %v1998_v61 = vpop.f32.mrf.mxu0  ;;  %v2087_v4 = vpop.f32.mrf.mxu1 }
 0x2f0   :  { %v1999_v5 = vadd.f32 %v1998_v61, %v7468_v10  ;;  %v2631_v33 = vmax.f32 %v2630_v43, %v2491_v55  ;;  %v7678_v55 = vperm.slane %v7614_v48, 3 }
 0x2f1   :  { %v2131_v6 = vpop.f32.mrf.mxu2  ;;  %v2220_v22 = vpop.f32.mrf.mxu3 }
 0x2f2   :  { %v2088_v47 = vadd.f32 %v2087_v4, %v1999_v5  ;;  %v2132_v30 = vadd.f32 %v2131_v6, %v7617_v21  ;;  %2313 = vmatmul.bf16.gmra.mxu0 %v7203_v34  ;;  %2402 = vmatmul.bf16.gmra.mxu1 %v7205_v35 }
 0x2f4   :  { %v2566_v28 = vmax.f32 %v2088_v47, 0.0  ;;  %v2221_v17 = vadd.f32 %v2220_v22, %v2132_v30 }
 0x2f6   :  { %v2697_v23 = vmax.f32 %v2696_v7, %v2566_v28  ;;  %v2495_v8 = vmax.f32 %v2221_v17, 0.0  ;;  %v2680_v7 = vrot.slane %v7619_v51, 4 }
 0x2f7   :  { %v2000_v9 = vpop.f32.mrf.mxu0  ;;  %v2089_v50 = vpop.f32.mrf.mxu1 }
 0x2f8   :  { %v2632_v62 = vmax.f32 %v2631_v33, %v2495_v8  ;;  %v2001_v1 = vadd.f32 %v2000_v9, %v7468_v10 }
 0x2f9   :  { %v2133_v24 = vpop.f32.mrf.mxu2  ;;  %v2222_v27 = vpop.f32.mrf.mxu3 }
 0x2fa   :  { %v2090_v36 = vadd.f32 %v2089_v50, %v2001_v1  ;;  %v2134_v41 = vadd.f32 %v2133_v24, %v7617_v21 }
 0x2fc   :  { %v2570_v46 = vmax.f32 %v2090_v36, 0.0  ;;  %v2223_v34 = vadd.f32 %v2222_v27, %v2134_v41 }
 0x2fe   :  { %v2698_v31 = vmax.f32 %v2697_v23, %v2570_v46  ;;  %2175 = vmatmul.bf16.gmra.mxu2 %v7449_v38  ;;  %2264 = vmatmul.bf16.gmra.mxu3 %v7451_v12  ;;  %v2499_v53 = vmax.f32 %v2223_v34, 0.0 }
 0x2ff   :  { %v2003_v35 = vpop.f32.mrf.mxu0  ;;  %v2092_v49 = vpop.f32.mrf.mxu1 }
 0x300   :  { %v2004_v39 = vadd.f32 %v2003_v35, %v7468_v10  ;;  %v2633_v42 = vmax.f32 %v2632_v62, %v2499_v53 }
 0x301   :  { %v2136_v32 = vpop.f32.mrf.mxu2  ;;  %v2225_v52 = vpop.f32.mrf.mxu3 }
 0x302   :  { %v2093_v60 = vadd.f32 %v2092_v49, %v2004_v39  ;;  %v2137_v3 = vadd.f32 %v2136_v32, %v7617_v21  ;;  %2318 = vmatmul.bf16.gmra.mxu0 %v7213_v56  ;;  %2407 = vmatmul.bf16.gmra.mxu1 %v7215_v57  ;;  %v2681_v56 = vmax.f32 %v7619_v51, %v2680_v7 }
 0x304   :  { %v2574_v43 = vmax.f32 %v2093_v60, 0.0  ;;  %v2226_v0 = vadd.f32 %v2225_v52, %v2137_v3 }
 0x306   :  { %v2699_v15 = vmax.f32 %v2698_v31, %v2574_v43  ;;  %v2503_v16 = vmax.f32 %v2226_v0, 0.0 }
 0x307   :  { %v2005_v14 = vpop.f32.mrf.mxu0  ;;  %v2094_v18 = vpop.f32.mrf.mxu1 }
 0x308   :  { %v2634_v11 = vmax.f32 %v2633_v42, %v2503_v16  ;;  %v2006_v61 = vadd.f32 %v2005_v14, %v7468_v10  ;;  %v2682_v10 = vrot.slane %v2681_v56, 2 }
 0x309   :  { %v2138_v4 = vpop.f32.mrf.mxu2  ;;  %v2227_v5 = vpop.f32.mrf.mxu3 }
 0x30a   :  { %v2095_v6 = vadd.f32 %v2094_v18, %v2006_v61  ;;  %v2139_v22 = vadd.f32 %v2138_v4, %v7617_v21  ;;  %v2683_v1 = vmax.f32 %v2681_v56, %v2682_v10 }
 0x30c   :  { %v2578_v57 = vmax.f32 %v2095_v6, 0.0  ;;  %v2228_v30 = vadd.f32 %v2227_v5, %v2139_v22  ;;  %v2684_v35 = vrot.slane %v2683_v1, 1 }
 0x30e   :  { %v2700_v47 = vmax.f32 %v2699_v15, %v2578_v57  ;;  %2180 = vmatmul.bf16.gmra.mxu2 %v7463_v59  ;;  %2269 = vmatmul.bf16.gmra.mxu3 %v7465_v58  ;;  %v2507_v51 = vmax.f32 %v2228_v30, 0.0  ;;  %v2685_v60 = vmax.f32 %v2683_v1, %v2684_v35 }
 0x30f   :  { %v2284_v28 = vpop.f32.mrf.mxu0  ;;  %v2373_v17 = vpop.f32.mrf.mxu1 }
 0x310   :  { %v2701_v33 = vrot.slane %v2700_v47, 4  ;;  %v2285_v23 = vadd.f32 %v2284_v28, %v7678_v55  ;;  %v2635_v41 = vmax.f32 %v2634_v11, %v2507_v51 }
 0x311   :  { %v2141_v8 = vpop.f32.mrf.mxu2  ;;  %v2230_v9 = vpop.f32.mrf.mxu3 }
 0x312   :  { %v2702_v50 = vmax.f32 %v2700_v47, %v2701_v33  ;;  %v2374_v62 = vadd.f32 %v2373_v17, %v2285_v23  ;;  %v2142_v48 = vadd.f32 %v2141_v8, %v7617_v21  ;;  %2323 = vmatmul.bf16.gmra.mxu0 %v7230_v19  ;;  %2412 = vmatmul.bf16.gmra.mxu1 %v7232_v20 }
 0x314   :  { %v2703_v24 = vrot.slane %v2702_v50, 2  ;;  %v2231_v27 = vadd.f32 %v2230_v9, %v2142_v48  ;;  %v2456_v43 = vmax.f32 %v2374_v62, 0.0 }
 0x316   :  { %v2704_v36 = vmax.f32 %v2702_v50, %v2703_v24  ;;  %v2511_v46 = vmax.f32 %v2231_v27, 0.0 }
 0x317   :  { %v2286_v31 = vpop.f32.mrf.mxu0  ;;  %v2375_v34 = vpop.f32.mrf.mxu1 }
 0x318   :  { %v2705_v49 = vrot.slane %v2704_v36, 1  ;;  %v7686_v39 = vmax.f32 %v2635_v41, %v2511_v46  ;;  %v2287_v32 = vadd.f32 %v2286_v31, %v7678_v55 }
 0x319   :  { %v7689_v52 = vpop.f32.mrf.mxu2  ;;  %v7691_v53 = vpop.f32.mrf.mxu3 }
 0x31a   :  { %v2706_v19 = vmax.f32 %v2704_v36, %v2705_v49  ;;  %v2376_v20 = vadd.f32 %v2375_v34, %v2287_v32 }
 0x31c   :  { %v2761_v3 = vrot.slane %v2706_v19, 6  ;;  %v2460_v0 = vmax.f32 %v2376_v20, 0.0 }
 0x31e   :  { %v7694_v42 = vsel %vm2764_vm0, %v2685_v60, %v2761_v3  ;;  %v2644_v15 = vmax.f32 %v2456_v43, %v2460_v0 }
 0x31f   :  { %v2289_v16 = vpop.f32.mrf.mxu0  ;;  %v2378_v14 = vpop.f32.mrf.mxu1 }
 0x320   :  { %v2290_v18 = vadd.f32 %v2289_v16, %v7678_v55 }
 0x321   :  { %v2146_v7 = vpop.f32.mrf.mxu2  ;;  %v2235_v11 = vpop.f32.mrf.mxu3 }
 0x322   :  { %v2379_v61 = vadd.f32 %v2378_v14, %v2290_v18  ;;  %v2147_v4 = vadd.f32 %v2146_v7, %v7617_v21  ;;  %2328 = vmatmul.bf16.gmra.mxu0 %v7247_v44  ;;  %2417 = vmatmul.bf16.gmra.mxu1 %v7249_v54 }
 0x324   :  { %v2464_v5 = vmax.f32 %v2379_v61, 0.0  ;;  %v2236_v6 = vadd.f32 %v2235_v11, %v2147_v4 }
 0x326   :  { %v2645_v22 = vmax.f32 %v2644_v15, %v2464_v5  ;;  %v2519_v24 = vmax.f32 %v2236_v6, 0.0 }
 0x327   :  { %v2291_v56 = vpop.f32.mrf.mxu0  ;;  %v2380_v57 = vpop.f32.mrf.mxu1 }
 0x328   :  { %v2292_v47 = vadd.f32 %v2291_v56, %v7678_v55 }
 0x329   :  { %v2148_v30 = vpop.f32.mrf.mxu2  ;;  %v2237_v28 = vpop.f32.mrf.mxu3 }
 0x32a   :  { %v2381_v17 = vadd.f32 %v2380_v57, %v2292_v47  ;;  %v2149_v10 = vadd.f32 %v2148_v30, %v7617_v21 }
 0x32c   :  { %v2468_v33 = vmax.f32 %v2381_v17, 0.0  ;;  %v2238_v8 = vadd.f32 %v2237_v28, %v2149_v10 }
 0x32e   :  { %v2646_v23 = vmax.f32 %v2645_v22, %v2468_v33  ;;  %v2523_v62 = vmax.f32 %v2238_v8, 0.0 }
 0x32f   :  { %v2294_v9 = vpop.f32.mrf.mxu0  ;;  %v2383_v50 = vpop.f32.mrf.mxu1 }
 0x330   :  { %v2295_v44 = vadd.f32 %v2294_v9, %v7678_v55  ;;  %v2707_v41 = vmax.f32 %v2519_v24, %v2523_v62 }
 0x331   :  { %v2151_v54 = vpop.f32.mrf.mxu2  ;;  %v2240_v51 = vpop.f32.mrf.mxu3 }
 0x332   :  { %v2384_v48 = vadd.f32 %v2383_v50, %v2295_v44  ;;  %v2152_v1 = vadd.f32 %v2151_v54, %v7617_v21  ;;  %2333 = vmatmul.bf16.gmra.mxu0 %v7285_v40  ;;  %2422 = vmatmul.bf16.gmra.mxu1 %v7287_v37  ;;  %v4914_v44 = vld [vmem:[%s9087_s7 + $0xe0] sm:$0xf]  ;;  %v5742_v54 = vld [vmem:[%s9087_s7 + $0xec] sm:$0xf0] }
 0x334   :  { %v2472_v27 = vmax.f32 %v2384_v48, 0.0  ;;  %v2241_v36 = vadd.f32 %v2240_v51, %v2152_v1  ;;  %v4915_v48 = vor.u32 %v5742_v54, %v4914_v44 }
 0x336   :  { %v2647_v46 = vmax.f32 %v2646_v23, %v2472_v27  ;;  %v2527_v31 = vmax.f32 %v2241_v36, 0.0  ;;  %3585 = vmatpush.bf16.msra.mxu2 %v4915_v48 }
 0x337   :  { %v2296_v34 = vpop.f32.mrf.mxu0  ;;  %v2385_v35 = vpop.f32.mrf.mxu1 }
 0x338   :  { %v2708_v49 = vmax.f32 %v2707_v41, %v2527_v31  ;;  %v2297_v32 = vadd.f32 %v2296_v34, %v7678_v55 }
 0x339   :  { %v2153_v19 = vpop.f32.mrf.mxu2  ;;  %v2242_v20 = vpop.f32.mrf.mxu3 }
 0x33a   :  { %v2386_v60 = vadd.f32 %v2385_v35, %v2297_v32  ;;  %v2154_v3 = vadd.f32 %v2153_v19, %v7617_v21 }
 0x33c   :  { %v2476_v43 = vmax.f32 %v2386_v60, 0.0  ;;  %v2243_v0 = vadd.f32 %v2242_v20, %v2154_v3 }
 0x33e   :  { %v2648_v40 = vmax.f32 %v2647_v46, %v2476_v43  ;;  %v2531_v18 = vmax.f32 %v2243_v0, 0.0 }
 0x33f   :  { %v2299_v37 = vpop.f32.mrf.mxu0  ;;  %v2388_v15 = vpop.f32.mrf.mxu1 }
 0x340   :  { %v2300_v16 = vadd.f32 %v2299_v37, %v7678_v55  ;;  %v2709_v6 = vmax.f32 %v2708_v49, %v2531_v18 }
 0x341   :  { %v2156_v14 = vpop.f32.mrf.mxu2  ;;  %v2245_v61 = vpop.f32.mrf.mxu3 }
 0x342   :  { %v2389_v7 = vadd.f32 %v2388_v15, %v2300_v16  ;;  %v2157_v11 = vadd.f32 %v2156_v14, %v7617_v21  ;;  %2338 = vmatmul.bf16.gmra.mxu0 %v7299_v63  ;;  %2427 = vmatmul.bf16.gmra.mxu1 %v7301_v25 }
 0x344   :  { %v2480_v4 = vmax.f32 %v2389_v7, 0.0  ;;  %v2246_v5 = vadd.f32 %v2245_v61, %v2157_v11 }
 0x346   :  { %v2649_v22 = vmax.f32 %v2648_v40, %v2480_v4  ;;  %v2535_v56 = vmax.f32 %v2246_v5, 0.0 }
 0x347   :  { %v2301_v57 = vpop.f32.mrf.mxu0  ;;  %v2390_v47 = vpop.f32.mrf.mxu1 }
 0x348   :  { %v7712_v30 = vmax.f32 %v2709_v6, %v2535_v56  ;;  %v2302_v28 = vadd.f32 %v2301_v57, %v7678_v55 }
 0x34a   :  { %v2391_v17 = vadd.f32 %v2390_v47, %v2302_v28 }
 0x34c   :  { %v2484_v10 = vmax.f32 %v2391_v17, 0.0 }
 0x34e   :  { %v2650_v33 = vmax.f32 %v2649_v22, %v2484_v10 }
 0x34f   :  { %v2304_v23 = vpop.f32.mrf.mxu0  ;;  %v2393_v8 = vpop.f32.mrf.mxu1 }
 0x350   :  { %v2305_v63 = vadd.f32 %v2304_v23, %v7678_v55 }
 0x352   :  { %v2394_v25 = vadd.f32 %v2393_v8, %v2305_v63  ;;  %2343 = vmatmul.bf16.gmra.mxu0 %v7337_v13  ;;  %2432 = vmatmul.bf16.gmra.mxu1 %v7339_v26  ;;  %v5042_v13 = vld [vmem:[%s9087_s7 + $0x1e0] sm:$0xf]  ;;  %v5774_v26 = vld [vmem:[%s9087_s7 + $0x1ec] sm:$0xf0] }
 0x353   :  { %v5043_v24 = vor.u32 %v5774_v26, %v5042_v13 }
 0x354   :  { %v2488_v9 = vmax.f32 %v2394_v25, 0.0 }
 0x355   :  { %3598 = vmatpush.bf16.msra.mxu3 %v5043_v24  ;;  %v7762_v24 = vpop.f32.mrf.mxu3 }
 0x356   :  { %v2651_v50 = vmax.f32 %v2650_v33, %v2488_v9 }
 0x357   :  { %v2306_v51 = vpop.f32.mrf.mxu0  ;;  %v2395_v62 = vpop.f32.mrf.mxu1 }
 0x358   :  { %v2307_v1 = vadd.f32 %v2306_v51, %v7678_v55  ;;  %v7759_v51 = vpop.f32.mrf.mxu2 }
 0x35a   :  { %v2396_v27 = vadd.f32 %v2395_v62, %v2307_v1 }
 0x35c   :  { %v2492_v46 = vmax.f32 %v2396_v27, 0.0 }
 0x35e   :  { %v2652_v35 = vmax.f32 %v2651_v50, %v2492_v46 }
 0x35f   :  { %v2309_v36 = vpop.f32.mrf.mxu0  ;;  %v2398_v41 = vpop.f32.mrf.mxu1 }
 0x360   :  { %v2310_v31 = vadd.f32 %v2309_v36, %v7678_v55 }
 0x362   :  { %v2399_v34 = vadd.f32 %v2398_v41, %v2310_v31  ;;  %2348 = vmatmul.bf16.gmra.mxu0 %v7375_v29  ;;  %2437 = vmatmul.bf16.gmra.mxu1 %v7377_v2  ;;  %v2144_v29 = vadd.f32 %v7689_v52, %v7617_v21  ;;  %v5738_v52 = vld [vmem:[%s9087_s7 + $0xcc] sm:$0xf0]  ;;  %v7764_v31 = vpop.f32.mrf.mxu2 }
 0x364   :  { %v2496_v49 = vmax.f32 %v2399_v34, 0.0  ;;  %v2233_v18 = vadd.f32 %v7691_v53, %v2144_v29  ;;  %v5026_v53 = vld [vmem:[%s9087_s7 + $0x1c0] sm:$0xf] }
 0x366   :  { %v2653_v32 = vmax.f32 %v2652_v35, %v2496_v49  ;;  %v2515_v4 = vmax.f32 %v2233_v18, 0.0  ;;  %v4882_v35 = vld [vmem:[%s9087_s7 + $0xa0] sm:$0xf]  ;;  %v5734_v49 = vld [vmem:[%s9087_s7 + $0xac] sm:$0xf0] }
 0x367   :  { %v2311_v19 = vpop.f32.mrf.mxu0  ;;  %v2400_v20 = vpop.f32.mrf.mxu1 }
 0x368   :  { %v2312_v60 = vadd.f32 %v2311_v19, %v7678_v55  ;;  %v2637_v6 = vmax.f32 %v7686_v39, %v2515_v4  ;;  %v5770_v39 = vld [vmem:[%s9087_s7 + $0x1cc] sm:$0xf0] }
 0x369   :  { %v5027_v28 = vor.u32 %v5770_v39, %v5026_v53 }
 0x36a   :  { %v2401_v3 = vadd.f32 %v2400_v20, %v2312_v60  ;;  %v2638_v10 = vrot.slane %v2637_v6, 4  ;;  %v4883_v60 = vor.u32 %v5734_v49, %v4882_v35 }
 0x36b   :  { %3599 = vmatpush.bf16.msra.mxu3 %v5027_v28 }
 0x36c   :  { %v2500_v0 = vmax.f32 %v2401_v3, 0.0  ;;  %v2639_v63 = vmax.f32 %v2637_v6, %v2638_v10  ;;  %v5010_v3 = vld [vmem:[%s9087_s7 + $0x1a0] sm:$0xf] }
 0x36e   :  { %v2654_v2 = vmax.f32 %v2653_v32, %v2500_v0  ;;  %v2640_v54 = vrot.slane %v2639_v63, 2 }
 0x36f   :  { %v2314_v43 = vpop.f32.mrf.mxu0  ;;  %v2403_v40 = vpop.f32.mrf.mxu1 }
 0x370   :  { %v2315_v37 = vadd.f32 %v2314_v43, %v7678_v55  ;;  %v5766_v43 = vld [vmem:[%s9087_s7 + $0x1ac] sm:$0xf0] }
 0x372   :  { %v2404_v15 = vadd.f32 %v2403_v40, %v2315_v37  ;;  %2353 = vmatmul.bf16.gmra.mxu0 %v7449_v38  ;;  %2442 = vmatmul.bf16.gmra.mxu1 %v7451_v12  ;;  %v4898_v12 = vld [vmem:[%s9087_s7 + $0xc0] sm:$0xf]  ;;  %v5011_v37 = vor.u32 %v5766_v43, %v5010_v3 }
 0x373   :  { %v4899_v47 = vor.u32 %v5738_v52, %v4898_v12  ;;  %v4850_v43 = vld [vmem:[%s9087_s7 + $0x60] sm:$0xf] }
 0x374   :  { %v2504_v16 = vmax.f32 %v2404_v15, 0.0  ;;  %3600 = vmatpush.bf16.msra.mxu3 %v5011_v37 }
 0x375   :  { %3586 = vmatpush.bf16.msra.mxu2 %v4899_v47 }
 0x376   :  { %v2655_v14 = vmax.f32 %v2654_v2, %v2504_v16  ;;  %v7779_v16 = vpop.f32.mrf.mxu3 }
 0x377   :  { %v2316_v7 = vpop.f32.mrf.mxu0  ;;  %v2405_v11 = vpop.f32.mrf.mxu1 }
 0x378   :  { %v2317_v61 = vadd.f32 %v2316_v7, %v7678_v55 }
 0x379   :  { %3587 = vmatpush.bf16.msra.mxu2 %v4883_v60 }
 0x37a   :  { %v2406_v5 = vadd.f32 %v2405_v11, %v2317_v61 }
 0x37c   :  { %v2508_v56 = vmax.f32 %v2406_v5, 0.0 }
 0x37e   :  { %v2656_v33 = vmax.f32 %v2655_v14, %v2508_v56  ;;  %v2252_v53 = vpop.f32.mrf.mxu3 }
 0x37f   :  { %v2319_v22 = vpop.f32.mrf.mxu0  ;;  %v2408_v38 = vpop.f32.mrf.mxu1 }
 0x380   :  { %v2320_v57 = vadd.f32 %v2319_v22, %v7678_v55  ;;  %v2163_v22 = vpop.f32.mrf.mxu2 }
 0x382   :  { %v2409_v17 = vadd.f32 %v2408_v38, %v2320_v57  ;;  %2358 = vmatmul.bf16.gmra.mxu0 %v7463_v59  ;;  %2447 = vmatmul.bf16.gmra.mxu1 %v7465_v58  ;;  %v2641_v59 = vmax.f32 %v2639_v63, %v2640_v54  ;;  %v4866_v54 = vld [vmem:[%s9087_s7 + $0x80] sm:$0xf] }
 0x384   :  { %v2512_v23 = vmax.f32 %v2409_v17, 0.0  ;;  %v2642_v41 = vrot.slane %v2641_v59, 1 }
 0x386   :  { %v2657_v8 = vmax.f32 %v2656_v33, %v2512_v23  ;;  %v2643_v32 = vmax.f32 %v2641_v59, %v2642_v41 }
 0x387   :  { %v2321_v25 = vpop.f32.mrf.mxu0  ;;  %v2410_v9 = vpop.f32.mrf.mxu1 }
 0x388   :  { %v2322_v50 = vadd.f32 %v2321_v25, %v7678_v55  ;;  %v2759_v2 = vrot.slane %v2643_v32, 4  ;;  %v2166_v28 = vpop.f32.mrf.mxu2 }
 0x38a   :  { %v2411_v44 = vadd.f32 %v2410_v9, %v2322_v50 }
 0x38c   :  { %v2516_v62 = vmax.f32 %v2411_v44, 0.0 }
 0x38e   :  { %v2658_v48 = vmax.f32 %v2657_v8, %v2516_v62  ;;  %v2255_v8 = vpop.f32.mrf.mxu3  ;;  %v5730_v62 = vld [vmem:[%s9087_s7 + $0x8c] sm:$0xf0] }
 0x38f   :  { %v2324_v1 = vpop.f32.mrf.mxu0  ;;  %v2413_v58 = vpop.f32.mrf.mxu1 }
 0x390   :  { %v2659_v13 = vrot.slane %v2658_v48, 4  ;;  %v2325_v26 = vadd.f32 %v2324_v1, %v7678_v55  ;;  %v2168_v9 = vpop.f32.mrf.mxu2 }
 0x392   :  { %v2660_v27 = vmax.f32 %v2658_v48, %v2659_v13  ;;  %v2414_v36 = vadd.f32 %v2413_v58, %v2325_v26  ;;  %v4994_v48 = vld [vmem:[%s9087_s7 + $0x180] sm:$0xf]  ;;  %v4867_v58 = vor.u32 %v5730_v62, %v4866_v54  ;;  %v5762_v13 = vld [vmem:[%s9087_s7 + $0x18c] sm:$0xf0] }
 0x393   :  { %v4995_v26 = vor.u32 %v5762_v13, %v4994_v48  ;;  %v4818_v48 = vld [vmem:[%s9087_s7 + $0x20] sm:$0xf] }
 0x394   :  { %v2661_v46 = vrot.slane %v2660_v27, 2  ;;  %v2520_v18 = vmax.f32 %v2414_v36, 0.0  ;;  %3588 = vmatpush.bf16.msra.mxu2 %v4867_v58  ;;  %v4946_v58 = vld [vmem:[%s9087_s7 + $0x120] sm:$0xf] }
 0x395   :  { %3601 = vmatpush.bf16.msra.mxu3 %v4995_v26 }
 0x396   :  { %v2662_v34 = vmax.f32 %v2660_v27, %v2661_v46  ;;  %v2257_v27 = vpop.f32.mrf.mxu3 }
 0x397   :  { %v2326_v19 = vpop.f32.mrf.mxu0  ;;  %v2415_v20 = vpop.f32.mrf.mxu1 }
 0x398   :  { %v2663_v40 = vrot.slane %v2662_v34, 1  ;;  %v2327_v0 = vadd.f32 %v2326_v19, %v7678_v55  ;;  %v2171_v36 = vpop.f32.mrf.mxu2 }
 0x39a   :  { %v2664_v15 = vmax.f32 %v2662_v34, %v2663_v40  ;;  %v2416_v29 = vadd.f32 %v2415_v20, %v2327_v0  ;;  %v5726_v40 = vld [vmem:[%s9087_s7 + $0x6c] sm:$0xf0]  ;;  %v4978_v0 = vld [vmem:[%s9087_s7 + $0x160] sm:$0xf] }
 0x39c   :  { %v2760_v14 = vrot.slane %v2664_v15, 2  ;;  %v2524_v7 = vmax.f32 %v2416_v29, 0.0  ;;  %v4851_v29 = vor.u32 %v5726_v40, %v4850_v43 }
 0x39e   :  { %v2767_v11 = vsel %vm2766_vm1, %v2759_v2, %v2760_v14  ;;  %v2728_v61 = vmax.f32 %v2520_v18, %v2524_v7  ;;  %v2260_v34 = vpop.f32.mrf.mxu3  ;;  %v5758_v2 = vld [vmem:[%s9087_s7 + $0x16c] sm:$0xf0]  ;;  %3589 = vmatpush.bf16.msra.mxu2 %v4851_v29 }
 0x39f   :  { %v7784_v4 = vsel %vm2768_vm2, %v7607_v45, %v2767_v11  ;;  %v2329_v5 = vpop.f32.mrf.mxu0  ;;  %v2418_v6 = vpop.f32.mrf.mxu1  ;;  %v4979_v18 = vor.u32 %v5758_v2, %v4978_v0  ;;  %v2159_v11 = vadd.f32 %v7759_v51, %v7617_v21  ;;  %v2169_v51 = vadd.f32 %v2168_v9, %v7617_v21 }
 0x3a0   :  { %v2330_v38 = vadd.f32 %v2329_v5, %v7678_v55  ;;  %v2173_v32 = vpop.f32.mrf.mxu2 }
 0x3a1   :  { %3602 = vmatpush.bf16.msra.mxu3 %v4979_v18  ;;  %v2174_v62 = vadd.f32 %v2173_v32, %v7617_v21 }
 0x3a2   :  { %v2419_v12 = vadd.f32 %v2418_v6, %v2330_v38  ;;  %v2162_v6 = vadd.f32 %v7764_v31, %v7617_v21  ;;  %v2248_v38 = vadd.f32 %v7762_v24, %v2159_v11  ;;  %v4834_v24 = vld [vmem:[%s9087_s7 + $0x40] sm:$0xf] }
 0x3a4   :  { %v2528_v52 = vmax.f32 %v2419_v12, 0.0  ;;  %v2164_v12 = vadd.f32 %v2163_v22, %v7617_v21  ;;  %v4962_v22 = vld [vmem:[%s9087_s7 + $0x140] sm:$0xf] }
 0x3a6   :  { %v2729_v56 = vmax.f32 %v2728_v61, %v2528_v52  ;;  %v2262_v19 = vpop.f32.mrf.mxu3 }
 0x3a7   :  { %v2331_v57 = vpop.f32.mrf.mxu0  ;;  %v2420_v47 = vpop.f32.mrf.mxu1  ;;  %v2263_v2 = vadd.f32 %v2262_v19, %v2174_v62  ;;  %v4930_v19 = vld [vmem:[%s9087_s7 + $0x100] sm:$0xf] }
 0x3a8   :  { %v2332_v39 = vadd.f32 %v2331_v57, %v7678_v55  ;;  %v2176_v3 = vpop.f32.mrf.mxu2  ;;  %v2167_v57 = vadd.f32 %v2166_v28, %v7617_v21 }
 0x3a9   :  { %v2177_v26 = vadd.f32 %v2176_v3, %v7617_v21 }
 0x3aa   :  { %v2421_v17 = vadd.f32 %v2420_v47, %v2332_v39  ;;  %v2539_v47 = vmax.f32 %v2248_v38, 0.0  ;;  %v2253_v39 = vadd.f32 %v2252_v53, %v2164_v12  ;;  %v2256_v28 = vadd.f32 %v2255_v8, %v2167_v57  ;;  %v5718_v8 = vld [vmem:[%s9087_s7 + $0x2c] sm:$0xf0] }
 0x3ab   :  { %v5714_v38 = vld [vmem:[%s9087_s7 + $0xc] sm:$0xf0] }
 0x3ac   :  { %v2532_v10 = vmax.f32 %v2421_v17, 0.0  ;;  %v2172_v17 = vadd.f32 %v2171_v36, %v7617_v21  ;;  %v2547_v9 = vmax.f32 %v2253_v39, 0.0  ;;  %v2551_v13 = vmax.f32 %v2256_v28, 0.0  ;;  %v5746_v57 = vld [vmem:[%s9087_s7 + $0x10c] sm:$0xf0] }
 0x3ad   :  { %v4819_v36 = vor.u32 %v5718_v8, %v4818_v48  ;;  %v5806_v39 = vld [vmem:[%s9087_s7 + $0x2ec] sm:$0xf0] }
 0x3ae   :  { %v2730_v33 = vmax.f32 %v2729_v56, %v2532_v10  ;;  %v2265_v14 = vpop.f32.mrf.mxu3  ;;  %v2251_v56 = vadd.f32 %v7779_v16, %v2162_v6  ;;  %v5722_v16 = vld [vmem:[%s9087_s7 + $0x4c] sm:$0xf0]  ;;  %v2261_v54 = vadd.f32 %v2260_v34, %v2172_v17 }
 0x3af   :  { %v2334_v23 = vpop.f32.mrf.mxu0  ;;  %v2423_v45 = vpop.f32.mrf.mxu1  ;;  %v5750_v34 = vld [vmem:[%s9087_s7 + $0x12c] sm:$0xf0]  ;;  %v2266_v12 = vadd.f32 %v2265_v14, %v2177_v26 }
 0x3b0   :  { %v2335_v63 = vadd.f32 %v2334_v23, %v7678_v55  ;;  %v2178_v7 = vpop.f32.mrf.mxu2  ;;  %v2543_v53 = vmax.f32 %v2251_v56, 0.0  ;;  %v4835_v23 = vor.u32 %v5722_v16, %v4834_v24  ;;  %v4947_v43 = vor.u32 %v5750_v34, %v4946_v58  ;;  %v5298_v16 = vld [vmem:[%s9087_s7 + $0x3e0] sm:$0xf] }
 0x3b1   :  { %v2559_v29 = vmax.f32 %v2261_v54, 0.0  ;;  %v2179_v18 = vadd.f32 %v2178_v7, %v7617_v21  ;;  %v4931_v24 = vor.u32 %v5746_v57, %v4930_v19 }
 0x3b2   :  { %v2424_v25 = vadd.f32 %v2423_v45, %v2335_v63  ;;  %v5754_v45 = vld [vmem:[%s9087_s7 + $0x14c] sm:$0xf0]  ;;  %3590 = vmatpush.bf16.msra.mxu2 %v4835_v23 }
 0x3b3   :  { %v4963_v63 = vor.u32 %v5754_v45, %v4962_v22  ;;  %v5838_v22 = vld [vmem:[%s9087_s7 + $0x3ec] sm:$0xf0]  ;;  %v2563_v45 = vmax.f32 %v2263_v2, 0.0 }
 0x3b4   :  { %v2536_v50 = vmax.f32 %v2424_v25, 0.0  ;;  %v2711_v25 = vmax.f32 %v7712_v30, %v2539_v47  ;;  %v5170_v47 = vld [vmem:[%s9087_s7 + $0x2e0] sm:$0xf]  ;;  %v5299_v23 = vor.u32 %v5838_v22, %v5298_v16 }
 0x3b5   :  { %3603 = vmatpush.bf16.msra.mxu3 %v4963_v63  ;;  %v5171_v14 = vor.u32 %v5806_v39, %v5170_v47  ;;  %v5122_v47 = vld [vmem:[%s9087_s7 + $0x280] sm:$0xf] }
 0x3b6   :  { %v7789_v44 = vmax.f32 %v2730_v33, %v2536_v50  ;;  %v7845_v52 = vpop.f32.mrf.mxu3  ;;  %v2258_v50 = vadd.f32 %v2257_v27, %v2169_v51  ;;  %v2712_v30 = vmax.f32 %v2711_v25, %v2543_v53  ;;  %3591 = vmatpush.bf16.msra.mxu2 %v4819_v36 }
 0x3b7   :  { %v7800_v59 = vpop.f32.mrf.mxu0  ;;  %v7802_v1 = vpop.f32.mrf.mxu1 }
 0x3b8   :  { %v2181_v10 = vpop.f32.mrf.mxu2  ;;  %v2337_v32 = vadd.f32 %v7800_v59, %v7678_v55  ;;  %v2713_v40 = vmax.f32 %v2712_v30, %v2547_v9  ;;  %v2555_v0 = vmax.f32 %v2258_v50, 0.0  ;;  %v4802_v59 = vld [vmem:[%s9087_s7] sm:$0xf]  ;;  %v5802_v50 = vld [vmem:[%s9087_s7 + $0x2cc] sm:$0xf0] }
 0x3b9   :  { %3604 = vmatpush.bf16.msra.mxu3 %v4947_v43  ;;  %v4803_v56 = vor.u32 %v5714_v38, %v4802_v59  ;;  %v2182_v51 = vadd.f32 %v2181_v10, %v7617_v21  ;;  %v2268_v10 = vadd.f32 %v7845_v52, %v2179_v18  ;;  %v2567_v52 = vmax.f32 %v2266_v12, 0.0 }
 0x3ba   :  { %v2714_v7 = vmax.f32 %v2713_v40, %v2551_v13  ;;  %v2426_v17 = vadd.f32 %v7802_v1, %v2337_v32 }
 0x3bb   :  { %3592 = vmatpush.bf16.msra.mxu2 %v4803_v56  ;;  %v2571_v26 = vmax.f32 %v2268_v10, 0.0 }
 0x3bc   :  { %v2715_v53 = vmax.f32 %v2714_v7, %v2555_v0  ;;  %v5266_v0 = vld [vmem:[%s9087_s7 + $0x3a0] sm:$0xf] }
 0x3bd   :  { %3605 = vmatpush.bf16.msra.mxu3 %v4931_v24 }
 0x3be   :  { %v2270_v27 = vpop.f32.mrf.mxu3  ;;  %v2716_v25 = vmax.f32 %v2715_v53, %v2559_v29 }
 0x3bf   :  { %v7807_v41 = vpop.f32.mrf.mxu0  ;;  %v7809_v46 = vpop.f32.mrf.mxu1  ;;  %3611 = vmatpush.bf16.msrb.mxu2 %v5171_v14  ;;  %v2271_v54 = vadd.f32 %v2270_v27, %v2182_v51 }
 0x3c0   :  { %v2340_v3 = vadd.f32 %v7807_v41, %v7678_v55  ;;  %v2183_v41 = vpop.f32.mrf.mxu2  ;;  %v2717_v13 = vmax.f32 %v2716_v25, %v2563_v45 }
 0x3c1   :  { %v2184_v1 = vadd.f32 %v2183_v41, %v7617_v21  ;;  %3624 = vmatpush.bf16.msrb.mxu3 %v5299_v23  ;;  %v2540_v21 = vmax.f32 %v2426_v17, 0.0  ;;  %v2575_v2 = vmax.f32 %v2271_v54, 0.0 }
 0x3c2   :  { %v2429_v63 = vadd.f32 %v7809_v46, %v2340_v3  ;;  %v5282_v46 = vld [vmem:[%s9087_s7 + $0x3c0] sm:$0xf]  ;;  %v2718_v29 = vmax.f32 %v2717_v13, %v2567_v52 }
 0x3c3   :  { %v5218_v13 = vld [vmem:[%s9087_s7 + $0x340] sm:$0xf] }
 0x3c4   :  { %v2544_v36 = vmax.f32 %v2429_v63, 0.0  ;;  %v2719_v7 = vmax.f32 %v2718_v29, %v2571_v26  ;;  %v5106_v63 = vld [vmem:[%s9087_s7 + $0x260] sm:$0xf]  ;;  %v5818_v26 = vld [vmem:[%s9087_s7 + $0x34c] sm:$0xf0] }
 0x3c6   :  { %v2272_v48 = vpop.f32.mrf.mxu3 }
 0x3c7   :  { %v7811_v35 = vpop.f32.mrf.mxu0  ;;  %v7813_v49 = vpop.f32.mrf.mxu1  ;;  %v2273_v27 = vadd.f32 %v2272_v48, %v2184_v1  ;;  %v5090_v48 = vld [vmem:[%s9087_s7 + $0x240] sm:$0xf] }
 0x3c8   :  { %v2342_v28 = vadd.f32 %v7811_v35, %v7678_v55  ;;  %v5154_v35 = vld [vmem:[%s9087_s7 + $0x2c0] sm:$0xf] }
 0x3c9   :  { %v5155_v62 = vor.u32 %v5802_v50, %v5154_v35  ;;  %v2579_v12 = vmax.f32 %v2273_v27, 0.0  ;;  %v5234_v35 = vld [vmem:[%s9087_s7 + $0x360] sm:$0xf] }
 0x3ca   :  { %v2431_v8 = vadd.f32 %v7813_v49, %v2342_v28  ;;  %v5138_v49 = vld [vmem:[%s9087_s7 + $0x2a0] sm:$0xf] }
 0x3cb   :  { %3612 = vmatpush.bf16.msrb.mxu2 %v5155_v62 }
 0x3cc   :  { %v2548_v3 = vmax.f32 %v2431_v8, 0.0  ;;  %v5786_v8 = vld [vmem:[%s9087_s7 + $0x24c] sm:$0xf0] }
 0x3cf   :  { %v7815_v20 = vpop.f32.mrf.mxu0  ;;  %v7817_v60 = vpop.f32.mrf.mxu1 }
 0x3d0   :  { %v2345_v9 = vadd.f32 %v7815_v20, %v7678_v55  ;;  %v5834_v20 = vld [vmem:[%s9087_s7 + $0x3cc] sm:$0xf0] }
 0x3d1   :  { %v5283_v30 = vor.u32 %v5834_v20, %v5282_v46 }
 0x3d2   :  { %v2434_v43 = vadd.f32 %v7817_v60, %v2345_v9  ;;  %v2732_v60 = vmax.f32 %v7789_v44, %v2540_v21 }
 0x3d3   :  { %3625 = vmatpush.bf16.msrb.mxu3 %v5283_v30  ;;  %v5091_v30 = vor.u32 %v5786_v8, %v5090_v48 }
 0x3d4   :  { %v2733_v41 = vmax.f32 %v2732_v60, %v2544_v36  ;;  %v2552_v56 = vmax.f32 %v2434_v43, 0.0  ;;  %v5219_v36 = vor.u32 %v5818_v26, %v5218_v13  ;;  %v5202_v43 = vld [vmem:[%s9087_s7 + $0x320] sm:$0xf]  ;;  %v5764_v13 = vld [vmem:[%s9087_s7 + $0x1a4] sm:$0xf] }
 0x3d5   :  { %v5012_v26 = vld [vmem:[%s9087_s7 + $0x1b0] sm:$0xf0] }
 0x3d6   :  { %v2734_v17 = vmax.f32 %v2733_v41, %v2548_v3  ;;  %v5778_v3 = vld [vmem:[%s9087_s7 + $0x20c] sm:$0xf0] }
 0x3d7   :  { %v7828_v37 = vpop.f32.mrf.mxu0  ;;  %v7830_v15 = vpop.f32.mrf.mxu1 }
 0x3d8   :  { %v2347_v58 = vadd.f32 %v7828_v37, %v7678_v55  ;;  %v5798_v37 = vld [vmem:[%s9087_s7 + $0x2ac] sm:$0xf0]  ;;  %v2735_v23 = vmax.f32 %v2734_v17, %v2552_v56 }
 0x3d9   :  { %v5139_v18 = vor.u32 %v5798_v37, %v5138_v49 }
 0x3da   :  { %v2436_v59 = vadd.f32 %v7830_v15, %v2347_v58  ;;  %v5794_v15 = vld [vmem:[%s9087_s7 + $0x28c] sm:$0xf0] }
 0x3db   :  { %3613 = vmatpush.bf16.msrb.mxu2 %v5139_v18  ;;  %v5123_v51 = vor.u32 %v5794_v15, %v5122_v47 }
 0x3dc   :  { %v2556_v24 = vmax.f32 %v2436_v59, 0.0 }
 0x3de   :  { %v2736_v50 = vmax.f32 %v2735_v23, %v2556_v24 }
 0x3df   :  { %v7837_v61 = vpop.f32.mrf.mxu0  ;;  %v7839_v5 = vpop.f32.mrf.mxu1  ;;  %3614 = vmatpush.bf16.msrb.mxu2 %v5123_v51 }
 0x3e0   :  { %v2350_v40 = vadd.f32 %v7837_v61, %v7678_v55  ;;  %v5830_v61 = vld [vmem:[%s9087_s7 + $0x3ac] sm:$0xf0] }
 0x3e1   :  { %v5267_v19 = vor.u32 %v5830_v61, %v5266_v0  ;;  %v5814_v0 = vld [vmem:[%s9087_s7 + $0x32c] sm:$0xf0]  ;;  %v5058_v61 = vld [vmem:[%s9087_s7 + $0x200] sm:$0xf] }
 0x3e2   :  { %v2439_v57 = vadd.f32 %v7839_v5, %v2350_v40  ;;  %v5250_v5 = vld [vmem:[%s9087_s7 + $0x380] sm:$0xf]  ;;  %v5203_v18 = vor.u32 %v5814_v0, %v5202_v43  ;;  %v5760_v43 = vld [vmem:[%s9087_s7 + $0x184] sm:$0xf] }
 0x3e3   :  { %3626 = vmatpush.bf16.msrb.mxu3 %v5267_v19  ;;  %v5810_v19 = vld [vmem:[%s9087_s7 + $0x30c] sm:$0xf0]  ;;  %v5724_v0 = vld [vmem:[%s9087_s7 + $0x64] sm:$0xf] }
 0x3e4   :  { %v2560_v45 = vmax.f32 %v2439_v57, 0.0 }
 0x3e6   :  { %v2737_v62 = vmax.f32 %v2736_v50, %v2560_v45 }
 0x3e7   :  { %v7851_v33 = vpop.f32.mrf.mxu0  ;;  %v7853_v31 = vpop.f32.mrf.mxu1 }
 0x3e8   :  { %v2352_v38 = vadd.f32 %v7851_v33, %v7678_v55  ;;  %v2720_v33 = vmax.f32 %v2719_v7, %v2575_v2 }
 0x3ea   :  { %v2441_v14 = vadd.f32 %v7853_v31, %v2352_v38  ;;  %v2721_v22 = vmax.f32 %v2720_v33, %v2579_v12  ;;  %v5790_v31 = vld [vmem:[%s9087_s7 + $0x26c] sm:$0xf0]  ;;  %v5186_v38 = vld [vmem:[%s9087_s7 + $0x300] sm:$0xf]  ;;  %v5059_v12 = vor.u32 %v5778_v3, %v5058_v61 }
 0x3eb   :  { %v5107_v9 = vor.u32 %v5790_v31, %v5106_v63  ;;  %v5740_v31 = vld [vmem:[%s9087_s7 + $0xe4] sm:$0xf] }
 0x3ec   :  { %v2564_v52 = vmax.f32 %v2441_v14, 0.0  ;;  %v2722_v21 = vrot.slane %v2721_v22, 4 }
 0x3ed   :  { %3615 = vmatpush.bf16.msrb.mxu2 %v5107_v9  ;;  %v5736_v9 = vld [vmem:[%s9087_s7 + $0xc4] sm:$0xf] }
 0x3ee   :  { %v2738_v27 = vmax.f32 %v2737_v62, %v2564_v52  ;;  %v2723_v40 = vmax.f32 %v2721_v22, %v2722_v21  ;;  %v4900_v62 = vld [vmem:[%s9087_s7 + $0xd0] sm:$0xf0] }
 0x3ef   :  { %v7887_v11 = vpop.f32.mrf.mxu0  ;;  %v7889_v6 = vpop.f32.mrf.mxu1  ;;  %v4903_v48 = vor.u32 %v5736_v9, %v4900_v62 }
 0x3f0   :  { %v2355_v44 = vadd.f32 %v7887_v11, %v7678_v55  ;;  %v5826_v11 = vld [vmem:[%s9087_s7 + $0x38c] sm:$0xf0]  ;;  %v2724_v41 = vrot.slane %v2723_v40, 2 }
 0x3f1   :  { %v5251_v16 = vor.u32 %v5826_v11, %v5250_v5  ;;  %3616 = vmatpush.bf16.msrb.mxu2 %v5091_v30  ;;  %v4884_v30 = vld [vmem:[%s9087_s7 + $0xb0] sm:$0xf0] }
 0x3f2   :  { %v2444_v10 = vadd.f32 %v7889_v6, %v2355_v44  ;;  %v5822_v6 = vld [vmem:[%s9087_s7 + $0x36c] sm:$0xf0]  ;;  %v5187_v44 = vor.u32 %v5810_v19, %v5186_v38  ;;  %v2725_v15 = vmax.f32 %v2723_v40, %v2724_v41  ;;  %v4996_v40 = vld [vmem:[%s9087_s7 + $0x190] sm:$0xf0]  ;;  %v5720_v38 = vld [vmem:[%s9087_s7 + $0x44] sm:$0xf] }
 0x3f3   :  { %3627 = vmatpush.bf16.msrb.mxu3 %v5251_v16  ;;  %v5235_v54 = vor.u32 %v5822_v6, %v5234_v35  ;;  %v4964_v41 = vld [vmem:[%s9087_s7 + $0x150] sm:$0xf0] }
 0x3f4   :  { %v2568_v46 = vmax.f32 %v2444_v10, 0.0  ;;  %v2726_v51 = vrot.slane %v2725_v15, 1 }
 0x3f6   :  { %v2739_v29 = vmax.f32 %v2738_v27, %v2568_v46  ;;  %v2727_v17 = vmax.f32 %v2725_v15, %v2726_v51  ;;  %v5768_v46 = vld [vmem:[%s9087_s7 + $0x1c4] sm:$0xf] }
 0x3f7   :  { %v2356_v34 = vpop.f32.mrf.mxu0  ;;  %v2445_v32 = vpop.f32.mrf.mxu1  ;;  %3628 = vmatpush.bf16.msrb.mxu3 %v5235_v54  ;;  %v5748_v15 = vld [vmem:[%s9087_s7 + $0x124] sm:$0xf] }
 0x3f8   :  { %v2357_v39 = vadd.f32 %v2356_v34, %v7678_v55  ;;  %v5074_v34 = vld [vmem:[%s9087_s7 + $0x220] sm:$0xf]  ;;  %v2762_v16 = vrot.slane %v2727_v17, 4  ;;  %v5744_v17 = vld [vmem:[%s9087_s7 + $0x104] sm:$0xf] }
 0x3fa   :  { %v2446_v25 = vadd.f32 %v2445_v32, %v2357_v39  ;;  %v5782_v32 = vld [vmem:[%s9087_s7 + $0x22c] sm:$0xf0] }
 0x3fb   :  { %v5075_v37 = vor.u32 %v5782_v32, %v5074_v34  ;;  %3629 = vmatpush.bf16.msrb.mxu3 %v5219_v36  ;;  %v5015_v36 = vor.u32 %v5764_v13, %v5012_v26  ;;  %v5728_v34 = vld [vmem:[%s9087_s7 + $0x84] sm:$0xf]  ;;  %v4868_v32 = vld [vmem:[%s9087_s7 + $0x90] sm:$0xf0] }
 0x3fc   :  { %v2572_v58 = vmax.f32 %v2446_v25, 0.0  ;;  %v4916_v25 = vld [vmem:[%s9087_s7 + $0xf0] sm:$0xf0]  ;;  %v5792_v13 = vld [vmem:[%s9087_s7 + $0x284] sm:$0xf] }
 0x3fd   :  { %3617 = vmatpush.bf16.msrb.mxu2 %v5075_v37  ;;  %v4919_v50 = vor.u32 %v5740_v31, %v4916_v25  ;;  %v4999_v37 = vor.u32 %v5760_v43, %v4996_v40  ;;  %v5832_v31 = vld [vmem:[%s9087_s7 + $0x3c4] sm:$0xf]  ;;  %v5284_v25 = vld [vmem:[%s9087_s7 + $0x3d0] sm:$0xf0] }
 0x3fe   :  { %v5124_v26 = vld [vmem:[%s9087_s7 + $0x290] sm:$0xf0]  ;;  %v5788_v43 = vld [vmem:[%s9087_s7 + $0x264] sm:$0xf] }
 0x3ff   :  { %v2359_v53 = vpop.f32.mrf.mxu0  ;;  %v2448_v28 = vpop.f32.mrf.mxu1  ;;  %3630 = vmatpush.bf16.msrb.mxu3 %v5203_v18  ;;  %v5108_v40 = vld [vmem:[%s9087_s7 + $0x270] sm:$0xf0] }
 0x400   :  { %v2360_v1 = vadd.f32 %v2359_v53, %v7678_v55 }
 0x401   :  { %3618 = vmatpush.bf16.msrb.mxu2 %v5059_v12  ;;  %v5752_v12 = vld [vmem:[%s9087_s7 + $0x144] sm:$0xf] }
 0x402   :  { %v2449_v20 = vadd.f32 %v2448_v28, %v2360_v1 }
 0x403   :  { %3631 = vmatpush.bf16.msrb.mxu3 %v5187_v44  ;;  %v5716_v44 = vld [vmem:[%s9087_s7 + $0x24] sm:$0xf] }
 0x404   :  { %v2576_v2 = vmax.f32 %v2449_v20, 0.0  ;;  %v5028_v20 = vld [vmem:[%s9087_s7 + $0x1d0] sm:$0xf0] }
 0x405   :  { %v5031_v8 = vor.u32 %v5768_v46, %v5028_v20  ;;  %v5268_v46 = vld [vmem:[%s9087_s7 + $0x3b0] sm:$0xf0]  ;;  %v5434_v20 = vld [vmem:[%s9089_s9 + $0xf0] sm:$0xf] }
 0x407   :  { %v2361_v49 = vpop.f32.mrf.mxu0  ;;  %v2450_v59 = vpop.f32.mrf.mxu1 }
 0x408   :  { %v2362_v60 = vadd.f32 %v2361_v49, %v7678_v55  ;;  %v2740_v55 = vmax.f32 %v2739_v29, %v2572_v58  ;;  %v5732_v58 = vld [vmem:[%s9087_s7 + $0xa4] sm:$0xf]  ;;  %v4871_v49 = vor.u32 %v5728_v34, %v4868_v32  ;;  %v4852_v29 = vld [vmem:[%s9087_s7 + $0x70] sm:$0xf0]  ;;  %v5127_v34 = vor.u32 %v5792_v13, %v5124_v26  ;;  %v4858_v13 = vld [vmem:[%s9087_s7 + $0x68] sm:$0xf] }
 0x409   :  { %v4887_v27 = vor.u32 %v5732_v58, %v4884_v30  ;;  %v4855_v3 = vor.u32 %v5724_v0, %v4852_v29  ;;  %v5111_v0 = vor.u32 %v5788_v43, %v5108_v40  ;;  %v5727_v26 = vld [vmem:[%s9087_s7 + $0x74] sm:$0xf0]  ;;  %v4842_v43 = vld [vmem:[%s9087_s7 + $0x48] sm:$0xf] }
 0x40a   :  { %v2451_v7 = vadd.f32 %v2450_v59, %v2362_v60  ;;  %v2741_v56 = vmax.f32 %v2740_v55, %v2576_v2  ;;  %v5756_v2 = vld [vmem:[%s9087_s7 + $0x164] sm:$0xf]  ;;  %v4980_v60 = vld [vmem:[%s9087_s7 + $0x170] sm:$0xf0]  ;;  %v5723_v40 = vld [vmem:[%s9087_s7 + $0x54] sm:$0xf0] }
 0x40b   :  { %v4983_v59 = vor.u32 %v5756_v2, %v4980_v60  ;;  %v5784_v2 = vld [vmem:[%s9087_s7 + $0x244] sm:$0xf]  ;;  %v5092_v60 = vld [vmem:[%s9087_s7 + $0x250] sm:$0xf0] }
 0x40c   :  { %v2580_v57 = vmax.f32 %v2451_v7, 0.0  ;;  %v4836_v7 = vld [vmem:[%s9087_s7 + $0x50] sm:$0xf0] }
 0x40e   :  { %v2742_v47 = vmax.f32 %v2741_v56, %v2580_v57  ;;  %v4839_v56 = vor.u32 %v5720_v38, %v4836_v7  ;;  %v4967_v57 = vor.u32 %v5752_v12, %v4964_v41  ;;  %v5780_v38 = vld [vmem:[%s9087_s7 + $0x224] sm:$0xf]  ;;  %v5076_v7 = vld [vmem:[%s9087_s7 + $0x230] sm:$0xf0] }
 0x40f   :  { %v5812_v12 = vld [vmem:[%s9087_s7 + $0x324] sm:$0xf]  ;;  %v5204_v41 = vld [vmem:[%s9087_s7 + $0x330] sm:$0xf0] }
 0x410   :  { %v2743_v33 = vrot.slane %v2742_v47, 4 }
 0x412   :  { %v2744_v39 = vmax.f32 %v2742_v47, %v2743_v33  ;;  %v4820_v47 = vld [vmem:[%s9087_s7 + $0x30] sm:$0xf0] }
 0x413   :  { %v4948_v33 = vld [vmem:[%s9087_s7 + $0x130] sm:$0xf0] }
 0x414   :  { %v2745_v5 = vrot.slane %v2744_v39, 2  ;;  %v4951_v51 = vor.u32 %v5748_v15, %v4948_v33  ;;  %v5808_v15 = vld [vmem:[%s9087_s7 + $0x304] sm:$0xf]  ;;  %v5188_v33 = vld [vmem:[%s9087_s7 + $0x310] sm:$0xf0] }
 0x416   :  { %v2746_v11 = vmax.f32 %v2744_v39, %v2745_v5  ;;  %v4823_v39 = vor.u32 %v5716_v44, %v4820_v47  ;;  %v5712_v5 = vld [vmem:[%s9087_s7 + $0x4] sm:$0xf]  ;;  %v5060_v47 = vld [vmem:[%s9087_s7 + $0x210] sm:$0xf0] }
 0x417   :  { %v5776_v44 = vld [vmem:[%s9087_s7 + $0x204] sm:$0xf] }
 0x418   :  { %v2747_v24 = vrot.slane %v2746_v11, 1 }
 0x41a   :  { %v2748_v14 = vmax.f32 %v2746_v11, %v2747_v24  ;;  %v4804_v11 = vld [vmem:[%s9087_s7 + $0x10] sm:$0xf0] }
 0x41b   :  { %v4932_v24 = vld [vmem:[%s9087_s7 + $0x110] sm:$0xf0] }
 0x41c   :  { %v2763_v22 = vrot.slane %v2748_v14, 2  ;;  %v5804_v14 = vld [vmem:[%s9087_s7 + $0x2e4] sm:$0xf] }
 0x41e   :  { %v2771_v53 = vsel %vm2766_vm1, %v2762_v16, %v2763_v22  ;;  %v5172_v16 = vld [vmem:[%s9087_s7 + $0x2f0] sm:$0xf0]  ;;  %v5836_v22 = vld [vmem:[%s9087_s7 + $0x3e4] sm:$0xf] }
 0x41f   :  { %v2772_v28 = vsel %vm2768_vm2, %v7694_v42, %v2771_v53  ;;  %v5772_v42 = vld [vmem:[%s9087_s7 + $0x1e4] sm:$0xf]  ;;  %v5300_v53 = vld [vmem:[%s9087_s7 + $0x3f0] sm:$0xf0] }
 0x420   :  { %v2777_v23 = vrot.slane %v2772_v28, 7  ;;  %v4807_v28 = vor.u32 %v5712_v5, %v4804_v11  ;;  %v5050_v5 = vld [vmem:[%s9087_s7 + $0x1e8] sm:$0xf]  ;;  %v5775_v11 = vld [vmem:[%s9087_s7 + $0x1f4] sm:$0xf0] }
 0x422   :  { %v2779_v45 = vsel %vm2778_vm3, %v2777_v23, %v7784_v4  ;;  %v5044_v4 = vld [vmem:[%s9087_s7 + $0x1f0] sm:$0xf0] }
 0x423   :  { %v2781_v10 = vsel %vm2780_vm4, %v2777_v23, %v2779_v45  ;;  %v5047_v52 = vor.u32 %v5772_v42, %v5044_v4  ;;  %v5175_v45 = vor.u32 %v5804_v14, %v5172_v16  ;;  %v5370_v42 = vld [vmem:[%s9089_s9 + $0x70] sm:$0xf]  ;;  %v5855_v4 = vld [vmem:[%s9089_s9 + $0x74] sm:$0xf0]  ;;  %v5051_v16 = vor.u32 %v5775_v11, %v5050_v5  ;;  %v5162_v5 = vld [vmem:[%s9087_s7 + $0x2c8] sm:$0xf] }
 0x424   :  { %v2783_v1 = vsel %vm2782_vm5, %v2777_v23, %v2781_v10  ;;  %v5303_v10 = vor.u32 %v5836_v22, %v5300_v53  ;;  %v5371_v62 = vor.u32 %v5855_v4, %v5370_v42  ;;  %v4906_v22 = vld [vmem:[%s9087_s7 + $0xc8] sm:$0xf]  ;;  %v5739_v53 = vld [vmem:[%s9087_s7 + $0xd4] sm:$0xf0]  ;;  %v5362_v42 = vld [vmem:[%s9089_s9 + $0x60] sm:$0xf] }
 0x425   :  { %v2785_v63 = vsel %vm2784_vm6, %v2777_v23, %v2783_v1  ;;  %v4935_v23 = vor.u32 %v5744_v17, %v4932_v24  ;;  %v5800_v1 = vld [vmem:[%s9087_s7 + $0x2c4] sm:$0xf]  ;;  %v5063_v17 = vor.u32 %v5776_v44, %v5060_v47  ;;  %v5191_v24 = vor.u32 %v5808_v15, %v5188_v33  ;;  %v5853_v4 = vld [vmem:[%s9089_s9 + $0x64] sm:$0xf0]  ;;  %v5839_v47 = vld [vmem:[%s9087_s7 + $0x3f4] sm:$0xf0] }
 0x426   :  { %2794 = vst [vmem:[#allocation1] ss:$4 sm:$0xff] %v2785_v63  ;;  %v5156_v63 = vld [vmem:[%s9087_s7 + $0x2d0] sm:$0xf0]  ;;  %4191 = vmatpush.bf16.msrb.mxu0 %v5371_v62  ;;  %v5306_v44 = vld [vmem:[%s9087_s7 + $0x3e8] sm:$0xf] }
 0x427   :  { %v5159_v9 = vor.u32 %v5800_v1, %v5156_v63  ;;  %v5735_v63 = vld [vmem:[%s9087_s7 + $0xb4] sm:$0xf0] }
 0x428   :  { %v5803_v11 = vld [vmem:[%s9087_s7 + $0x2d4] sm:$0xf0] }
 0x42d   :  { %v2795_v35 = vld.sshfl [vmem:[#allocation1] sm:$0xff pattern:$0x73625140]  ;;  %v2796_v6 = vld.sshfl [vmem:[#allocation1 + $0x8] sm:$0xff pattern:$0x73625140] }
 0x42e   :  { %v8045_v54 = vpack.c.bf16 %v2795_v35, %v2795_v35  ;;  %v8047_v21 = vpack.c.bf16 %v2796_v6, %v2796_v6  ;;  %v2797_v18 = vld.sshfl [vmem:[#allocation1 + $0x10] sm:$0xff pattern:$0x73625140]  ;;  %v2798_v61 = vld.sshfl [vmem:[#allocation1 + $0x18] sm:$0xff pattern:$0x73625140]  ;;  %v5287_v35 = vor.u32 %v5832_v31, %v5284_v25 }
 0x42f   :  { %v8099_v19 = vpack.c.bf16 %v2797_v18, %v2797_v18  ;;  %v8101_v55 = vpack.c.bf16 %v2798_v61, %v2798_v61  ;;  %v5796_v6 = vld [vmem:[%s9087_s7 + $0x2a4] sm:$0xf]  ;;  %v5220_v61 = vld [vmem:[%s9087_s7 + $0x350] sm:$0xf0]  ;;  %v5018_v31 = vld [vmem:[%s9087_s7 + $0x1a8] sm:$0xf] }
 0x430   :  { %3593 = vmatmul.bf16.vlgmr.msra.gmra.mxu2 %v8045_v54  ;;  %3606 = vmatmul.bf16.vlgmr.msra.gmra.mxu3 %v8047_v21  ;;  %v5816_v18 = vld [vmem:[%s9087_s7 + $0x344] sm:$0xf]  ;;  %v5767_v25 = vld [vmem:[%s9087_s7 + $0x1b4] sm:$0xf0] }
 0x431   :  { %3637 = vmatpush.bf16.msra.mxu2 %v4919_v50  ;;  %3650 = vmatpush.bf16.msra.mxu3 %v5047_v52  ;;  %v5140_v50 = vld [vmem:[%s9087_s7 + $0x2b0] sm:$0xf0]  ;;  %v5828_v52 = vld [vmem:[%s9087_s7 + $0x3a4] sm:$0xf]  ;;  %v5019_v62 = vor.u32 %v5767_v25, %v5018_v31  ;;  %v5849_v31 = vld [vmem:[%s9089_s9 + $0x44] sm:$0xf0] }
 0x432   :  { %v5143_v58 = vor.u32 %v5796_v6, %v5140_v50  ;;  %v5271_v30 = vor.u32 %v5828_v52, %v5268_v46  ;;  %v5869_v6 = vld [vmem:[%s9089_s9 + $0xe4] sm:$0xf0] }
 0x433   :  { %v4874_v46 = vld [vmem:[%s9087_s7 + $0x88] sm:$0xf] }
 0x435   :  { %3638 = vmatpush.bf16.msra.mxu2 %v4903_v48  ;;  %3651 = vmatpush.bf16.msra.mxu3 %v5031_v8  ;;  %v5871_v48 = vld [vmem:[%s9089_s9 + $0xf4] sm:$0xf0] }
 0x436   :  { %v5435_v8 = vor.u32 %v5871_v48, %v5434_v20  ;;  %v5731_v20 = vld [vmem:[%s9087_s7 + $0x94] sm:$0xf0]  ;;  %v5002_v48 = vld [vmem:[%s9087_s7 + $0x188] sm:$0xf] }
 0x438   :  { %4204 = vmatpush.bf16.msrb.mxu1 %v5435_v8  ;;  %v5763_v8 = vld [vmem:[%s9087_s7 + $0x194] sm:$0xf0] }
 0x439   :  { %3639 = vmatpush.bf16.msra.mxu2 %v4887_v27  ;;  %3652 = vmatpush.bf16.msra.mxu3 %v5015_v36  ;;  %v5824_v27 = vld [vmem:[%s9087_s7 + $0x384] sm:$0xf]  ;;  %v5252_v36 = vld [vmem:[%s9087_s7 + $0x390] sm:$0xf0] }
 0x43a   :  { %v5255_v32 = vor.u32 %v5824_v27, %v5252_v36  ;;  %v4986_v27 = vld [vmem:[%s9087_s7 + $0x168] sm:$0xf]  ;;  %v5759_v36 = vld [vmem:[%s9087_s7 + $0x174] sm:$0xf0] }
 0x43d   :  { %3640 = vmatpush.bf16.msra.mxu2 %v4871_v49  ;;  %3653 = vmatpush.bf16.msra.mxu3 %v4999_v37  ;;  %v5820_v49 = vld [vmem:[%s9087_s7 + $0x364] sm:$0xf]  ;;  %v5236_v37 = vld [vmem:[%s9087_s7 + $0x370] sm:$0xf0] }
 0x43e   :  { %v5239_v29 = vor.u32 %v5820_v49, %v5236_v37  ;;  %v4970_v49 = vld [vmem:[%s9087_s7 + $0x148] sm:$0xf]  ;;  %v5755_v37 = vld [vmem:[%s9087_s7 + $0x154] sm:$0xf0] }
 0x440   :  { %3619 = vmatmul.bf16.vlgmr.msrb.gmra.mxu2 %v8099_v19  ;;  %3632 = vmatmul.bf16.vlgmr.msrb.gmra.mxu3 %v8101_v55 }
 0x441   :  { %3641 = vmatpush.bf16.msra.mxu2 %v4855_v3  ;;  %3654 = vmatpush.bf16.msra.mxu3 %v4983_v59  ;;  %v5095_v3 = vor.u32 %v5784_v2, %v5092_v60  ;;  %v5223_v59 = vor.u32 %v5816_v18, %v5220_v61  ;;  %v4826_v2 = vld [vmem:[%s9087_s7 + $0x28] sm:$0xf]  ;;  %v5719_v60 = vld [vmem:[%s9087_s7 + $0x34] sm:$0xf0] }
 0x442   :  { %v4954_v18 = vld [vmem:[%s9087_s7 + $0x128] sm:$0xf]  ;;  %v5751_v61 = vld [vmem:[%s9087_s7 + $0x134] sm:$0xf0] }
 0x445   :  { %3642 = vmatpush.bf16.msra.mxu2 %v4839_v56  ;;  %3655 = vmatpush.bf16.msra.mxu3 %v4967_v57  ;;  %v5079_v56 = vor.u32 %v5780_v38, %v5076_v7  ;;  %v5207_v57 = vor.u32 %v5812_v12, %v5204_v41  ;;  %v4810_v38 = vld [vmem:[%s9087_s7 + $0x8] sm:$0xf]  ;;  %v5715_v7 = vld [vmem:[%s9087_s7 + $0x14] sm:$0xf0] }
 0x446   :  { %v4938_v12 = vld [vmem:[%s9087_s7 + $0x108] sm:$0xf]  ;;  %v5747_v41 = vld [vmem:[%s9087_s7 + $0x114] sm:$0xf0]  ;;  %v4811_v15 = vor.u32 %v5715_v7, %v4810_v38 }
 0x447   :  { %v4939_v33 = vor.u32 %v5747_v41, %v4938_v12  ;;  %v5783_v7 = vld [vmem:[%s9087_s7 + $0x234] sm:$0xf0]  ;;  %v5210_v12 = vld [vmem:[%s9087_s7 + $0x328] sm:$0xf] }
 0x448   :  { %v5815_v41 = vld [vmem:[%s9087_s7 + $0x334] sm:$0xf0] }
 0x449   :  { %3643 = vmatpush.bf16.msra.mxu2 %v4823_v39  ;;  %3656 = vmatpush.bf16.msra.mxu3 %v4951_v51  ;;  %v4922_v39 = vld [vmem:[%s9087_s7 + $0xe8] sm:$0xf]  ;;  %v5743_v51 = vld [vmem:[%s9087_s7 + $0xf4] sm:$0xf0] }
 0x44a   :  { %v4923_v14 = vor.u32 %v5743_v51, %v4922_v39  ;;  %v5307_v51 = vor.u32 %v5839_v47, %v5306_v44  ;;  %v5841_v44 = vld [vmem:[%s9089_s9 + $0x4] sm:$0xf0] }
 0x44d   :  { %3644 = vmatpush.bf16.msra.mxu2 %v4807_v28  ;;  %3657 = vmatpush.bf16.msra.mxu3 %v4935_v23  ;;  %v5034_v28 = vld [vmem:[%s9087_s7 + $0x1c8] sm:$0xf]  ;;  %v5771_v23 = vld [vmem:[%s9087_s7 + $0x1d4] sm:$0xf0] }
 0x44e   :  { %v5035_v1 = vor.u32 %v5771_v23, %v5034_v28  ;;  %v5146_v28 = vld [vmem:[%s9087_s7 + $0x2a8] sm:$0xf] }
 0x450   :  { %3645 = vmatmul.bf16.vlgmr.msra.gmra.mxu2 %v8045_v54  ;;  %3658 = vmatmul.bf16.vlgmr.msra.gmra.mxu3 %v8047_v21 }
 0x451   :  { %3663 = vmatpush.bf16.msrb.mxu2 %v5175_v45  ;;  %3676 = vmatpush.bf16.msrb.mxu3 %v5303_v10  ;;  %v4890_v45 = vld [vmem:[%s9087_s7 + $0xa8] sm:$0xf]  ;;  %v4907_v10 = vor.u32 %v5739_v53, %v4906_v22  ;;  %v5163_v22 = vor.u32 %v5803_v11, %v5162_v5  ;;  %v5372_v5 = vld [vmem:[%s9089_s9 + $0x78] sm:$0xf0] }
 0x452   :  { %v4891_v52 = vor.u32 %v5735_v63, %v4890_v45  ;;  %v5799_v45 = vld [vmem:[%s9087_s7 + $0x2b4] sm:$0xf0]  ;;  %v5346_v63 = vld [vmem:[%s9089_s9 + $0x40] sm:$0xf]  ;;  %v5194_v11 = vld [vmem:[%s9087_s7 + $0x308] sm:$0xf] }
 0x453   :  { %v5147_v25 = vor.u32 %v5799_v45, %v5146_v28  ;;  %v5852_v45 = vld [vmem:[%s9089_s9 + $0x64] sm:$0xf] }
 0x455   :  { %3664 = vmatpush.bf16.msrb.mxu2 %v5159_v9  ;;  %3677 = vmatpush.bf16.msrb.mxu3 %v5287_v35  ;;  %v5426_v9 = vld [vmem:[%s9089_s9 + $0xe0] sm:$0xf]  ;;  %v5363_v35 = vor.u32 %v5853_v4, %v5362_v42  ;;  %v5130_v4 = vld [vmem:[%s9087_s7 + $0x288] sm:$0xf] }
 0x456   :  { %v5427_v50 = vor.u32 %v5869_v6, %v5426_v9  ;;  %v5795_v9 = vld [vmem:[%s9087_s7 + $0x294] sm:$0xf0]  ;;  %v5347_v6 = vor.u32 %v5849_v31, %v5346_v63  ;;  %v5737_v31 = vld [vmem:[%s9087_s7 + $0xcc] sm:$0xf] }
 0x457   :  { %4192 = vmatpush.bf16.msrb.mxu0 %v5363_v35  ;;  %v5258_v35 = vld [vmem:[%s9087_s7 + $0x388] sm:$0xf] }
 0x458   :  { %4205 = vmatpush.bf16.msrb.mxu1 %v5427_v50  ;;  %v5827_v50 = vld [vmem:[%s9087_s7 + $0x394] sm:$0xf0] }
 0x459   :  { %3665 = vmatpush.bf16.msrb.mxu2 %v5143_v58  ;;  %3678 = vmatpush.bf16.msrb.mxu3 %v5271_v30  ;;  %v4875_v58 = vor.u32 %v5731_v20, %v4874_v46  ;;  %v5003_v30 = vor.u32 %v5763_v8, %v5002_v48  ;;  %v5338_v20 = vld [vmem:[%s9089_s9 + $0x30] sm:$0xf]  ;;  %v5847_v48 = vld [vmem:[%s9089_s9 + $0x34] sm:$0xf0]  ;;  %v5131_v8 = vor.u32 %v5795_v9, %v5130_v4  ;;  %v5036_v4 = vld [vmem:[%s9087_s7 + $0x1d8] sm:$0xf0] }
 0x45d   :  { %3666 = vmatpush.bf16.msrb.mxu2 %v5127_v34  ;;  %3679 = vmatpush.bf16.msrb.mxu3 %v5255_v32  ;;  %v4859_v34 = vor.u32 %v5727_v26, %v4858_v13  ;;  %v4987_v32 = vor.u32 %v5759_v36, %v4986_v27  ;;  %v5339_v13 = vor.u32 %v5847_v48, %v5338_v20  ;;  %v5791_v26 = vld [vmem:[%s9087_s7 + $0x274] sm:$0xf0]  ;;  %v5242_v27 = vld [vmem:[%s9087_s7 + $0x368] sm:$0xf]  ;;  %v5765_v20 = vld [vmem:[%s9087_s7 + $0x1ac] sm:$0xf] }
 0x45e   :  { %v5823_v36 = vld [vmem:[%s9087_s7 + $0x374] sm:$0xf0]  ;;  %v5020_v48 = vld [vmem:[%s9087_s7 + $0x1b8] sm:$0xf0] }
 0x461   :  { %3667 = vmatpush.bf16.msrb.mxu2 %v5111_v0  ;;  %3680 = vmatpush.bf16.msrb.mxu3 %v5239_v29  ;;  %v4843_v0 = vor.u32 %v5723_v40, %v4842_v43  ;;  %v4971_v29 = vor.u32 %v5755_v37, %v4970_v49  ;;  %v5243_v43 = vor.u32 %v5823_v36, %v5242_v27  ;;  %v5098_v40 = vld [vmem:[%s9087_s7 + $0x248] sm:$0xf]  ;;  %v5787_v37 = vld [vmem:[%s9087_s7 + $0x254] sm:$0xf0]  ;;  %v5729_v27 = vld [vmem:[%s9087_s7 + $0x8c] sm:$0xf] }
 0x462   :  { %v5845_v49 = vld [vmem:[%s9089_s9 + $0x24] sm:$0xf0]  ;;  %v4876_v36 = vld [vmem:[%s9087_s7 + $0x98] sm:$0xf0] }
 0x465   :  { %3668 = vmatpush.bf16.msrb.mxu2 %v5095_v3  ;;  %3681 = vmatpush.bf16.msrb.mxu3 %v5223_v59  ;;  %v4827_v3 = vor.u32 %v5719_v60, %v4826_v2  ;;  %v4955_v59 = vor.u32 %v5751_v61, %v4954_v18  ;;  %v5322_v60 = vld [vmem:[%s9089_s9 + $0x10] sm:$0xf]  ;;  %v5843_v18 = vld [vmem:[%s9089_s9 + $0x14] sm:$0xf0]  ;;  %v5099_v61 = vor.u32 %v5787_v37, %v5098_v40  ;;  %v5846_v40 = vld [vmem:[%s9089_s9 + $0x34] sm:$0xf] }
 0x466   :  { %v5323_v38 = vor.u32 %v5843_v18, %v5322_v60  ;;  %v4879_v37 = vor.u32 %v5729_v27, %v4876_v36  ;;  %v5757_v60 = vld [vmem:[%s9087_s7 + $0x16c] sm:$0xf]  ;;  %v4988_v18 = vld [vmem:[%s9087_s7 + $0x178] sm:$0xf0] }
 0x469   :  { %3669 = vmatpush.bf16.msrb.mxu2 %v5079_v56  ;;  %3682 = vmatpush.bf16.msrb.mxu3 %v5207_v57  ;;  %v5178_v56 = vld [vmem:[%s9087_s7 + $0x2e8] sm:$0xf]  ;;  %v5807_v57 = vld [vmem:[%s9087_s7 + $0x2f4] sm:$0xf0] }
 0x46a   :  { %v5179_v39 = vor.u32 %v5807_v57, %v5178_v56  ;;  %v5066_v56 = vld [vmem:[%s9087_s7 + $0x208] sm:$0xf]  ;;  %v5314_v57 = vld [vmem:[%s9089_s9] sm:$0xf] }
 0x46d   :  { %3670 = vmatpush.bf16.msrb.mxu2 %v5063_v17  ;;  %3683 = vmatpush.bf16.msrb.mxu3 %v5191_v24  ;;  %v5290_v17 = vld [vmem:[%s9087_s7 + $0x3c8] sm:$0xf]  ;;  %v5835_v24 = vld [vmem:[%s9087_s7 + $0x3d4] sm:$0xf0] }
 0x46e   :  { %v5291_v53 = vor.u32 %v5835_v24, %v5290_v17  ;;  %v5811_v17 = vld [vmem:[%s9087_s7 + $0x314] sm:$0xf0]  ;;  %v5741_v24 = vld [vmem:[%s9087_s7 + $0xec] sm:$0xf] }
 0x470   :  { %3671 = vmatmul.bf16.vlgmr.msrb.gmra.mxu2 %v8099_v19  ;;  %3684 = vmatmul.bf16.vlgmr.msrb.gmra.mxu3 %v8101_v55 }
 0x471   :  { %3689 = vmatpush.bf16.msra.mxu2 %v4923_v14  ;;  %3702 = vmatpush.bf16.msra.mxu3 %v5051_v16  ;;  %v5354_v14 = vld [vmem:[%s9089_s9 + $0x50] sm:$0xf]  ;;  %v5851_v16 = vld [vmem:[%s9089_s9 + $0x54] sm:$0xf0] }
 0x472   :  { %v5355_v23 = vor.u32 %v5851_v16, %v5354_v14  ;;  %v4924_v16 = vld [vmem:[%s9087_s7 + $0xf8] sm:$0xf0] }
 0x474   :  { %4193 = vmatpush.bf16.msrb.mxu0 %v5355_v23  ;;  %v5195_v23 = vor.u32 %v5811_v17, %v5194_v11  ;;  %v5324_v11 = vld [vmem:[%s9089_s9 + $0x18] sm:$0xf0]  ;;  %v8623_v17 = vld [vmem:[%s9088_s8] sm:$0xf] }
 0x475   :  { %3690 = vmatpush.bf16.msra.mxu2 %v4907_v10  ;;  %3703 = vmatpush.bf16.msra.mxu3 %v5035_v1  ;;  %v5274_v10 = vld [vmem:[%s9087_s7 + $0x3a8] sm:$0xf]  ;;  %v5831_v1 = vld [vmem:[%s9087_s7 + $0x3b4] sm:$0xf0] }
 0x476   :  { %v5275_v42 = vor.u32 %v5831_v1, %v5274_v10  ;;  %v5364_v10 = vld [vmem:[%s9089_s9 + $0x68] sm:$0xf0]  ;;  %v4927_v1 = vor.u32 %v5741_v24, %v4924_v16 }
 0x477   :  { %v5367_v9 = vor.u32 %v5852_v45, %v5364_v10  ;;  %v5717_v16 = vld [vmem:[%s9087_s7 + $0x2c] sm:$0xf]  ;;  %v5840_v45 = vld [vmem:[%s9089_s9 + $0x4] sm:$0xf]  ;;  %v2937_v10 = vperm.slane %v8623_v17, 0 }
 0x478   :  { %4194 = vmatpush.bf16.msrb.mxu0 %v5347_v6  ;;  %v5356_v6 = vld [vmem:[%s9089_s9 + $0x58] sm:$0xf0] }
 0x479   :  { %3691 = vmatpush.bf16.msra.mxu2 %v4891_v52  ;;  %3704 = vmatpush.bf16.msra.mxu3 %v5019_v62  ;;  %v5418_v52 = vld [vmem:[%s9089_s9 + $0xd0] sm:$0xf]  ;;  %v5867_v62 = vld [vmem:[%s9089_s9 + $0xd4] sm:$0xf0] }
 0x47a   :  { %v5419_v46 = vor.u32 %v5867_v62, %v5418_v52  ;;  %v5733_v62 = vld [vmem:[%s9087_s7 + $0xac] sm:$0xf] }
 0x47c   :  { %4206 = vmatpush.bf16.msrb.mxu1 %v5419_v46  ;;  %4195 = vmatpush.bf16.msrb.mxu0 %v5339_v13  ;;  %v4892_v46 = vld [vmem:[%s9087_s7 + $0xb8] sm:$0xf0] }
 0x47d   :  { %3692 = vmatpush.bf16.msra.mxu2 %v4875_v58  ;;  %3705 = vmatpush.bf16.msra.mxu3 %v5003_v30  ;;  %v5259_v58 = vor.u32 %v5827_v50, %v5258_v35  ;;  %v5114_v30 = vld [vmem:[%s9087_s7 + $0x268] sm:$0xf]  ;;  %v5850_v35 = vld [vmem:[%s9089_s9 + $0x54] sm:$0xf]  ;;  %v4895_v13 = vor.u32 %v5733_v62, %v4892_v46 }
 0x481   :  { %3693 = vmatpush.bf16.msra.mxu2 %v4859_v34  ;;  %3706 = vmatpush.bf16.msra.mxu3 %v4987_v32  ;;  %v5330_v34 = vld [vmem:[%s9089_s9 + $0x20] sm:$0xf]  ;;  %v5115_v32 = vor.u32 %v5791_v26, %v5114_v30  ;;  %v5348_v30 = vld [vmem:[%s9089_s9 + $0x48] sm:$0xf0]  ;;  %v5023_v26 = vor.u32 %v5765_v20, %v5020_v48  ;;  %v5180_v20 = vld [vmem:[%s9087_s7 + $0x2f8] sm:$0xf0] }
 0x482   :  { %v5331_v2 = vor.u32 %v5845_v49, %v5330_v34  ;;  %v5761_v34 = vld [vmem:[%s9087_s7 + $0x18c] sm:$0xf]  ;;  %v5340_v49 = vld [vmem:[%s9089_s9 + $0x38] sm:$0xf0] }
 0x483   :  { %v5837_v48 = vld [vmem:[%s9087_s7 + $0x3ec] sm:$0xf] }
 0x484   :  { %4196 = vmatpush.bf16.msrb.mxu0 %v5331_v2  ;;  %v4860_v2 = vld [vmem:[%s9087_s7 + $0x78] sm:$0xf0] }
 0x485   :  { %3694 = vmatpush.bf16.msra.mxu2 %v4843_v0  ;;  %3707 = vmatpush.bf16.msra.mxu3 %v4971_v29  ;;  %v5226_v0 = vld [vmem:[%s9087_s7 + $0x348] sm:$0xf]  ;;  %v5819_v29 = vld [vmem:[%s9087_s7 + $0x354] sm:$0xf0] }
 0x488   :  { %4197 = vmatpush.bf16.msrb.mxu0 %v5323_v38 }
 0x489   :  { %3695 = vmatpush.bf16.msra.mxu2 %v4827_v3  ;;  %3708 = vmatpush.bf16.msra.mxu3 %v4955_v59  ;;  %v5227_v3 = vor.u32 %v5819_v29, %v5226_v0  ;;  %v5082_v59 = vld [vmem:[%s9087_s7 + $0x228] sm:$0xf]  ;;  %v5725_v29 = vld [vmem:[%s9087_s7 + $0x6c] sm:$0xf] }
 0x48a   :  { %v5083_v47 = vor.u32 %v5783_v7, %v5082_v59  ;;  %v5865_v59 = vld [vmem:[%s9089_s9 + $0xc4] sm:$0xf0]  ;;  %v5844_v7 = vld [vmem:[%s9089_s9 + $0x24] sm:$0xf] }
 0x48d   :  { %3696 = vmatpush.bf16.msra.mxu2 %v4811_v15  ;;  %3709 = vmatpush.bf16.msra.mxu3 %v4939_v33  ;;  %v5211_v15 = vor.u32 %v5815_v41, %v5210_v12  ;;  %v5779_v33 = vld [vmem:[%s9087_s7 + $0x214] sm:$0xf0]  ;;  %v5332_v12 = vld [vmem:[%s9089_s9 + $0x28] sm:$0xf0]  ;;  %v4863_v41 = vor.u32 %v5725_v29, %v4860_v2  ;;  %v5386_v29 = vld [vmem:[%s9089_s9 + $0x90] sm:$0xf] }
 0x48e   :  { %v5067_v28 = vor.u32 %v5779_v33, %v5066_v56  ;;  %v4991_v56 = vor.u32 %v5757_v60, %v4988_v18  ;;  %v5335_v33 = vor.u32 %v5844_v7, %v5332_v12  ;;  %v5859_v2 = vld [vmem:[%s9089_s9 + $0x94] sm:$0xf0]  ;;  %v5148_v7 = vld [vmem:[%s9087_s7 + $0x2b8] sm:$0xf0]  ;;  %v5829_v12 = vld [vmem:[%s9087_s7 + $0x3ac] sm:$0xf] }
 0x490   :  { %3697 = vmatmul.bf16.vlgmr.msra.gmra.mxu2 %v8045_v54  ;;  %3710 = vmatmul.bf16.vlgmr.msra.gmra.mxu3 %v8047_v21 }
 0x491   :  { %3715 = vmatpush.bf16.msrb.mxu2 %v5179_v39  ;;  %3728 = vmatpush.bf16.msrb.mxu3 %v5307_v51  ;;  %v5315_v39 = vor.u32 %v5841_v44, %v5314_v57  ;;  %v5854_v51 = vld [vmem:[%s9089_s9 + $0x74] sm:$0xf]  ;;  %v5721_v57 = vld [vmem:[%s9087_s7 + $0x4c] sm:$0xf]  ;;  %v4844_v44 = vld [vmem:[%s9087_s7 + $0x58] sm:$0xf0] }
 0x492   :  { %v5375_v14 = vor.u32 %v5854_v51, %v5372_v5  ;;  %v5842_v5 = vld [vmem:[%s9089_s9 + $0x14] sm:$0xf]  ;;  %v4847_v24 = vor.u32 %v5721_v57, %v4844_v44  ;;  %v5378_v44 = vld [vmem:[%s9089_s9 + $0x80] sm:$0xf] }
 0x493   :  { %4198 = vmatpush.bf16.msrb.mxu0 %v5315_v39 }
 0x495   :  { %3716 = vmatpush.bf16.msrb.mxu2 %v5163_v22  ;;  %3729 = vmatpush.bf16.msrb.mxu3 %v5291_v53  ;;  %v5773_v22 = vld [vmem:[%s9087_s7 + $0x1ec] sm:$0xf]  ;;  %v5052_v53 = vld [vmem:[%s9087_s7 + $0x1f8] sm:$0xf0] }
 0x496   :  { %v5055_v63 = vor.u32 %v5773_v22, %v5052_v53  ;;  %v4828_v22 = vld [vmem:[%s9087_s7 + $0x38] sm:$0xf0]  ;;  %v5749_v53 = vld [vmem:[%s9087_s7 + $0x12c] sm:$0xf] }
 0x497   :  { %4243 = vmatpush.bf16.msra.mxu0 %v5375_v14 }
 0x499   :  { %3717 = vmatpush.bf16.msrb.mxu2 %v5147_v25  ;;  %3730 = vmatpush.bf16.msrb.mxu3 %v5275_v42  ;;  %v4908_v25 = vld [vmem:[%s9087_s7 + $0xd8] sm:$0xf0]  ;;  %v5769_v42 = vld [vmem:[%s9087_s7 + $0x1cc] sm:$0xf] }
 0x49a   :  { %v4911_v50 = vor.u32 %v5737_v31, %v4908_v25  ;;  %v5039_v52 = vor.u32 %v5769_v42, %v5036_v4  ;;  %v4831_v31 = vor.u32 %v5717_v16, %v4828_v22  ;;  %v4812_v42 = vld [vmem:[%s9087_s7 + $0x18] sm:$0xf0]  ;;  %v5745_v4 = vld [vmem:[%s9087_s7 + $0x10c] sm:$0xf] }
 0x49b   :  { %4244 = vmatpush.bf16.msra.mxu0 %v5367_v9  ;;  %v4940_v9 = vld [vmem:[%s9087_s7 + $0x118] sm:$0xf0] }
 0x49d   :  { %3718 = vmatpush.bf16.msrb.mxu2 %v5131_v8  ;;  %3731 = vmatpush.bf16.msrb.mxu3 %v5259_v58  ;;  %v5359_v8 = vor.u32 %v5850_v35, %v5356_v6  ;;  %v5848_v58 = vld [vmem:[%s9089_s9 + $0x44] sm:$0xf]  ;;  %v5805_v35 = vld [vmem:[%s9087_s7 + $0x2ec] sm:$0xf] }
 0x49e   :  { %v5183_v27 = vor.u32 %v5805_v35, %v5180_v20  ;;  %v5866_v20 = vld [vmem:[%s9089_s9 + $0xd4] sm:$0xf] }
 0x49f   :  { %4245 = vmatpush.bf16.msra.mxu0 %v5359_v8  ;;  %v5308_v8 = vld [vmem:[%s9087_s7 + $0x3f8] sm:$0xf0] }
 0x4a0   :  { %v5311_v36 = vor.u32 %v5837_v48, %v5308_v8  ;;  %v5420_v48 = vld [vmem:[%s9089_s9 + $0xd8] sm:$0xf0] }
 0x4a1   :  { %3719 = vmatpush.bf16.msrb.mxu2 %v5115_v32  ;;  %3732 = vmatpush.bf16.msrb.mxu3 %v5243_v43  ;;  %v5004_v32 = vld [vmem:[%s9087_s7 + $0x198] sm:$0xf0]  ;;  %v5351_v43 = vor.u32 %v5848_v58, %v5348_v30  ;;  %v5423_v8 = vor.u32 %v5866_v20, %v5420_v48 }
 0x4a2   :  { %v5007_v0 = vor.u32 %v5761_v34, %v5004_v32  ;;  %v5801_v34 = vld [vmem:[%s9087_s7 + $0x2cc] sm:$0xf]  ;;  %v5394_v32 = vld [vmem:[%s9089_s9 + $0xa0] sm:$0xf] }
 0x4a3   :  { %4246 = vmatpush.bf16.msra.mxu0 %v5351_v43  ;;  %v5861_v43 = vld [vmem:[%s9089_s9 + $0xa4] sm:$0xf0] }
 0x4a5   :  { %3720 = vmatpush.bf16.msrb.mxu2 %v5099_v61  ;;  %3733 = vmatpush.bf16.msrb.mxu3 %v5227_v3  ;;  %v5343_v61 = vor.u32 %v5846_v40, %v5340_v49  ;;  %v5410_v3 = vld [vmem:[%s9089_s9 + $0xc0] sm:$0xf]  ;;  %v5164_v40 = vld [vmem:[%s9087_s7 + $0x2d8] sm:$0xf0]  ;;  %v5833_v49 = vld [vmem:[%s9087_s7 + $0x3cc] sm:$0xf] }
 0x4a6   :  { %v5411_v38 = vor.u32 %v5865_v59, %v5410_v3  ;;  %v5167_v18 = vor.u32 %v5801_v34, %v5164_v40  ;;  %v5797_v3 = vld [vmem:[%s9087_s7 + $0x2ac] sm:$0xf] }
 0x4a7   :  { %4247 = vmatpush.bf16.msra.mxu0 %v5343_v61  ;;  %v5412_v40 = vld [vmem:[%s9089_s9 + $0xc8] sm:$0xf0] }
 0x4a8   :  { %4207 = vmatpush.bf16.msrb.mxu1 %v5411_v38 }
 0x4a9   :  { %3721 = vmatpush.bf16.msrb.mxu2 %v5083_v47  ;;  %3734 = vmatpush.bf16.msrb.mxu3 %v5211_v15  ;;  %v5753_v47 = vld [vmem:[%s9087_s7 + $0x14c] sm:$0xf]  ;;  %v4972_v15 = vld [vmem:[%s9087_s7 + $0x158] sm:$0xf0] }
 0x4aa   :  { %v4975_v14 = vor.u32 %v5753_v47, %v4972_v15  ;;  %v5857_v47 = vld [vmem:[%s9089_s9 + $0x84] sm:$0xf0]  ;;  %v5870_v15 = vld [vmem:[%s9089_s9 + $0xf4] sm:$0xf] }
 0x4ab   :  { %4248 = vmatpush.bf16.msra.mxu0 %v5335_v33  ;;  %v5436_v33 = vld [vmem:[%s9089_s9 + $0xf8] sm:$0xf0] }
 0x4ac   :  { %v5439_v22 = vor.u32 %v5870_v15, %v5436_v33 }
 0x4ad   :  { %3722 = vmatpush.bf16.msrb.mxu2 %v5067_v28  ;;  %3735 = vmatpush.bf16.msrb.mxu3 %v5195_v23  ;;  %v4956_v28 = vld [vmem:[%s9087_s7 + $0x138] sm:$0xf0]  ;;  %v5327_v23 = vor.u32 %v5842_v5, %v5324_v11  ;;  %v5825_v11 = vld [vmem:[%s9087_s7 + $0x38c] sm:$0xf] }
 0x4ae   :  { %v4959_v25 = vor.u32 %v5749_v53, %v4956_v28  ;;  %v5132_v5 = vld [vmem:[%s9087_s7 + $0x298] sm:$0xf0]  ;;  %v5868_v53 = vld [vmem:[%s9089_s9 + $0xe4] sm:$0xf]  ;;  %v5428_v28 = vld [vmem:[%s9089_s9 + $0xe8] sm:$0xf0] }
 0x4af   :  { %4249 = vmatpush.bf16.msra.mxu0 %v5327_v23 }
 0x4b0   :  { %3723 = vmatmul.bf16.vlgmr.msrb.gmra.mxu2 %v8099_v19  ;;  %3736 = vmatmul.bf16.vlgmr.msrb.gmra.mxu3 %v8101_v55 }
 0x4b1   :  { %3741 = vmatpush.bf16.msra.mxu2 %v4927_v1  ;;  %3754 = vmatpush.bf16.msra.mxu3 %v5055_v63  ;;  %v5713_v1 = vld [vmem:[%s9087_s7 + $0xc] sm:$0xf] }
 0x4b2   :  { %v5316_v63 = vld [vmem:[%s9089_s9 + $0x8] sm:$0xf0]  ;;  %v4815_v30 = vor.u32 %v5713_v1, %v4812_v42 }
 0x4b3   :  { %v3594_v39 = vpop.f32.mrf.mxu2  ;;  %v3607_v51 = vpop.f32.mrf.mxu3  ;;  %v5319_v6 = vor.u32 %v5840_v45, %v5316_v63  ;;  %v5789_v1 = vld [vmem:[%s9087_s7 + $0x26c] sm:$0xf] }
 0x4b4   :  { %v5821_v42 = vld [vmem:[%s9087_s7 + $0x36c] sm:$0xf] }
 0x4b5   :  { %3742 = vmatpush.bf16.msra.mxu2 %v4911_v50  ;;  %3755 = vmatpush.bf16.msra.mxu3 %v5039_v52  ;;  %v5402_v50 = vld [vmem:[%s9089_s9 + $0xb0] sm:$0xf]  ;;  %v5863_v52 = vld [vmem:[%s9089_s9 + $0xb4] sm:$0xf0] }
 0x4b6   :  { %v5403_v58 = vor.u32 %v5863_v52, %v5402_v50  ;;  %4250 = vmatpush.bf16.msra.mxu0 %v5319_v6  ;;  %v5785_v50 = vld [vmem:[%s9087_s7 + $0x24c] sm:$0xf]  ;;  %v5100_v52 = vld [vmem:[%s9087_s7 + $0x258] sm:$0xf0] }
 0x4b8   :  { %4208 = vmatpush.bf16.msrb.mxu1 %v5403_v58  ;;  %v5103_v58 = vor.u32 %v5785_v50, %v5100_v52  ;;  %v5458_v50 = vld [vmem:[%s9089_s9 + $0x120] sm:$0xf]  ;;  %v5877_v52 = vld [vmem:[%s9089_s9 + $0x124] sm:$0xf0] }
 0x4b9   :  { %3743 = vmatpush.bf16.msra.mxu2 %v4895_v13  ;;  %3756 = vmatpush.bf16.msra.mxu3 %v5023_v26  ;;  %v4943_v13 = vor.u32 %v5745_v4, %v4940_v9  ;;  %v3595_v26 = vadd.f32 %v3594_v39, %v2937_v10  ;;  %v5244_v4 = vld [vmem:[%s9087_s7 + $0x378] sm:$0xf0]  ;;  %v5431_v9 = vor.u32 %v5868_v53, %v5428_v28  ;;  %v5883_v53 = vld [vmem:[%s9089_s9 + $0x154] sm:$0xf0] }
 0x4ba   :  { %v5247_v6 = vor.u32 %v5821_v42, %v5244_v4  ;;  %v5466_v4 = vld [vmem:[%s9089_s9 + $0x130] sm:$0xf] }
 0x4bb   :  { %v3596_v62 = vpop.f32.mrf.mxu2  ;;  %v3609_v46 = vpop.f32.mrf.mxu3  ;;  %v3608_v60 = vadd.f32 %v3607_v51, %v3595_v26  ;;  %v5793_v51 = vld [vmem:[%s9087_s7 + $0x28c] sm:$0xf]  ;;  %v5084_v26 = vld [vmem:[%s9087_s7 + $0x238] sm:$0xf0] }
 0x4bc   :  { %v5135_v45 = vor.u32 %v5793_v51, %v5132_v5  ;;  %v5817_v62 = vld [vmem:[%s9087_s7 + $0x34c] sm:$0xf]  ;;  %v5228_v46 = vld [vmem:[%s9087_s7 + $0x358] sm:$0xf0]  ;;  %v5856_v51 = vld [vmem:[%s9089_s9 + $0x84] sm:$0xf] }
 0x4bd   :  { %3744 = vmatpush.bf16.msra.mxu2 %v4879_v37  ;;  %3757 = vmatpush.bf16.msra.mxu3 %v5007_v0  ;;  %v5292_v37 = vld [vmem:[%s9087_s7 + $0x3d8] sm:$0xf0]  ;;  %v5395_v0 = vor.u32 %v5861_v43, %v5394_v32  ;;  %v5864_v43 = vld [vmem:[%s9089_s9 + $0xc4] sm:$0xf]  ;;  %v5380_v5 = vld [vmem:[%s9089_s9 + $0x88] sm:$0xf0] }
 0x4be   :  { %v5295_v61 = vor.u32 %v5833_v49, %v5292_v37  ;;  %v5212_v32 = vld [vmem:[%s9087_s7 + $0x338] sm:$0xf0]  ;;  %v5415_v49 = vor.u32 %v5864_v43, %v5412_v40  ;;  %v5884_v43 = vld [vmem:[%s9089_s9 + $0x164] sm:$0xf]  ;;  %v5492_v40 = vld [vmem:[%s9089_s9 + $0x168] sm:$0xf0] }
 0x4bf   :  { %4209 = vmatpush.bf16.msrb.mxu1 %v5395_v0 }
 0x4c1   :  { %3745 = vmatpush.bf16.msra.mxu2 %v4863_v41  ;;  %3758 = vmatpush.bf16.msra.mxu3 %v4991_v56  ;;  %v5276_v41 = vld [vmem:[%s9087_s7 + $0x3b8] sm:$0xf0]  ;;  %v5387_v56 = vor.u32 %v5859_v2, %v5386_v29  ;;  %v5777_v29 = vld [vmem:[%s9087_s7 + $0x20c] sm:$0xf] }
 0x4c2   :  { %v5068_v2 = vld [vmem:[%s9087_s7 + $0x218] sm:$0xf0] }
 0x4c3   :  { %v3620_v59 = vpop.f32.mrf.mxu2  ;;  %v3633_v38 = vpop.f32.mrf.mxu3  ;;  %4210 = vmatpush.bf16.msrb.mxu1 %v5387_v56 }
 0x4c4   :  { %v3621_v57 = vadd.f32 %v3620_v59, %v3608_v60  ;;  %v5809_v60 = vld [vmem:[%s9087_s7 + $0x30c] sm:$0xf] }
 0x4c5   :  { %3746 = vmatpush.bf16.msra.mxu2 %v4847_v24  ;;  %3759 = vmatpush.bf16.msra.mxu3 %v4975_v14  ;;  %v5260_v24 = vld [vmem:[%s9087_s7 + $0x398] sm:$0xf0]  ;;  %v5379_v14 = vor.u32 %v5857_v47, %v5378_v44  ;;  %v5498_v44 = vld [vmem:[%s9089_s9 + $0x170] sm:$0xf]  ;;  %v5887_v47 = vld [vmem:[%s9089_s9 + $0x174] sm:$0xf0] }
 0x4c6   :  { %v3634_v39 = vadd.f32 %v3633_v38, %v3621_v57  ;;  %v5263_v10 = vor.u32 %v5825_v11, %v5260_v24  ;;  %v5860_v38 = vld [vmem:[%s9089_s9 + $0xa4] sm:$0xf]  ;;  %v5499_v33 = vor.u32 %v5887_v47, %v5498_v44  ;;  %v5383_v11 = vor.u32 %v5856_v51, %v5380_v5  ;;  %v5444_v5 = vld [vmem:[%s9089_s9 + $0x108] sm:$0xf0] }
 0x4c7   :  { %4211 = vmatpush.bf16.msrb.mxu1 %v5379_v14  ;;  %v2938_v24 = vperm.slane %v8623_v17, 1  ;;  %v5490_v14 = vld [vmem:[%s9089_s9 + $0x160] sm:$0xf]  ;;  %v5872_v51 = vld [vmem:[%s9089_s9 + $0x104] sm:$0xf] }
 0x4c8   :  { %v3793_v16 = vmax.f32 %v3634_v39, 0.0  ;;  %v5858_v39 = vld [vmem:[%s9089_s9 + $0x94] sm:$0xf] }
 0x4c9   :  { %3747 = vmatpush.bf16.msra.mxu2 %v4831_v31  ;;  %3760 = vmatpush.bf16.msra.mxu3 %v4959_v25  ;;  %v5116_v25 = vld [vmem:[%s9087_s7 + $0x278] sm:$0xf0] }
 0x4ca   :  { %v3797_v23 = vpack.c.bf16 %v3793_v16, %v3793_v16  ;;  %v5119_v35 = vor.u32 %v5789_v1, %v5116_v25  ;;  %v5474_v1 = vld [vmem:[%s9089_s9 + $0x140] sm:$0xf] }
 0x4cb   :  { %v3622_v63 = vpop.f32.mrf.mxu2  ;;  %v3635_v31 = vpop.f32.mrf.mxu3  ;;  %4256 = vmatpush.bf16.msra.mxu1 %v5439_v22  ;;  %v5482_v22 = vld [vmem:[%s9089_s9 + $0x150] sm:$0xf] }
 0x4cc   :  { %4199 = vmatmul.bf16.vlgmr.msrb.gmra.mxu0 %v3797_v23  ;;  %v5483_v28 = vor.u32 %v5883_v53, %v5482_v22  ;;  %v5881_v63 = vld [vmem:[%s9089_s9 + $0x144] sm:$0xf0]  ;;  %v5546_v22 = vld [vmem:[%s9089_s9 + $0x1d0] sm:$0xf]  ;;  %v5899_v53 = vld [vmem:[%s9089_s9 + $0x1d4] sm:$0xf0] }
 0x4cd   :  { %3748 = vmatpush.bf16.msra.mxu2 %v4815_v30  ;;  %3761 = vmatpush.bf16.msra.mxu3 %v4943_v13  ;;  %v5231_v30 = vor.u32 %v5817_v62, %v5228_v46  ;;  %v5781_v13 = vld [vmem:[%s9087_s7 + $0x22c] sm:$0xf]  ;;  %v5475_v25 = vor.u32 %v5881_v63, %v5474_v1  ;;  %v5459_v46 = vor.u32 %v5877_v52, %v5458_v50  ;;  %v5538_v1 = vld [vmem:[%s9089_s9 + $0x1c0] sm:$0xf]  ;;  %v5897_v63 = vld [vmem:[%s9089_s9 + $0x1c4] sm:$0xf0] }
 0x4ce   :  { %v5087_v37 = vor.u32 %v5781_v13, %v5084_v26  ;;  %v5442_v13 = vld [vmem:[%s9089_s9 + $0x100] sm:$0xf]  ;;  %v5873_v26 = vld [vmem:[%s9089_s9 + $0x104] sm:$0xf0] }
 0x4cf   :  { %4257 = vmatpush.bf16.msra.mxu1 %v5431_v9  ;;  %v5879_v9 = vld [vmem:[%s9089_s9 + $0x134] sm:$0xf0]  ;;  %v5522_v52 = vld [vmem:[%s9089_s9 + $0x1a0] sm:$0xf] }
 0x4d0   :  { %3749 = vmatmul.bf16.vlgmr.msra.gmra.mxu2 %v8045_v54  ;;  %3762 = vmatmul.bf16.vlgmr.msra.gmra.mxu3 %v8047_v21  ;;  %v5151_v54 = vor.u32 %v5797_v3, %v5148_v7  ;;  %v5279_v21 = vor.u32 %v5829_v12, %v5276_v41  ;;  %v5404_v3 = vld [vmem:[%s9089_s9 + $0xb8] sm:$0xf0]  ;;  %v5396_v7 = vld [vmem:[%s9089_s9 + $0xa8] sm:$0xf0]  ;;  %v5071_v12 = vor.u32 %v5777_v29, %v5068_v2 }
 0x4d1   :  { %3767 = vmatpush.bf16.msrb.mxu2 %v5183_v27  ;;  %3780 = vmatpush.bf16.msrb.mxu3 %v5311_v36  ;;  %v5813_v27 = vld [vmem:[%s9087_s7 + $0x32c] sm:$0xf]  ;;  %v5399_v15 = vor.u32 %v5860_v38, %v5396_v7  ;;  %v5468_v38 = vld [vmem:[%s9089_s9 + $0x138] sm:$0xf0] }
 0x4d2   :  { %v5215_v0 = vor.u32 %v5813_v27, %v5212_v32  ;;  %v5886_v27 = vld [vmem:[%s9089_s9 + $0x174] sm:$0xf] }
 0x4d3   :  { %v3646_v36 = vpop.f32.mrf.mxu2  ;;  %v3659_v34 = vpop.f32.mrf.mxu3  ;;  %4258 = vmatpush.bf16.msra.mxu1 %v5423_v8  ;;  %v5450_v8 = vld [vmem:[%s9089_s9 + $0x110] sm:$0xf] }
 0x4d4   :  { %v3647_v16 = vadd.f32 %v3646_v36, %v2938_v24  ;;  %v5500_v36 = vld [vmem:[%s9089_s9 + $0x178] sm:$0xf0]  ;;  %v2939_v24 = vperm.slane %v8623_v17, 2 }
 0x4d5   :  { %3768 = vmatpush.bf16.msrb.mxu2 %v5167_v18  ;;  %3781 = vmatpush.bf16.msrb.mxu3 %v5295_v61  ;;  %v5196_v18 = vld [vmem:[%s9087_s7 + $0x318] sm:$0xf0]  ;;  %v5862_v61 = vld [vmem:[%s9089_s9 + $0xb4] sm:$0xf]  ;;  %v5503_v32 = vor.u32 %v5886_v27, %v5500_v36 }
 0x4d6   :  { %v5407_v59 = vor.u32 %v5862_v61, %v5404_v3  ;;  %v5199_v41 = vor.u32 %v5809_v60, %v5196_v18  ;;  %v5880_v18 = vld [vmem:[%s9089_s9 + $0x144] sm:$0xf]  ;;  %v5476_v61 = vld [vmem:[%s9089_s9 + $0x148] sm:$0xf0]  ;;  %v5902_v27 = vld [vmem:[%s9089_s9 + $0x1f4] sm:$0xf] }
 0x4d7   :  { %4259 = vmatpush.bf16.msra.mxu1 %v5415_v49  ;;  %v5495_v49 = vor.u32 %v5884_v43, %v5492_v40  ;;  %v5479_v3 = vor.u32 %v5880_v18, %v5476_v61  ;;  %v5900_v43 = vld [vmem:[%s9089_s9 + $0x1e4] sm:$0xf]  ;;  %v5556_v40 = vld [vmem:[%s9089_s9 + $0x1e8] sm:$0xf0] }
 0x4d8   :  { %v5896_v18 = vld [vmem:[%s9089_s9 + $0x1c4] sm:$0xf]  ;;  %v5540_v61 = vld [vmem:[%s9089_s9 + $0x1c8] sm:$0xf0] }
 0x4d9   :  { %3769 = vmatpush.bf16.msrb.mxu2 %v5151_v54  ;;  %3782 = vmatpush.bf16.msrb.mxu3 %v5279_v21  ;;  %v5388_v54 = vld [vmem:[%s9089_s9 + $0x98] sm:$0xf0] }
 0x4da   :  { %v5391_v21 = vor.u32 %v5858_v39, %v5388_v54  ;;  %v5903_v39 = vld [vmem:[%s9089_s9 + $0x1f4] sm:$0xf0] }
 0x4db   :  { %v3648_v56 = vpop.f32.mrf.mxu2  ;;  %v3661_v57 = vpop.f32.mrf.mxu3  ;;  %4260 = vmatpush.bf16.msra.mxu1 %v5407_v59  ;;  %v5878_v59 = vld [vmem:[%s9089_s9 + $0x134] sm:$0xf] }
 0x4dc   :  { %4251 = vmatmul.bf16.vlgmr.msra.gmra.mxu0 %v3797_v23  ;;  %v3660_v23 = vadd.f32 %v3659_v34, %v3647_v16  ;;  %v5443_v34 = vor.u32 %v5873_v26, %v5442_v13  ;;  %v5471_v7 = vor.u32 %v5878_v59, %v5468_v38  ;;  %v5874_v57 = vld [vmem:[%s9089_s9 + $0x114] sm:$0xf]  ;;  %v5506_v13 = vld [vmem:[%s9089_s9 + $0x180] sm:$0xf]  ;;  %v5889_v26 = vld [vmem:[%s9089_s9 + $0x184] sm:$0xf0] }
 0x4dd   :  { %3770 = vmatpush.bf16.msrb.mxu2 %v5135_v45  ;;  %3783 = vmatpush.bf16.msrb.mxu3 %v5263_v10  ;;  %v5507_v36 = vor.u32 %v5889_v26, %v5506_v13  ;;  %v5894_v38 = vld [vmem:[%s9089_s9 + $0x1b4] sm:$0xf]  ;;  %v5907_v13 = vld [vmem:[%s9091_s11 + $0x18] sm:$0xff] }
 0x4df   :  { %4261 = vmatpush.bf16.msra.mxu1 %v5399_v15  ;;  %v5452_v15 = vld [vmem:[%s9089_s9 + $0x118] sm:$0xf0] }
 0x4e1   :  { %3771 = vmatpush.bf16.msrb.mxu2 %v5119_v35  ;;  %3784 = vmatpush.bf16.msrb.mxu3 %v5247_v6  ;;  %v5467_v6 = vor.u32 %v5879_v9, %v5466_v4  ;;  %v5530_v4 = vld [vmem:[%s9089_s9 + $0x1b0] sm:$0xf]  ;;  %v5895_v9 = vld [vmem:[%s9089_s9 + $0x1b4] sm:$0xf0] }
 0x4e3   :  { %4262 = vmatpush.bf16.msra.mxu1 %v5391_v21  ;;  %v5455_v21 = vor.u32 %v5874_v57, %v5452_v15 }
 0x4e5   :  { %3772 = vmatpush.bf16.msrb.mxu2 %v5103_v58  ;;  %3785 = vmatpush.bf16.msrb.mxu3 %v5231_v30  ;;  %v5875_v58 = vld [vmem:[%s9089_s9 + $0x114] sm:$0xf0] }
 0x4e6   :  { %v5451_v30 = vor.u32 %v5875_v58, %v5450_v8  ;;  %v5514_v8 = vld [vmem:[%s9089_s9 + $0x190] sm:$0xf]  ;;  %v5891_v58 = vld [vmem:[%s9089_s9 + $0x194] sm:$0xf0] }
 0x4e7   :  { %4263 = vmatpush.bf16.msra.mxu1 %v5383_v11  ;;  %v5447_v11 = vor.u32 %v5872_v51, %v5444_v5  ;;  %v5508_v51 = vld [vmem:[%s9089_s9 + $0x188] sm:$0xf0] }
 0x4e9   :  { %3773 = vmatpush.bf16.msrb.mxu2 %v5087_v37  ;;  %3786 = vmatpush.bf16.msrb.mxu3 %v5215_v0  ;;  %v5882_v37 = vld [vmem:[%s9089_s9 + $0x154] sm:$0xf]  ;;  %v5484_v0 = vld [vmem:[%s9089_s9 + $0x158] sm:$0xf0] }
 0x4ea   :  { %v5487_v29 = vor.u32 %v5882_v37, %v5484_v0  ;;  %v5898_v37 = vld [vmem:[%s9089_s9 + $0x1d4] sm:$0xf]  ;;  %v5548_v0 = vld [vmem:[%s9089_s9 + $0x1d8] sm:$0xf0] }
 0x4ed   :  { %3774 = vmatpush.bf16.msrb.mxu2 %v5071_v12  ;;  %3787 = vmatpush.bf16.msrb.mxu3 %v5199_v41  ;;  %v5876_v12 = vld [vmem:[%s9089_s9 + $0x124] sm:$0xf]  ;;  %v5460_v41 = vld [vmem:[%s9089_s9 + $0x128] sm:$0xf0] }
 0x4ee   :  { %v5463_v56 = vor.u32 %v5876_v12, %v5460_v41  ;;  %v5892_v41 = vld [vmem:[%s9089_s9 + $0x1a4] sm:$0xf] }
 0x4f0   :  { %3775 = vmatmul.bf16.vlgmr.msrb.gmra.mxu2 %v8099_v19  ;;  %3788 = vmatmul.bf16.vlgmr.msrb.gmra.mxu3 %v8101_v55  ;;  %v5885_v19 = vld [vmem:[%s9089_s9 + $0x164] sm:$0xf0] }
 0x4f1   :  { %4217 = vmatpush.bf16.msra.mxu2 %v5499_v33  ;;  %v5491_v55 = vor.u32 %v5885_v19, %v5490_v14  ;;  %v5562_v33 = vld [vmem:[%s9089_s9 + $0x1f0] sm:$0xf]  ;;  %v5554_v14 = vld [vmem:[%s9089_s9 + $0x1e0] sm:$0xf]  ;;  %v5901_v19 = vld [vmem:[%s9089_s9 + $0x1e4] sm:$0xf0] }
 0x4f2   :  { %v5563_v54 = vor.u32 %v5903_v39, %v5562_v33  ;;  %v5890_v33 = vld [vmem:[%s9089_s9 + $0x194] sm:$0xf]  ;;  %v5516_v39 = vld [vmem:[%s9089_s9 + $0x198] sm:$0xf0] }
 0x4f3   :  { %v3672_v45 = vpop.f32.mrf.mxu2  ;;  %v3685_v10 = vpop.f32.mrf.mxu3 }
 0x4f4   :  { %v3673_v31 = vadd.f32 %v3672_v45, %v3660_v23  ;;  %4230 = vmatpush.bf16.msra.mxu3 %v5563_v54  ;;  %v5519_v54 = vor.u32 %v5890_v33, %v5516_v39  ;;  %v6391_v33 = vld [vmem:[%s9092_s12] ss:$0 sm:$0xff] }
 0x4f5   :  { %4218 = vmatpush.bf16.msra.mxu2 %v5491_v55  ;;  %v5555_v55 = vor.u32 %v5901_v19, %v5554_v14 }
 0x4f6   :  { %v3686_v42 = vadd.f32 %v3685_v10, %v3673_v31 }
 0x4f8   :  { %v3794_v35 = vmax.f32 %v3686_v42, 0.0  ;;  %4231 = vmatpush.bf16.msra.mxu3 %v5555_v55 }
 0x4f9   :  { %4219 = vmatpush.bf16.msra.mxu2 %v5483_v28  ;;  %v5547_v28 = vor.u32 %v5899_v53, %v5546_v22 }
 0x4fa   :  { %v3798_v62 = vpack.c.bf16 %v3794_v35, %v3794_v35 }
 0x4fb   :  { %v3674_v20 = vpop.f32.mrf.mxu2  ;;  %v3687_v48 = vpop.f32.mrf.mxu3 }
 0x4fc   :  { %4212 = vmatmul.bf16.vlgmr.msrb.gmra.mxu1 %v3798_v62  ;;  %4232 = vmatpush.bf16.msra.mxu3 %v5547_v28 }
 0x4fd   :  { %4220 = vmatpush.bf16.msra.mxu2 %v5475_v25  ;;  %v5539_v25 = vor.u32 %v5897_v63, %v5538_v1  ;;  %v3865_v63 = vld [vmem:[%s9090_s10] sm:$0x3] }
 0x500   :  { %4233 = vmatpush.bf16.msra.mxu3 %v5539_v25 }
 0x501   :  { %4221 = vmatpush.bf16.msra.mxu2 %v5467_v6  ;;  %v5531_v6 = vor.u32 %v5895_v9, %v5530_v4  ;;  %v3868_v9 = vperm.slane %v3865_v63, 1 }
 0x504   :  { %4234 = vmatpush.bf16.msra.mxu3 %v5531_v6 }
 0x505   :  { %4222 = vmatpush.bf16.msra.mxu2 %v5459_v46 }
 0x509   :  { %4223 = vmatpush.bf16.msra.mxu2 %v5451_v30  ;;  %v5515_v30 = vor.u32 %v5891_v58, %v5514_v8  ;;  %v5909_v8 = vld [vmem:[%s9091_s11 + $0x28] sm:$0xff] }
 0x50c   :  { %4264 = vmatmul.bf16.vlgmr.msra.gmra.mxu1 %v3798_v62  ;;  %v5893_v62 = vld [vmem:[%s9089_s9 + $0x1a4] sm:$0xf0] }
 0x50d   :  { %4224 = vmatpush.bf16.msra.mxu2 %v5443_v34  ;;  %v5523_v48 = vor.u32 %v5893_v62, %v5522_v52  ;;  %v5564_v34 = vld [vmem:[%s9089_s9 + $0x1f8] sm:$0xf0] }
 0x50e   :  { %v5911_v62 = vld [vmem:[%s9091_s11 + $0x38] sm:$0xff] }
 0x50f   :  { %4235 = vmatpush.bf16.msra.mxu3 %v5523_v48  ;;  %4431 = vmatpush.bf16.msrb.mxu0 %v5911_v62  ;;  %v5918_v48 = vld [vmem:[%s9091_s11 + $0x70] sm:$0xff] }
 0x511   :  { %4269 = vmatpush.bf16.msrb.mxu2 %v5503_v32  ;;  %v5567_v32 = vor.u32 %v5902_v27, %v5564_v34  ;;  %v5906_v27 = vld [vmem:[%s9091_s11 + $0x10] sm:$0xff] }
 0x513   :  { %v3698_v2 = vpop.f32.mrf.mxu2  ;;  %v3711_v60 = vpop.f32.mrf.mxu3  ;;  %4236 = vmatpush.bf16.msra.mxu3 %v5515_v30  ;;  %v5908_v30 = vld [vmem:[%s9091_s11 + $0x20] sm:$0xff] }
 0x514   :  { %v3699_v16 = vadd.f32 %v3698_v2, %v2939_v24  ;;  %v2940_v24 = vperm.slane %v8623_v17, 3 }
 0x515   :  { %4270 = vmatpush.bf16.msrb.mxu2 %v5495_v49  ;;  %v5559_v49 = vor.u32 %v5900_v43, %v5556_v40  ;;  %v5917_v43 = vld [vmem:[%s9091_s11 + $0x68] sm:$0xff]  ;;  %v5904_v40 = vld [vmem:[%s9091_s11] sm:$0xff] }
 0x516   :  { %v3712_v23 = vadd.f32 %v3711_v60, %v3699_v16 }
 0x517   :  { %4237 = vmatpush.bf16.msra.mxu3 %v5507_v36 }
 0x519   :  { %4271 = vmatpush.bf16.msrb.mxu2 %v5487_v29  ;;  %v5551_v29 = vor.u32 %v5898_v37, %v5548_v0  ;;  %v5915_v37 = vld [vmem:[%s9091_s11 + $0x58] sm:$0xff]  ;;  %v5914_v0 = vld [vmem:[%s9091_s11 + $0x50] sm:$0xff] }
 0x51b   :  { %v3700_v44 = vpop.f32.mrf.mxu2  ;;  %v3713_v47 = vpop.f32.mrf.mxu3  ;;  %4282 = vmatpush.bf16.msrb.mxu3 %v5567_v32  ;;  %v5905_v32 = vld [vmem:[%s9091_s11 + $0x8] sm:$0xff] }
 0x51d   :  { %4272 = vmatpush.bf16.msrb.mxu2 %v5479_v3  ;;  %v5543_v3 = vor.u32 %v5896_v18, %v5540_v61 }
 0x51f   :  { %4283 = vmatpush.bf16.msrb.mxu3 %v5559_v49  ;;  %v5916_v49 = vld [vmem:[%s9091_s11 + $0x60] sm:$0xff] }
 0x521   :  { %4273 = vmatpush.bf16.msrb.mxu2 %v5471_v7  ;;  %v5532_v7 = vld [vmem:[%s9089_s9 + $0x1b8] sm:$0xf0] }
 0x522   :  { %v5535_v12 = vor.u32 %v5894_v38, %v5532_v7 }
 0x523   :  { %4284 = vmatpush.bf16.msrb.mxu3 %v5551_v29  ;;  %v5913_v29 = vld [vmem:[%s9091_s11 + $0x48] sm:$0xff] }
 0x525   :  { %4274 = vmatpush.bf16.msrb.mxu2 %v5463_v56  ;;  %v5524_v56 = vld [vmem:[%s9089_s9 + $0x1a8] sm:$0xf0] }
 0x526   :  { %v5527_v57 = vor.u32 %v5892_v41, %v5524_v56 }
 0x527   :  { %4285 = vmatpush.bf16.msrb.mxu3 %v5543_v3 }
 0x529   :  { %4275 = vmatpush.bf16.msrb.mxu2 %v5455_v21  ;;  %v5888_v21 = vld [vmem:[%s9089_s9 + $0x184] sm:$0xf] }
 0x52a   :  { %v5511_v5 = vor.u32 %v5888_v21, %v5508_v51 }
 0x52b   :  { %4286 = vmatpush.bf16.msrb.mxu3 %v5535_v12 }
 0x52d   :  { %4276 = vmatpush.bf16.msrb.mxu2 %v5447_v11 }
 0x52f   :  { %4287 = vmatpush.bf16.msrb.mxu3 %v5527_v57 }
 0x533   :  { %v3724_v45 = vpop.f32.mrf.mxu2  ;;  %v3737_v10 = vpop.f32.mrf.mxu3  ;;  %4288 = vmatpush.bf16.msrb.mxu3 %v5519_v54 }
 0x534   :  { %v3725_v31 = vadd.f32 %v3724_v45, %v3712_v23 }
 0x536   :  { %v3738_v42 = vadd.f32 %v3737_v10, %v3725_v31  ;;  %v3867_v31 = vperm.slane %v3865_v63, 0 }
 0x537   :  { %4289 = vmatpush.bf16.msrb.mxu3 %v5511_v5 }
 0x538   :  { %v3795_v35 = vmax.f32 %v3738_v42, 0.0 }
 0x53a   :  { %v3799_v50 = vpack.c.bf16 %v3795_v35, %v3795_v35 }
 0x53b   :  { %v3726_v46 = vpop.f32.mrf.mxu2  ;;  %v3739_v20 = vpop.f32.mrf.mxu3 }
 0x53c   :  { %4225 = vmatmul.bf16.vlgmr.msra.gmra.mxu2 %v3799_v50  ;;  %v5919_v46 = vld [vmem:[%s9091_s11 + $0x78] sm:$0xff]  ;;  %v5910_v20 = vld [vmem:[%s9091_s11 + $0x30] sm:$0xff] }
 0x53d   :  { %4444 = vmatpush.bf16.msrb.mxu1 %v5919_v46  ;;  %4432 = vmatpush.bf16.msrb.mxu0 %v5910_v20 }
 0x541   :  { %4445 = vmatpush.bf16.msrb.mxu1 %v5918_v48  ;;  %4433 = vmatpush.bf16.msrb.mxu0 %v5909_v8 }
 0x545   :  { %4434 = vmatpush.bf16.msrb.mxu0 %v5908_v30  ;;  %4446 = vmatpush.bf16.msrb.mxu1 %v5917_v43 }
 0x549   :  { %v4200_v59 = vpop.f32.mrf.mxu0  ;;  %4435 = vmatpush.bf16.msrb.mxu0 %v5907_v13  ;;  %4447 = vmatpush.bf16.msrb.mxu1 %v5916_v49 }
 0x54a   :  { %v4201_v25 = vadd.f32 %v4200_v59, %v3867_v31 }
 0x54c   :  { %4277 = vmatmul.bf16.vlgmr.msrb.gmra.mxu2 %v3799_v50 }
 0x54d   :  { %4436 = vmatpush.bf16.msrb.mxu0 %v5906_v27  ;;  %4448 = vmatpush.bf16.msrb.mxu1 %v5915_v37 }
 0x551   :  { %v4202_v15 = vpop.f32.mrf.mxu0  ;;  %4437 = vmatpush.bf16.msrb.mxu0 %v5905_v32  ;;  %4449 = vmatpush.bf16.msrb.mxu1 %v5914_v0 }
 0x553   :  { %v3750_v2 = vpop.f32.mrf.mxu2  ;;  %v3763_v60 = vpop.f32.mrf.mxu3 }
 0x554   :  { %v3751_v14 = vadd.f32 %v3750_v2, %v2940_v24  ;;  %v5912_v2 = vld [vmem:[%s9091_s11 + $0x40] sm:$0xff]  ;;  %s6424_s11 = smov [#allocation3]  }
 0x555   :  { %4438 = vmatpush.bf16.msrb.mxu0 %v5904_v40  ;;  %4450 = vmatpush.bf16.msrb.mxu1 %v5913_v29  ;;  %s4466_s21 = sshll.u32 %s6424_s11, 4  ;;  %s4467_s21 = int_to_ptr.vmem [resolvable:$true] %s4466_s21 }
 0x556   :  { %v3764_v55 = vadd.f32 %v3763_v60, %v3751_v14 }
 0x559   :  { %v4252_v11 = vpop.f32.mrf.mxu0  ;;  %4451 = vmatpush.bf16.msrb.mxu1 %v5912_v2 }
 0x55a   :  { %v4253_v35 = vadd.f32 %v4252_v11, %v3868_v9 }
 0x55b   :  { %v3752_v44 = vpop.f32.mrf.mxu2  ;;  %v3765_v47 = vpop.f32.mrf.mxu3 }
 0x561   :  { %v4254_v19 = vpop.f32.mrf.mxu0 }
 0x573   :  { %v3776_v16 = vpop.f32.mrf.mxu2  ;;  %v3789_v22 = vpop.f32.mrf.mxu3 }
 0x574   :  { %v3777_v53 = vadd.f32 %v3776_v16, %v3764_v55 }
 0x576   :  { %v3790_v28 = vadd.f32 %v3789_v22, %v3777_v53 }
 0x578   :  { %v3796_v23 = vmax.f32 %v3790_v28, 0.0 }
 0x579   :  { %v4213_v42 = vpop.f32.mrf.mxu1 }
 0x57a   :  { %v3800_v45 = vpack.c.bf16 %v3796_v23, %v3796_v23  ;;  %v4214_v17 = vadd.f32 %v4213_v42, %v4201_v25 }
 0x57b   :  { %v3778_v10 = vpop.f32.mrf.mxu2  ;;  %v3791_v1 = vpop.f32.mrf.mxu3 }
 0x57c   :  { %4238 = vmatmul.bf16.vlgmr.msra.gmra.mxu3 %v3800_v45 }
 0x581   :  { %v4215_v4 = vpop.f32.mrf.mxu1 }
 0x589   :  { %v4265_v6 = vpop.f32.mrf.mxu1 }
 0x58a   :  { %v4266_v50 = vadd.f32 %v4265_v6, %v4253_v35 }
 0x58c   :  { %4290 = vmatmul.bf16.vlgmr.msrb.gmra.mxu3 %v3800_v45 }
 0x591   :  { %v4267_v52 = vpop.f32.mrf.mxu1 }
 0x5bf   :  { %v4226_v58 = vpop.f32.mrf.mxu2 }
 0x5c0   :  { %v4227_v60 = vadd.f32 %v4226_v58, %v4214_v17 }
 0x5c7   :  { %v4228_v26 = vpop.f32.mrf.mxu2 }
 0x5cf   :  { %v4278_v36 = vpop.f32.mrf.mxu2 }
 0x5d0   :  { %v4279_v7 = vadd.f32 %v4278_v36, %v4266_v50 }
 0x5d7   :  { %v4280_v34 = vpop.f32.mrf.mxu2 }
 0x5ff   :  { %v4239_v18 = vpop.f32.mrf.mxu3 }
 0x600   :  { %v4240_v61 = vadd.f32 %v4239_v18, %v4227_v60 }
 0x602   :  { %v4295_v3 = vmax.f32 %v4240_v61, 0.0 }
 0x604   :  { %v4297_v59 = vpack.c.bf16 %v4295_v3, %v4295_v3 }
 0x606   :  { %4439 = vmatmul.bf16.vlgmr.msrb.gmra.mxu0 %v4297_v59 }
 0x607   :  { %v4241_v38 = vpop.f32.mrf.mxu3 }
 0x60f   :  { %v4291_v12 = vpop.f32.mrf.mxu3 }
 0x610   :  { %v4292_v41 = vadd.f32 %v4291_v12, %v4279_v7 }
 0x612   :  { %v4296_v56 = vmax.f32 %v4292_v41, 0.0 }
 0x614   :  { %v4298_v57 = vpack.c.bf16 %v4296_v56, %v4296_v56 }
 0x616   :  { %4452 = vmatmul.bf16.vlgmr.msrb.gmra.mxu1 %v4298_v57 }
 0x617   :  { %v4293_v44 = vpop.f32.mrf.mxu3 }
 0x683   :  { %v4440_v47 = vpop.f32.mrf.mxu0 }
 0x684   :  { %v4441_v39 = vadd.f32 %v6391_v33, %v4440_v47 }
 0x68b   :  { %v4442_v15 = vpop.f32.mrf.mxu0 }
 0x693   :  { %v4453_v54 = vpop.f32.mrf.mxu1 }
 0x694   :  { %v4454_v21 = vadd.f32 %v4453_v54, %v4441_v39 }
 0x696   :  { %v4458_v51 = vrot.slane %v4454_v21, 1  ;;  %4460 = vst [vmem:[#allocation3] sm:$0x1] %v4454_v21 }
 0x698   :  { %4461 = vst [vmem:[#allocation3 + $0x1] sm:$0x1] %v4458_v51 }
 0x699   :  { %4474 = dma.vmem_to_hbm [thread:$0]  %s4467_s21, 32, %s4469_s3, [#allocation4], %s6425_s24, %s6425_s24, %s6426_s0  }
 0x69b   :  { %v4455_v5 = vpop.f32.mrf.mxu1 }
 0x69c   :  { %6418 = dma.done.wait [#allocation4], 32  }
 0x69d   :  { %6419 = vsyncadd [#allocation4], 4294967264 }
 0x69e   :  { %4479 = vsyncpa [#allocation4], 1 }

</bundles_post_ra>
